<compile_context>
chip_gen: v7x
topology: tpu7x:2x2x1
jax: 0.10.0
libtpu: 0.0.40
codegen_flags: <defaults>
</compile_context>

<pallas_src>
import jax
import jax.numpy as jnp
from jax import lax
from jax.experimental import pallas as pl
from jax.experimental.pallas import tpu as pltpu


def _residual_downsample_kernel(
    x_ref,      # (H, W, C)         one NHWC image (batch dim squeezed by BlockSpec)
    w1_ref,     # (C, C)            top 1x1 conv, (cin, cout)
    a1_ref,     # (1, 1)   SMEM     PReLU #1 weight (single-parameter)
    w2c_ref,    # (9C, C)           top 3x3 conv as im2col weight, rows = (dy, dx, cin)
    a2_ref,     # (1, 1)   SMEM     PReLU #2 weight
    w34_ref,    # (2C, 2C)          fused epilogue 1x1s: rows 0:C = w3 (top), C:2C = w4 (bot)
    out_ref,    # (Hout, Wout, 2C)
    pad_ref,    # (H+2, W+2, C)     zero-padded activation for the 3x3 conv
    col_ref,    # (H, W, 9C)        im2col columns; low lanes reused for the epilogue concat
    tmp_ref,    # (H, W, C)         staging buffer so BlurPool can do strided reads on t2
):
    H, W, C = x_ref.shape
    Hout, Wout = H // 2, W // 2
    a1 = a1_ref[0, 0]
    a2 = a2_ref[0, 0]

    def prelu(v, a):
        return jnp.where(v >= 0, v, a * v)

    def mix(v, w):
        # 1x1 conv over the channel (lane) axis: (..., Cin) @ (Cin, Cout) with
        # f32 MXU accumulation.  Tiny Cin falls back to VPU broadcast-FMAs
        # (kept in f32 so v5e elementwise math never runs in bf16).
        cin, cout = w.shape
        lead = v.shape[:-1]
        if cin >= 8:
            y = jnp.dot(v.reshape(-1, cin).astype(w.dtype), w,
                        preferred_element_type=jnp.float32)
            return y.reshape(lead + (cout,))
        acc = v[..., 0:1] * w[0:1, :].astype(jnp.float32)
        for c in range(1, cin):
            acc = acc + v[..., c:c + 1] * w[c:c + 1, :].astype(jnp.float32)
        return acc

    def blurpool(src):
        # Anti-aliased stride-2 downsample (ReflectionPad2d(1) + separable
        # [1,2,1]/4 blur, stride 2) of a (H, W, Cc) VMEM ref.
        # Horizontal pass: even/odd columns come from two sublane-strided ref
        # reads; the reflected column (-1 == 1) is produced with one XLU
        # sublane roll + one select, so no reflect-pad buffer and no 1-wide
        # masked stores are needed.  For even W the right edge is never used.
        Cc = src.shape[-1]
        cc = src[:, pl.ds(0, Wout, 2), :].astype(jnp.float32)   # cols 2j
        cp = src[:, pl.ds(1, Wout, 2), :].astype(jnp.float32)   # cols 2j+1
        cm = pltpu.roll(cp, shift=1, axis=1)                    # cols 2j-1, j>=1
        left = lax.broadcasted_iota(jnp.int32, (H, Wout, Cc), 1) == 0
        cm = jnp.where(left, cp, cm)                            # reflect col -1 -> col 1
        hb = 0.25 * (cm + 2.0 * cc + cp)                        # (H, Wout, Cc)
        # Vertical pass: even/odd split via a leading-dim reshape (last two
        # dims unchanged -> no relayout); top reflection (row -1 == row 1) via
        # a cheap leading-axis concat.
        hb4 = hb.reshape(Hout, 2, Wout, Cc)
        r_even, r_odd = hb4[:, 0], hb4[:, 1]                    # rows 2i, 2i+1
        r_m = jnp.concatenate([r_odd[0:1], r_odd[:Hout - 1]], axis=0)  # rows 2i-1
        return 0.25 * (r_m + 2.0 * r_even + r_odd)              # (Hout, Wout, Cc)

    # ---- bottom branch first: pure VPU/XLU work straight off x_ref ---------
    bot_ds = blurpool(x_ref)                                    # (Hout, Wout, C)

    # ---- top branch: 1x1 conv (C->C) + PReLU --------------------------------
    x = x_ref[...].astype(jnp.float32)
    t = prelu(mix(x, w1_ref[...]), a1)                          # (H, W, C)

    # ---- top branch: 3x3 conv (pad=1) as ONE im2col matmul, K = 9C ---------
    # Whole-buffer zero fill = one wide unmasked store (no narrow border
    # stores; safe under megacore partitioning of the batch axis), then one
    # interior store of t.  The 9 shifted taps are read directly from the
    # padded ref and written at static lane offsets of col_ref.
    pad_ref[...] = jnp.zeros(pad_ref.shape, jnp.float32)
    pad_ref[1:H + 1, 1:W + 1, :] = t
    for k in range(9):
        dy, dx = k // 3, k % 3
        col_ref[:, :, k * C:(k + 1) * C] = pad_ref[dy:dy + H, dx:dx + W, :]
    t2 = prelu(mix(col_ref[...], w2c_ref[...]), a2)             # (H, W, C)

    # ---- top branch BlurPool (strided reads need a ref: one full store) ----
    tmp_ref[...] = t2
    top_ds = blurpool(tmp_ref)                                  # (Hout, Wout, C)

    # ---- fused epilogue: out = [top_ds | bot_ds] @ [w3 ; w4] ----------------
    # Single K=2C matmul instead of two K=C matmuls + a VPU add.  The channel
    # concat is assembled by two lane-offset stores into the (now dead)
    # col_ref; narrow-lane jnp.concatenate is deliberately avoided.
    col_ref[0:Hout, 0:Wout, 0:C] = top_ds
    col_ref[0:Hout, 0:Wout, C:2 * C] = bot_ds
    out = mix(col_ref[0:Hout, 0:Wout, 0:2 * C], w34_ref[...])   # (Hout, Wout, 2C)
    out_ref[...] = out.astype(out_ref.dtype)


def residual_downsample(x_nchw, params, *, matmul_dtype=jnp.float32):
    """x_nchw: (N, C, H, W) float32 -> (N, 2C, H//2, W//2) float32.

    Requires H, W even and >= 4; single-parameter PReLU (nn.PReLU()).
    Set matmul_dtype=jnp.bfloat16 on v5e/v6e/v7x to feed the MXU bf16
    operands (f32 accumulation is kept).
    """
    w1, a1, w2, a2, w3, w4 = params                 # torch layouts (OIHW, scalars)
    N, C, H, W = x_nchw.shape
    assert H % 2 == 0 and W % 2 == 0 and H >= 4 and W >= 4, (H, W)
    Hout, Wout, Cout = H // 2, W // 2, 2 * C

    # Glue: NHWC activations, (cin, cout) 1x1 weights, (9C, C) im2col weight,
    # and the two epilogue 1x1 weights stacked along the contraction dim.
    x = jnp.transpose(x_nchw, (0, 2, 3, 1)).astype(jnp.float32)
    w1k = jnp.transpose(w1[:, :, 0, 0], (1, 0)).astype(matmul_dtype)          # (C, C)
    w2c = jnp.transpose(w2, (2, 3, 1, 0)).reshape(9 * C, C).astype(matmul_dtype)
    w34 = jnp.concatenate([jnp.transpose(w3[:, :, 0, 0], (1, 0)),
                           jnp.transpose(w4[:, :, 0, 0], (1, 0))],
                          axis=0).astype(matmul_dtype)                         # (2C, 2C)
    a1v = jnp.full((1, 1), a1, jnp.float32)
    a2v = jnp.full((1, 1), a2, jnp.float32)

    # VMEM limit derived from actual block/scratch/live bytes (2x safety),
    # clamped to stay inside v7x's 64 MiB physical VMEM.
    fp = 4
    scratch_b = fp * ((H + 2) * (W + 2) * C + H * W * 9 * C + H * W * C)
    block_b = fp * 2 * (H * W * C + Hout * Wout * Cout)        # double-buffered I/O
    weight_b = fp * 2 * (C * C + 9 * C * C + 2 * C * 2 * C)
    live_b = fp * 8 * H * W * C                                 # live value headroom
    vmem_limit = int(min(max(2 * (scratch_b + block_b + weight_b + live_b),
                             8 << 20), 48 << 20))

    grid_spec = pltpu.PrefetchScalarGridSpec(
        num_scalar_prefetch=0,
        grid=(N,),
        in_specs=[
            pl.BlockSpec((None, H, W, C), lambda n: (n, 0, 0, 0)),
            pl.BlockSpec((C, C), lambda n: (0, 0)),
            pl.BlockSpec(memory_space=pltpu.MemorySpace.SMEM),      # a1
            pl.BlockSpec((9 * C, C), lambda n: (0, 0)),
            pl.BlockSpec(memory_space=pltpu.MemorySpace.SMEM),      # a2
            pl.BlockSpec((2 * C, Cout), lambda n: (0, 0)),
        ],
        out_specs=pl.BlockSpec((None, Hout, Wout, Cout), lambda n: (n, 0, 0, 0)),
        scratch_shapes=[
            pltpu.VMEM((H + 2, W + 2, C), jnp.float32),     # 3x3 zero-pad buffer
            pltpu.VMEM((H, W, 9 * C), jnp.float32),         # im2col columns
            pltpu.VMEM((H, W, C), jnp.float32),             # top BlurPool staging
        ],
    )

    out_nhwc = pl.pallas_call(
        _residual_downsample_kernel,
        out_shape=jax.ShapeDtypeStruct((N, Hout, Wout, Cout), jnp.float32),
        grid_spec=grid_spec,
        compiler_params=pltpu.CompilerParams(
            dimension_semantics=("parallel",),              # batch axis -> megacore
            vmem_limit_bytes=vmem_limit,
        ),
    )(x, w1k, a1v, w2c, a2v, w34)

    return jnp.transpose(out_nhwc, (0, 3, 1, 2))            # back to NCHW


# ---------------------------------------------------------------------------
# Deterministic parameter init (module shapes; bias=False; nn.PReLU() = 0.25).
# ---------------------------------------------------------------------------
def init_params(key, C):
    k1, k2, k3, k4 = jax.random.split(key, 4)
    w1 = jax.random.normal(k1, (C, C, 1, 1), jnp.float32) * 0.5       # top 1x1
    w2 = jax.random.normal(k2, (C, C, 3, 3), jnp.float32) * 0.2       # top 3x3
    w3 = jax.random.normal(k3, (2 * C, C, 1, 1), jnp.float32) * 0.5   # top final 1x1
    w4 = jax.random.normal(k4, (2 * C, C, 1, 1), jnp.float32) * 0.5   # bot 1x1
    a1 = jnp.float32(0.25)
    a2 = jnp.float32(0.25)
    return w1, a1, w2, a2, w3, w4


# ---------------------------------------------------------------------------
# Pure-JAX reference (mirrors the PyTorch forward, NCHW) used for validation.
# ---------------------------------------------------------------------------
def _conv_nchw(x, w, stride=1, pad=0, groups=1):
    return jax.lax.conv_general_dilated(
        x, w, window_strides=(stride, stride),
        padding=[(pad, pad), (pad, pad)],
        dimension_numbers=("NCHW", "OIHW", "NCHW"),
        feature_group_count=groups,
        precision=jax.lax.Precision.HIGHEST)


def _blurpool_ref(x):
    C = x.shape[1]
    xp = jnp.pad(x, ((0, 0), (0, 0), (1, 1), (1, 1)), mode="reflect")
    a = jnp.array([1.0, 2.0, 1.0], jnp.float32)
    f = jnp.outer(a, a)
    f = f / jnp.sum(f)
    w = jnp.tile(f[None, None], (C, 1, 1, 1))          # (C, 1, 3, 3)
    return _conv_nchw(xp, w, stride=2, groups=C)


def reference_forward(x, params):
    w1, a1, w2, a2, w3, w4 = params
    t = _conv_nchw(x, w1)
    t = jnp.where(t >= 0, t, a1 * t)
    t = _conv_nchw(t, w2, pad=1)
    t = jnp.where(t >= 0, t, a2 * t)
    top = _conv_nchw(_blurpool_ref(t), w3)
    bot = _conv_nchw(_blurpool_ref(x), w4)
    return top + bot


if __name__ == "__main__":
    N, C, H, W = 2, 4, 16, 16
    key = jax.random.PRNGKey(0)
    kp, kx = jax.random.split(key)
    params = init_params(kp, C)
    x = jax.random.normal(kx, (N, C, H, W), jnp.float32)

    out = jax.block_until_ready(residual_downsample(x, params))
    assert out.shape == (N, 2 * C, H // 2, W // 2), out.shape

    ref = jax.block_until_ready(reference_forward(x, params))
    err = float(jnp.max(jnp.abs(out - ref)))
    # Tolerance covers the MXU f32 matmul path (multi-pass bf16 decomposition)
    # while still being orders of magnitude below any structural-bug error.
    assert err < 1e-2, f"max abs error vs reference: {err}"

    print("KERNEL_OK")
</pallas_src>

<mosaic_0001>
module attributes {stable_mosaic.version = 11 : i64} {
  func.func @_residual_downsample_kernel(%arg0: i32, %arg1: memref<1x16x16x4xf32, #tpu.memory_space<vmem>>, %arg2: memref<4x4xf32, #tpu.memory_space<vmem>>, %arg3: memref<1x1xf32, #tpu.memory_space<smem>>, %arg4: memref<36x4xf32, #tpu.memory_space<vmem>>, %arg5: memref<1x1xf32, #tpu.memory_space<smem>>, %arg6: memref<8x8xf32, #tpu.memory_space<vmem>>, %arg7: memref<1x8x8x8xf32, #tpu.memory_space<vmem>>, %arg8: memref<18x18x4xf32, #tpu.memory_space<vmem>>, %arg9: memref<16x16x36xf32, #tpu.memory_space<vmem>>, %arg10: memref<16x16x4xf32, #tpu.memory_space<vmem>>) attributes {dimension_semantics = [#tpu.dimension_semantics<parallel>], iteration_bounds = array<i64: 2>, scalar_prefetch = 0 : i64, scratch_operands = 3 : i64, tpu.core_type = #tpu.core_type<tc>, window_params = [{transform_indices = @transform_0, window_bounds = array<i64: 1, 16, 16, 4>}, {pipeline_mode = #tpu.pipeline_mode<synchronous>, transform_indices = @transform_1, window_bounds = array<i64: 4, 4>}, {transform_indices = @transform_2, window_bounds = array<i64: 1, 1>}, {pipeline_mode = #tpu.pipeline_mode<synchronous>, transform_indices = @transform_3, window_bounds = array<i64: 36, 4>}, {transform_indices = @transform_4, window_bounds = array<i64: 1, 1>}, {pipeline_mode = #tpu.pipeline_mode<synchronous>, transform_indices = @transform_5, window_bounds = array<i64: 8, 8>}, {transform_indices = @transform_6, window_bounds = array<i64: 1, 8, 8, 8>}]} {
    %c0 = arith.constant 0 : index
    %c0_0 = arith.constant 0 : index
    %0 = memref.load %arg3[%c0, %c0_0] : memref<1x1xf32, #tpu.memory_space<smem>>
    %c0_1 = arith.constant 0 : index
    %c0_2 = arith.constant 0 : index
    %1 = memref.load %arg5[%c0_1, %c0_2] : memref<1x1xf32, #tpu.memory_space<smem>>
    %c0_3 = arith.constant 0 : index
    %c0_4 = arith.constant 0 : index
    %c0_5 = arith.constant 0 : index
    %c0_6 = arith.constant 0 : index
    %2 = tpu.strided_load %arg1[%c0_3, %c0_4, %c0_5, %c0_6] {strides = array<i32: 1, 1, 2, 1>} : memref<1x16x16x4xf32, #tpu.memory_space<vmem>>, vector<1x16x8x4xf32>
    %3 = vector.shape_cast %2 : vector<1x16x8x4xf32> to vector<16x8x4xf32>
    %c0_7 = arith.constant 0 : index
    %c0_8 = arith.constant 0 : index
    %c1 = arith.constant 1 : index
    %c0_9 = arith.constant 0 : index
    %4 = tpu.strided_load %arg1[%c0_7, %c0_8, %c1, %c0_9] {strides = array<i32: 1, 1, 2, 1>} : memref<1x16x16x4xf32, #tpu.memory_space<vmem>>, vector<1x16x8x4xf32>
    %5 = vector.shape_cast %4 : vector<1x16x8x4xf32> to vector<16x8x4xf32>
    %c1_i32 = arith.constant 1 : i32
    %6 = tpu.dynamic_rotate %5 by %c1_i32 dim 1 : vector<16x8x4xf32>, i32 -> vector<16x8x4xf32>
    %7 = tpu.iota {dimensions = array<i32: 1>} : vector<16x8x4xi32>
    %c0_i32 = arith.constant 0 : i32
    %8 = vector.broadcast %c0_i32 : i32 to vector<16x8x4xi32>
    %9 = arith.cmpi eq, %7, %8 : vector<16x8x4xi32>
    %10 = arith.select %9, %5, %6 : vector<16x8x4xi1>, vector<16x8x4xf32>
    %cst = arith.constant 2.000000e+00 : f32
    %11 = vector.broadcast %cst : f32 to vector<16x8x4xf32>
    %12 = arith.mulf %11, %3 : vector<16x8x4xf32>
    %13 = arith.addf %10, %12 : vector<16x8x4xf32>
    %14 = arith.addf %13, %5 : vector<16x8x4xf32>
    %cst_10 = arith.constant 2.500000e-01 : f32
    %15 = vector.broadcast %cst_10 : f32 to vector<16x8x4xf32>
    %16 = arith.mulf %15, %14 : vector<16x8x4xf32>
    %17 = vector.shape_cast %16 : vector<16x8x4xf32> to vector<8x2x8x4xf32>
    %18 = vector.extract_strided_slice %17 {offsets = [0, 0, 0, 0], sizes = [8, 1, 8, 4], strides = [1, 1, 1, 1]} : vector<8x2x8x4xf32> to vector<8x1x8x4xf32>
    %19 = vector.shape_cast %18 : vector<8x1x8x4xf32> to vector<8x8x4xf32>
    %20 = vector.extract_strided_slice %17 {offsets = [0, 1, 0, 0], sizes = [8, 1, 8, 4], strides = [1, 1, 1, 1]} : vector<8x2x8x4xf32> to vector<8x1x8x4xf32>
    %21 = vector.shape_cast %20 : vector<8x1x8x4xf32> to vector<8x8x4xf32>
    %22 = vector.extract_strided_slice %21 {offsets = [0, 0, 0], sizes = [1, 8, 4], strides = [1, 1, 1]} : vector<8x8x4xf32> to vector<1x8x4xf32>
    %23 = vector.extract_strided_slice %21 {offsets = [0, 0, 0], sizes = [7, 8, 4], strides = [1, 1, 1]} : vector<8x8x4xf32> to vector<7x8x4xf32>
    %24 = tpu.concatenate %22, %23 in 0 : vector<1x8x4xf32>, vector<7x8x4xf32> -> vector<8x8x4xf32>
    %cst_11 = arith.constant 2.000000e+00 : f32
    %25 = vector.broadcast %cst_11 : f32 to vector<8x8x4xf32>
    %26 = arith.mulf %25, %19 : vector<8x8x4xf32>
    %27 = arith.addf %24, %26 : vector<8x8x4xf32>
    %28 = arith.addf %27, %21 : vector<8x8x4xf32>
    %cst_12 = arith.constant 2.500000e-01 : f32
    %29 = vector.broadcast %cst_12 : f32 to vector<8x8x4xf32>
    %30 = arith.mulf %29, %28 : vector<8x8x4xf32>
    %c0_13 = arith.constant 0 : index
    %c0_14 = arith.constant 0 : index
    %c0_15 = arith.constant 0 : index
    %c0_16 = arith.constant 0 : index
    %31 = vector.load %arg1[%c0_13, %c0_14, %c0_15, %c0_16] : memref<1x16x16x4xf32, #tpu.memory_space<vmem>>, vector<1x16x16x4xf32>
    %32 = vector.shape_cast %31 : vector<1x16x16x4xf32> to vector<16x16x4xf32>
    %c0_17 = arith.constant 0 : index
    %c0_18 = arith.constant 0 : index
    %33 = vector.load %arg2[%c0_17, %c0_18] : memref<4x4xf32, #tpu.memory_space<vmem>>, vector<4x4xf32>
    %34 = vector.extract_strided_slice %32 {offsets = [0, 0, 0], sizes = [16, 16, 1], strides = [1, 1, 1]} : vector<16x16x4xf32> to vector<16x16x1xf32>
    %35 = vector.extract_strided_slice %33 {offsets = [0, 0], sizes = [1, 4], strides = [1, 1]} : vector<4x4xf32> to vector<1x4xf32>
    %36 = vector.shape_cast %35 : vector<1x4xf32> to vector<1x1x4xf32>
    %37 = vector.broadcast %34 : vector<16x16x1xf32> to vector<16x16x4xf32>
    %38 = vector.broadcast %36 : vector<1x1x4xf32> to vector<16x16x4xf32>
    %39 = arith.mulf %37, %38 : vector<16x16x4xf32>
    %40 = vector.extract_strided_slice %32 {offsets = [0, 0, 1], sizes = [16, 16, 1], strides = [1, 1, 1]} : vector<16x16x4xf32> to vector<16x16x1xf32>
    %41 = vector.extract_strided_slice %33 {offsets = [1, 0], sizes = [1, 4], strides = [1, 1]} : vector<4x4xf32> to vector<1x4xf32>
    %42 = vector.shape_cast %41 : vector<1x4xf32> to vector<1x1x4xf32>
    %43 = vector.broadcast %40 : vector<16x16x1xf32> to vector<16x16x4xf32>
    %44 = vector.broadcast %42 : vector<1x1x4xf32> to vector<16x16x4xf32>
    %45 = arith.mulf %43, %44 : vector<16x16x4xf32>
    %46 = arith.addf %39, %45 : vector<16x16x4xf32>
    %47 = vector.extract_strided_slice %32 {offsets = [0, 0, 2], sizes = [16, 16, 1], strides = [1, 1, 1]} : vector<16x16x4xf32> to vector<16x16x1xf32>
    %48 = vector.extract_strided_slice %33 {offsets = [2, 0], sizes = [1, 4], strides = [1, 1]} : vector<4x4xf32> to vector<1x4xf32>
    %49 = vector.shape_cast %48 : vector<1x4xf32> to vector<1x1x4xf32>
    %50 = vector.broadcast %47 : vector<16x16x1xf32> to vector<16x16x4xf32>
    %51 = vector.broadcast %49 : vector<1x1x4xf32> to vector<16x16x4xf32>
    %52 = arith.mulf %50, %51 : vector<16x16x4xf32>
    %53 = arith.addf %46, %52 : vector<16x16x4xf32>
    %54 = vector.extract_strided_slice %32 {offsets = [0, 0, 3], sizes = [16, 16, 1], strides = [1, 1, 1]} : vector<16x16x4xf32> to vector<16x16x1xf32>
    %55 = vector.extract_strided_slice %33 {offsets = [3, 0], sizes = [1, 4], strides = [1, 1]} : vector<4x4xf32> to vector<1x4xf32>
    %56 = vector.shape_cast %55 : vector<1x4xf32> to vector<1x1x4xf32>
    %57 = vector.broadcast %54 : vector<16x16x1xf32> to vector<16x16x4xf32>
    %58 = vector.broadcast %56 : vector<1x1x4xf32> to vector<16x16x4xf32>
    %59 = arith.mulf %57, %58 : vector<16x16x4xf32>
    %60 = arith.addf %53, %59 : vector<16x16x4xf32>
    %cst_19 = arith.constant 0.000000e+00 : f32
    %61 = vector.broadcast %cst_19 : f32 to vector<16x16x4xf32>
    %62 = arith.cmpf oge, %60, %61 : vector<16x16x4xf32>
    %63 = vector.broadcast %0 : f32 to vector<16x16x4xf32>
    %64 = arith.mulf %63, %60 : vector<16x16x4xf32>
    %65 = arith.select %62, %60, %64 : vector<16x16x4xi1>, vector<16x16x4xf32>
    %cst_20 = arith.constant 0.000000e+00 : f32
    %66 = vector.broadcast %cst_20 : f32 to vector<18x18x4xf32>
    %c0_21 = arith.constant 0 : index
    %c0_22 = arith.constant 0 : index
    %c0_23 = arith.constant 0 : index
    %67 = vector.load %arg8[%c0_21, %c0_22, %c0_23] : memref<18x18x4xf32, #tpu.memory_space<vmem>>, vector<18x18x4xf32>
    tpu.vector_store %arg8[%c0_21, %c0_22, %c0_23], %66 {strides = array<i32>} : memref<18x18x4xf32, #tpu.memory_space<vmem>>, vector<18x18x4xf32>,
    %c1_24 = arith.constant 1 : index
    %c1_25 = arith.constant 1 : index
    %c0_26 = arith.constant 0 : index
    %68 = vector.load %arg8[%c1_24, %c1_25, %c0_26] : memref<18x18x4xf32, #tpu.memory_space<vmem>>, vector<16x16x4xf32>
    tpu.vector_store %arg8[%c1_24, %c1_25, %c0_26], %65 {strides = array<i32>} : memref<18x18x4xf32, #tpu.memory_space<vmem>>, vector<16x16x4xf32>,
    %c0_27 = arith.constant 0 : index
    %c0_28 = arith.constant 0 : index
    %c0_29 = arith.constant 0 : index
    %69 = vector.load %arg8[%c0_27, %c0_28, %c0_29] : memref<18x18x4xf32, #tpu.memory_space<vmem>>, vector<16x16x4xf32>
    %c0_30 = arith.constant 0 : index
    %c0_31 = arith.constant 0 : index
    %c0_32 = arith.constant 0 : index
    %70 = vector.load %arg9[%c0_30, %c0_31, %c0_32] : memref<16x16x36xf32, #tpu.memory_space<vmem>>, vector<16x16x4xf32>
    tpu.vector_store %arg9[%c0_30, %c0_31, %c0_32], %69 {strides = array<i32>} : memref<16x16x36xf32, #tpu.memory_space<vmem>>, vector<16x16x4xf32>,
    %c0_33 = arith.constant 0 : index
    %c1_34 = arith.constant 1 : index
    %c0_35 = arith.constant 0 : index
    %71 = vector.load %arg8[%c0_33, %c1_34, %c0_35] : memref<18x18x4xf32, #tpu.memory_space<vmem>>, vector<16x16x4xf32>
    %c0_36 = arith.constant 0 : index
    %c0_37 = arith.constant 0 : index
    %c4 = arith.constant 4 : index
    %72 = vector.load %arg9[%c0_36, %c0_37, %c4] : memref<16x16x36xf32, #tpu.memory_space<vmem>>, vector<16x16x4xf32>
    tpu.vector_store %arg9[%c0_36, %c0_37, %c4], %71 {strides = array<i32>} : memref<16x16x36xf32, #tpu.memory_space<vmem>>, vector<16x16x4xf32>,
    %c0_38 = arith.constant 0 : index
    %c2 = arith.constant 2 : index
    %c0_39 = arith.constant 0 : index
    %73 = vector.load %arg8[%c0_38, %c2, %c0_39] : memref<18x18x4xf32, #tpu.memory_space<vmem>>, vector<16x16x4xf32>
    %c0_40 = arith.constant 0 : index
    %c0_41 = arith.constant 0 : index
    %c8 = arith.constant 8 : index
    %74 = vector.load %arg9[%c0_40, %c0_41, %c8] : memref<16x16x36xf32, #tpu.memory_space<vmem>>, vector<16x16x4xf32>
    tpu.vector_store %arg9[%c0_40, %c0_41, %c8], %73 {strides = array<i32>} : memref<16x16x36xf32, #tpu.memory_space<vmem>>, vector<16x16x4xf32>,
    %c1_42 = arith.constant 1 : index
    %c0_43 = arith.constant 0 : index
    %c0_44 = arith.constant 0 : index
    %75 = vector.load %arg8[%c1_42, %c0_43, %c0_44] : memref<18x18x4xf32, #tpu.memory_space<vmem>>, vector<16x16x4xf32>
    %c0_45 = arith.constant 0 : index
    %c0_46 = arith.constant 0 : index
    %c12 = arith.constant 12 : index
    %76 = vector.load %arg9[%c0_45, %c0_46, %c12] : memref<16x16x36xf32, #tpu.memory_space<vmem>>, vector<16x16x4xf32>
    tpu.vector_store %arg9[%c0_45, %c0_46, %c12], %75 {strides = array<i32>} : memref<16x16x36xf32, #tpu.memory_space<vmem>>, vector<16x16x4xf32>,
    %c1_47 = arith.constant 1 : index
    %c1_48 = arith.constant 1 : index
    %c0_49 = arith.constant 0 : index
    %77 = vector.load %arg8[%c1_47, %c1_48, %c0_49] : memref<18x18x4xf32, #tpu.memory_space<vmem>>, vector<16x16x4xf32>
    %c0_50 = arith.constant 0 : index
    %c0_51 = arith.constant 0 : index
    %c16 = arith.constant 16 : index
    %78 = vector.load %arg9[%c0_50, %c0_51, %c16] : memref<16x16x36xf32, #tpu.memory_space<vmem>>, vector<16x16x4xf32>
    tpu.vector_store %arg9[%c0_50, %c0_51, %c16], %77 {strides = array<i32>} : memref<16x16x36xf32, #tpu.memory_space<vmem>>, vector<16x16x4xf32>,
    %c1_52 = arith.constant 1 : index
    %c2_53 = arith.constant 2 : index
    %c0_54 = arith.constant 0 : index
    %79 = vector.load %arg8[%c1_52, %c2_53, %c0_54] : memref<18x18x4xf32, #tpu.memory_space<vmem>>, vector<16x16x4xf32>
    %c0_55 = arith.constant 0 : index
    %c0_56 = arith.constant 0 : index
    %c20 = arith.constant 20 : index
    %80 = vector.load %arg9[%c0_55, %c0_56, %c20] : memref<16x16x36xf32, #tpu.memory_space<vmem>>, vector<16x16x4xf32>
    tpu.vector_store %arg9[%c0_55, %c0_56, %c20], %79 {strides = array<i32>} : memref<16x16x36xf32, #tpu.memory_space<vmem>>, vector<16x16x4xf32>,
    %c2_57 = arith.constant 2 : index
    %c0_58 = arith.constant 0 : index
    %c0_59 = arith.constant 0 : index
    %81 = vector.load %arg8[%c2_57, %c0_58, %c0_59] : memref<18x18x4xf32, #tpu.memory_space<vmem>>, vector<16x16x4xf32>
    %c0_60 = arith.constant 0 : index
    %c0_61 = arith.constant 0 : index
    %c24 = arith.constant 24 : index
    %82 = vector.load %arg9[%c0_60, %c0_61, %c24] : memref<16x16x36xf32, #tpu.memory_space<vmem>>, vector<16x16x4xf32>
    tpu.vector_store %arg9[%c0_60, %c0_61, %c24], %81 {strides = array<i32>} : memref<16x16x36xf32, #tpu.memory_space<vmem>>, vector<16x16x4xf32>,
    %c2_62 = arith.constant 2 : index
    %c1_63 = arith.constant 1 : index
    %c0_64 = arith.constant 0 : index
    %83 = vector.load %arg8[%c2_62, %c1_63, %c0_64] : memref<18x18x4xf32, #tpu.memory_space<vmem>>, vector<16x16x4xf32>
    %c0_65 = arith.constant 0 : index
    %c0_66 = arith.constant 0 : index
    %c28 = arith.constant 28 : index
    %84 = vector.load %arg9[%c0_65, %c0_66, %c28] : memref<16x16x36xf32, #tpu.memory_space<vmem>>, vector<16x16x4xf32>
    tpu.vector_store %arg9[%c0_65, %c0_66, %c28], %83 {strides = array<i32>} : memref<16x16x36xf32, #tpu.memory_space<vmem>>, vector<16x16x4xf32>,
    %c2_67 = arith.constant 2 : index
    %c2_68 = arith.constant 2 : index
    %c0_69 = arith.constant 0 : index
    %85 = vector.load %arg8[%c2_67, %c2_68, %c0_69] : memref<18x18x4xf32, #tpu.memory_space<vmem>>, vector<16x16x4xf32>
    %c0_70 = arith.constant 0 : index
    %c0_71 = arith.constant 0 : index
    %c32 = arith.constant 32 : index
    %86 = vector.load %arg9[%c0_70, %c0_71, %c32] : memref<16x16x36xf32, #tpu.memory_space<vmem>>, vector<16x16x4xf32>
    tpu.vector_store %arg9[%c0_70, %c0_71, %c32], %85 {strides = array<i32>} : memref<16x16x36xf32, #tpu.memory_space<vmem>>, vector<16x16x4xf32>,
    %c0_72 = arith.constant 0 : index
    %c0_73 = arith.constant 0 : index
    %c0_74 = arith.constant 0 : index
    %87 = vector.load %arg9[%c0_72, %c0_73, %c0_74] : memref<16x16x36xf32, #tpu.memory_space<vmem>>, vector<16x16x36xf32>
    %c0_75 = arith.constant 0 : index
    %c0_76 = arith.constant 0 : index
    %88 = vector.load %arg4[%c0_75, %c0_76] : memref<36x4xf32, #tpu.memory_space<vmem>>, vector<36x4xf32>
    %89 = vector.shape_cast %87 : vector<16x16x36xf32> to vector<256x36xf32>
    %cst_77 = arith.constant dense<0.000000e+00> : vector<256x4xf32>
    %90 = tpu.matmul %89, %88, %cst_77 {dimension_numbers = #tpu.dot_dimension_numbers<[1], [0], [0], [1], [0, 0, 1, 1], [], []>} : vector<256x36xf32>, vector<36x4xf32>, vector<256x4xf32> -> vector<256x4xf32>
    %91 = vector.shape_cast %90 : vector<256x4xf32> to vector<16x16x4xf32>
    %cst_78 = arith.constant 0.000000e+00 : f32
    %92 = vector.broadcast %cst_78 : f32 to vector<16x16x4xf32>
    %93 = arith.cmpf oge, %91, %92 : vector<16x16x4xf32>
    %94 = vector.broadcast %1 : f32 to vector<16x16x4xf32>
    %95 = arith.mulf %94, %91 : vector<16x16x4xf32>
    %96 = arith.select %93, %91, %95 : vector<16x16x4xi1>, vector<16x16x4xf32>
    %c0_79 = arith.constant 0 : index
    %c0_80 = arith.constant 0 : index
    %c0_81 = arith.constant 0 : index
    %97 = vector.load %arg10[%c0_79, %c0_80, %c0_81] : memref<16x16x4xf32, #tpu.memory_space<vmem>>, vector<16x16x4xf32>
    tpu.vector_store %arg10[%c0_79, %c0_80, %c0_81], %96 {strides = array<i32>} : memref<16x16x4xf32, #tpu.memory_space<vmem>>, vector<16x16x4xf32>,
    %c0_82 = arith.constant 0 : index
    %c0_83 = arith.constant 0 : index
    %c0_84 = arith.constant 0 : index
    %98 = tpu.strided_load %arg10[%c0_82, %c0_83, %c0_84] {strides = array<i32: 1, 2, 1>} : memref<16x16x4xf32, #tpu.memory_space<vmem>>, vector<16x8x4xf32>
    %c0_85 = arith.constant 0 : index
    %c1_86 = arith.constant 1 : index
    %c0_87 = arith.constant 0 : index
    %99 = tpu.strided_load %arg10[%c0_85, %c1_86, %c0_87] {strides = array<i32: 1, 2, 1>} : memref<16x16x4xf32, #tpu.memory_space<vmem>>, vector<16x8x4xf32>
    %c1_i32_88 = arith.constant 1 : i32
    %100 = tpu.dynamic_rotate %99 by %c1_i32_88 dim 1 : vector<16x8x4xf32>, i32 -> vector<16x8x4xf32>
    %101 = tpu.iota {dimensions = array<i32: 1>} : vector<16x8x4xi32>
    %c0_i32_89 = arith.constant 0 : i32
    %102 = vector.broadcast %c0_i32_89 : i32 to vector<16x8x4xi32>
    %103 = arith.cmpi eq, %101, %102 : vector<16x8x4xi32>
    %104 = arith.select %103, %99, %100 : vector<16x8x4xi1>, vector<16x8x4xf32>
    %cst_90 = arith.constant 2.000000e+00 : f32
    %105 = vector.broadcast %cst_90 : f32 to vector<16x8x4xf32>
    %106 = arith.mulf %105, %98 : vector<16x8x4xf32>
    %107 = arith.addf %104, %106 : vector<16x8x4xf32>
    %108 = arith.addf %107, %99 : vector<16x8x4xf32>
    %cst_91 = arith.constant 2.500000e-01 : f32
    %109 = vector.broadcast %cst_91 : f32 to vector<16x8x4xf32>
    %110 = arith.mulf %109, %108 : vector<16x8x4xf32>
    %111 = vector.shape_cast %110 : vector<16x8x4xf32> to vector<8x2x8x4xf32>
    %112 = vector.extract_strided_slice %111 {offsets = [0, 0, 0, 0], sizes = [8, 1, 8, 4], strides = [1, 1, 1, 1]} : vector<8x2x8x4xf32> to vector<8x1x8x4xf32>
    %113 = vector.shape_cast %112 : vector<8x1x8x4xf32> to vector<8x8x4xf32>
    %114 = vector.extract_strided_slice %111 {offsets = [0, 1, 0, 0], sizes = [8, 1, 8, 4], strides = [1, 1, 1, 1]} : vector<8x2x8x4xf32> to vector<8x1x8x4xf32>
    %115 = vector.shape_cast %114 : vector<8x1x8x4xf32> to vector<8x8x4xf32>
    %116 = vector.extract_strided_slice %115 {offsets = [0, 0, 0], sizes = [1, 8, 4], strides = [1, 1, 1]} : vector<8x8x4xf32> to vector<1x8x4xf32>
    %117 = vector.extract_strided_slice %115 {offsets = [0, 0, 0], sizes = [7, 8, 4], strides = [1, 1, 1]} : vector<8x8x4xf32> to vector<7x8x4xf32>
    %118 = tpu.concatenate %116, %117 in 0 : vector<1x8x4xf32>, vector<7x8x4xf32> -> vector<8x8x4xf32>
    %cst_92 = arith.constant 2.000000e+00 : f32
    %119 = vector.broadcast %cst_92 : f32 to vector<8x8x4xf32>
    %120 = arith.mulf %119, %113 : vector<8x8x4xf32>
    %121 = arith.addf %118, %120 : vector<8x8x4xf32>
    %122 = arith.addf %121, %115 : vector<8x8x4xf32>
    %cst_93 = arith.constant 2.500000e-01 : f32
    %123 = vector.broadcast %cst_93 : f32 to vector<8x8x4xf32>
    %124 = arith.mulf %123, %122 : vector<8x8x4xf32>
    %c0_94 = arith.constant 0 : index
    %c0_95 = arith.constant 0 : index
    %c0_96 = arith.constant 0 : index
    %125 = vector.load %arg9[%c0_94, %c0_95, %c0_96] : memref<16x16x36xf32, #tpu.memory_space<vmem>>, vector<8x8x4xf32>
    tpu.vector_store %arg9[%c0_94, %c0_95, %c0_96], %124 {strides = array<i32>} : memref<16x16x36xf32, #tpu.memory_space<vmem>>, vector<8x8x4xf32>,
    %c0_97 = arith.constant 0 : index
    %c0_98 = arith.constant 0 : index
    %c4_99 = arith.constant 4 : index
    %126 = vector.load %arg9[%c0_97, %c0_98, %c4_99] : memref<16x16x36xf32, #tpu.memory_space<vmem>>, vector<8x8x4xf32>
    tpu.vector_store %arg9[%c0_97, %c0_98, %c4_99], %30 {strides = array<i32>} : memref<16x16x36xf32, #tpu.memory_space<vmem>>, vector<8x8x4xf32>,
    %c0_100 = arith.constant 0 : index
    %c0_101 = arith.constant 0 : index
    %c0_102 = arith.constant 0 : index
    %127 = vector.load %arg9[%c0_100, %c0_101, %c0_102] : memref<16x16x36xf32, #tpu.memory_space<vmem>>, vector<8x8x8xf32>
    %c0_103 = arith.constant 0 : index
    %c0_104 = arith.constant 0 : index
    %128 = vector.load %arg6[%c0_103, %c0_104] : memref<8x8xf32, #tpu.memory_space<vmem>>, vector<8x8xf32>
    %129 = vector.shape_cast %127 : vector<8x8x8xf32> to vector<64x8xf32>
    %cst_105 = arith.constant dense<0.000000e+00> : vector<64x8xf32>
    %130 = tpu.matmul %129, %128, %cst_105 {dimension_numbers = #tpu.dot_dimension_numbers<[1], [0], [0], [1], [0, 0, 1, 1], [], []>} : vector<64x8xf32>, vector<8x8xf32>, vector<64x8xf32> -> vector<64x8xf32>
    %131 = vector.shape_cast %130 : vector<64x8xf32> to vector<8x8x8xf32>
    %c0_106 = arith.constant 0 : index
    %c0_107 = arith.constant 0 : index
    %c0_108 = arith.constant 0 : index
    %c0_109 = arith.constant 0 : index
    %132 = vector.load %arg7[%c0_106, %c0_107, %c0_108, %c0_109] : memref<1x8x8x8xf32, #tpu.memory_space<vmem>>, vector<1x8x8x8xf32>
    %133 = vector.shape_cast %132 : vector<1x8x8x8xf32> to vector<8x8x8xf32>
    %134 = vector.shape_cast %131 : vector<8x8x8xf32> to vector<1x8x8x8xf32>
    tpu.vector_store %arg7[%c0_106, %c0_107, %c0_108, %c0_109], %134 {strides = array<i32>} : memref<1x8x8x8xf32, #tpu.memory_space<vmem>>, vector<1x8x8x8xf32>,
    return
  }
  func.func @transform_0(%arg0: i32) -> (i32, i32, i32, i32) {
    %c0_i32 = arith.constant 0 : i32
    %c0_i32_0 = arith.constant 0 : i32
    %c0_i32_1 = arith.constant 0 : i32
    %c0_i32_2 = arith.constant 0 : i32
    return %arg0, %c0_i32, %c0_i32_0, %c0_i32_1 : i32, i32, i32, i32
  }
  func.func @transform_1(%arg0: i32) -> (i32, i32) {
    %c0_i32 = arith.constant 0 : i32
    %c0_i32_0 = arith.constant 0 : i32
    %c0_i32_1 = arith.constant 0 : i32
    return %c0_i32, %c0_i32_0 : i32, i32
  }
  func.func @transform_2(%arg0: i32) -> (i32, i32) {
    %c0_i32 = arith.constant 0 : i32
    %c0_i32_0 = arith.constant 0 : i32
    %c0_i32_1 = arith.constant 0 : i32
    return %c0_i32, %c0_i32_0 : i32, i32
  }
  func.func @transform_3(%arg0: i32) -> (i32, i32) {
    %c0_i32 = arith.constant 0 : i32
    %c0_i32_0 = arith.constant 0 : i32
    %c0_i32_1 = arith.constant 0 : i32
    return %c0_i32, %c0_i32_0 : i32, i32
  }
  func.func @transform_4(%arg0: i32) -> (i32, i32) {
    %c0_i32 = arith.constant 0 : i32
    %c0_i32_0 = arith.constant 0 : i32
    %c0_i32_1 = arith.constant 0 : i32
    return %c0_i32, %c0_i32_0 : i32, i32
  }
  func.func @transform_5(%arg0: i32) -> (i32, i32) {
    %c0_i32 = arith.constant 0 : i32
    %c0_i32_0 = arith.constant 0 : i32
    %c0_i32_1 = arith.constant 0 : i32
    return %c0_i32, %c0_i32_0 : i32, i32
  }
  func.func @transform_6(%arg0: i32) -> (i32, i32, i32, i32) {
    %c0_i32 = arith.constant 0 : i32
    %c0_i32_0 = arith.constant 0 : i32
    %c0_i32_1 = arith.constant 0 : i32
    %c0_i32_2 = arith.constant 0 : i32
    return %arg0, %c0_i32, %c0_i32_0, %c0_i32_1 : i32, i32, i32, i32
  }
}

</mosaic_0001>

<bundles_post_ra>
// kernel: tpu_custom_call.1
= control target key start
LH: loop header
LB: loop body
LE: loop exit
PB: predicated region body
PF: predicated region fallthrough
CT: control target
= control target key end

     0   :  { %s6475_s0 = inlined_call_operand.vmem [shape: f32[2,16,16,4], index: 0, kind: input, shape index: {}]   ;;  %s6476_s1 = inlined_call_operand.vmem [shape: f32[4,4], index: 1, kind: input, shape index: {}]   ;;  %s6477_s2 = inlined_call_operand.<no memory space> [shape: f32[1,1], index: 2, kind: input, shape index: {}]   ;;  %s6478_s3 = inlined_call_operand.vmem [shape: f32[36,4], index: 3, kind: input, shape index: {}]   ;;  %s6479_s4 = inlined_call_operand.<no memory space> [shape: f32[1,1], index: 4, kind: input, shape index: {}]   ;;  %s6480_s5 = inlined_call_operand.vmem [shape: f32[8,8], index: 5, kind: input, shape index: {}]   ;;  %s6481_s6 = inlined_call_operand.hbm [shape: f32[2,8,8,8], index: 6, kind: output, shape index: {}]  }
   0x1   :  { %11 = sst [smem:[#allocation5]] %s6477_s2 }
   0x2   :  { %12 = sst [smem:[#allocation6]] %s6479_s4 }
   0x3   :  { %13 = vsyncpa [#allocation8], 0 }
   0x4   :  { %15 = vsyncpa [#allocation8 + $0x1], 0  ;;  %s4413_s25 = smov 0   ;;  %s4415_s26 = smov 0  }
   0x5   :  { %s4417_s27 = smov 0   ;;  %s4419_s28 = smov 0  }
   0x6 LB: > { %s4434_s2 = sadd.s32 4294967295, %s4355_s28   ;;  %s4014_s4 = sadd.s32 4294967294, %s4355_s28   ;;  %s4355_s28 = sphi %s4419_s28, %s6583_s28   ;;  %s4351_s27 = sphi %s4417_s27, %s6582_s27   ;;  %s4347_s26 = sphi %s4415_s26, %s6581_s26   ;;  %s4343_s25 = sphi %s4413_s25, %s6580_s25  }
   0x7   : > { %s4438_s29 = sadd.s32 1, %s4355_s28   ;;  %s159_s30 = sadd.s32 1, %s4351_s27 }
   0x8   : > { %s156_s7 = ssub.s32 %s4355_s28, %s4438_s29  ;;  %p169_p0 = scmp.ne.s32.totalorder %s4351_s27, %s4347_s26 }
   0x9   : > { %p157_p1 = scmp.eq.s32.totalorder %s156_s7, 0  ;;  %p170_p2 = scmp.eq.s32.totalorder %s4434_s2, 1 }
   0xa   : > { %p175_p3 = scmp.ne.s32.totalorder %s4347_s26, %s4343_s25  ;;  %p176_p4 = scmp.eq.s32.totalorder %s4014_s4, 1 }
   0xb   : > { %s4449_s8 = scalar_select %p157_p1, %s4351_s27, %s159_s30  }
   0xc   : > { %p4451_p5 = por %p170_p2, %p169_p0  ;;  %p4455_p6 = por %p176_p4, %p175_p3 }
   0xd   : > { %p4017_p7 = scmp.ge.s32.totalorder %s4355_s28, 1  ;;  %p217_p8 = scmp.lt.s32.totalorder %s4355_s28, 3 }
   0xf   : > { %p218_p9 = pnand %p4017_p7, %p217_p8 }
  0x11   : > { %221 = sbr.rel (%p218_p9) target bundleno = 1470 (0x5be), region = 44 }
  0x18   : > { %p247_p10 = scmp.lt.s32.totalorder %s4434_s2, 1  ;;  %v4357_v0 = vmov 0   ;;  %v4358_v33 = vmov 1   ;;  %v4359_v36 = vmov 2   ;;  %vm1362_vm0 = vcmask 31744   ;;  %s4362_s18 = smov 4  }
  0x19   : > { %4286 = vset.pattern.permute.xlu1 %v4357_v0  ;;  %4285 = vset.pattern.permute.xlu0 %v4357_v0  ;;  %vm1365_vm1 = vcmask 25600   ;;  %s4363_s19 = smov 8   ;;  %s5025_s20 = sld [smem:[#allocation5]] }
  0x1a   : > { %s248_s11 = scalar_select %p247_p10, %s4434_s2, 1 }
  0x1b   : > { %s4364_s21 = smov 12   ;;  %s4365_s22 = smov 16  }
  0x1c   : > { %s4098_s12 = sshll.u32 %s248_s11, 8  ;;  %s4366_s23 = smov 20  }
  0x1d   : > { %s4466_s15 = scalar_lea.vmem %s6475_s0, %s4098_s12  ;;  %s4367_s24 = smov 24  }
  0x1e   : > { %v4469_v1 = vld [vmem:[%s4466_s15 + $0x10] sm:$0xff]  ;;  %v4472_v2 = vld [vmem:[%s4466_s15] sm:$0xff]  ;;  %v4477_v3 = vld [vmem:[%s4466_s15 + $0x18] sm:$0xff]  ;;  %s4368_s4 = smov 28   ;;  %s253_s11 = sld [smem:[#allocation6]] }
  0x1f   : > { %493 = vperm.xlu1 %4286, %v4469_v1   ;;  %483 = vperm.xlu0 %4285, %v4472_v2   ;;  %v4480_v4 = vld [vmem:[%s4466_s15 + $0x8] sm:$0xff]  ;;  %v4488_v6 = vld [vmem:[%s4466_s15 + $0x20] sm:$0xff]  ;;  %v4493_v7 = vld [vmem:[%s4466_s15 + $0x38] sm:$0xff]  ;;  %s4370_s17 = smov [#allocation7]  }
  0x20   : > { %v4485_v5 = vld [vmem:[%s4466_s15 + $0x28] sm:$0xff]  ;;  %v4496_v8 = vld [vmem:[%s4466_s15 + $0x30] sm:$0xff]  ;;  %v4504_v10 = vld [vmem:[%s4466_s15 + $0x40] sm:$0xff] }
  0x21   : > { %v4501_v9 = vld [vmem:[%s4466_s15 + $0x48] sm:$0xff]  ;;  %v4509_v11 = vld [vmem:[%s4466_s15 + $0x58] sm:$0xff]  ;;  %v4512_v12 = vld [vmem:[%s4466_s15 + $0x50] sm:$0xff] }
  0x22   : > { %v4517_v13 = vld [vmem:[%s4466_s15 + $0x68] sm:$0xff]  ;;  %v4520_v14 = vld [vmem:[%s4466_s15 + $0x60] sm:$0xff]  ;;  %v4525_v15 = vld [vmem:[%s4466_s15 + $0x78] sm:$0xff] }
  0x23   : > { %498 = vperm.xlu1 %4286, %v4477_v3   ;;  %488 = vperm.xlu0 %4285, %v4480_v4   ;;  %v4528_v16 = vld [vmem:[%s4466_s15 + $0x70] sm:$0xff]  ;;  %v4533_v17 = vld [vmem:[%s4466_s15 + $0x88] sm:$0xff]  ;;  %v4536_v18 = vld [vmem:[%s4466_s15 + $0x80] sm:$0xff] }
  0x24   : > { %v4541_v19 = vld [vmem:[%s4466_s15 + $0x98] sm:$0xff]  ;;  %v4544_v20 = vld [vmem:[%s4466_s15 + $0x90] sm:$0xff]  ;;  %v4549_v21 = vld [vmem:[%s4466_s15 + $0xa8] sm:$0xff] }
  0x25   : > { %v4552_v22 = vld [vmem:[%s4466_s15 + $0xa0] sm:$0xff]  ;;  %v4557_v23 = vld [vmem:[%s4466_s15 + $0xb8] sm:$0xff]  ;;  %v4560_v24 = vld [vmem:[%s4466_s15 + $0xb0] sm:$0xff] }
  0x26   : > { %v4565_v25 = vld [vmem:[%s4466_s15 + $0xc8] sm:$0xff]  ;;  %v4568_v26 = vld [vmem:[%s4466_s15 + $0xc0] sm:$0xff]  ;;  %v4573_v27 = vld [vmem:[%s4466_s15 + $0xd8] sm:$0xff] }
  0x27   : > { %508 = vperm.xlu1 %4286, %v4485_v5   ;;  %503 = vperm.xlu0 %4285, %v4488_v6   ;;  %v4576_v28 = vld [vmem:[%s4466_s15 + $0xd0] sm:$0xff]  ;;  %v4581_v29 = vld [vmem:[%s4466_s15 + $0xe8] sm:$0xff]  ;;  %v4584_v30 = vld [vmem:[%s4466_s15 + $0xe0] sm:$0xff] }
  0x28   : > { %v4589_v31 = vld [vmem:[%s4466_s15 + $0xf8] sm:$0xff]  ;;  %v4592_v32 = vld [vmem:[%s4466_s15 + $0xf0] sm:$0xff] }
  0x2b   : > { %518 = vperm.xlu1 %4286, %v4493_v7   ;;  %513 = vperm.xlu0 %4285, %v4496_v8  }
  0x2f   : > { %528 = vperm.xlu1 %4286, %v4501_v9   ;;  %523 = vperm.xlu0 %4285, %v4504_v10  }
  0x33   : > { %538 = vperm.xlu1 %4286, %v4509_v11   ;;  %533 = vperm.xlu0 %4285, %v4512_v12  }
  0x37   : > { %548 = vperm.xlu1 %4286, %v4517_v13   ;;  %543 = vperm.xlu0 %4285, %v4520_v14  }
  0x3b   : > { %558 = vperm.xlu1 %4286, %v4525_v15   ;;  %553 = vperm.xlu0 %4285, %v4528_v16  }
  0x3f   : > { %568 = vperm.xlu1 %4286, %v4533_v17   ;;  %563 = vperm.xlu0 %4285, %v4536_v18  }
  0x43   : > { %578 = vperm.xlu1 %4286, %v4541_v19   ;;  %573 = vperm.xlu0 %4285, %v4544_v20  }
  0x47   : > { %588 = vperm.xlu1 %4286, %v4549_v21   ;;  %583 = vperm.xlu0 %4285, %v4552_v22  }
  0x4b   : > { %598 = vperm.xlu1 %4286, %v4557_v23   ;;  %593 = vperm.xlu0 %4285, %v4560_v24  }
  0x4f   : > { %608 = vperm.xlu1 %4286, %v4565_v25   ;;  %603 = vperm.xlu0 %4285, %v4568_v26  }
  0x53   : > { %618 = vperm.xlu1 %4286, %v4573_v27   ;;  %613 = vperm.xlu0 %4285, %v4576_v28  }
  0x57   : > { %628 = vperm.xlu1 %4286, %v4581_v29   ;;  %623 = vperm.xlu0 %4285, %v4584_v30  }
  0x5b   : > { %638 = vperm.xlu1 %4286, %v4589_v31   ;;  %633 = vperm.xlu0 %4285, %v4592_v32  }
  0x5f   : > { %4288 = vset.pattern.permute.xlu1 %v4358_v33  ;;  %4287 = vset.pattern.permute.xlu0 %v4358_v33 }
  0x60   : > { %682 = vperm.xlu1 %4288, %v4480_v4   ;;  %678 = vperm.xlu0 %4287, %v4472_v2  }
  0x64   : > { %686 = vperm.xlu1 %4288, %v4469_v1   ;;  %690 = vperm.xlu0 %4287, %v4477_v3  }
  0x68   : > { %694 = vperm.xlu1 %4288, %v4488_v6   ;;  %698 = vperm.xlu0 %4287, %v4485_v5  }
  0x6c   : > { %702 = vperm.xlu1 %4288, %v4496_v8   ;;  %706 = vperm.xlu0 %4287, %v4493_v7  }
  0x70   : > { %710 = vperm.xlu1 %4288, %v4504_v10   ;;  %714 = vperm.xlu0 %4287, %v4501_v9  }
  0x74   : > { %718 = vperm.xlu1 %4288, %v4512_v12   ;;  %722 = vperm.xlu0 %4287, %v4509_v11  }
  0x78   : > { %726 = vperm.xlu1 %4288, %v4520_v14   ;;  %730 = vperm.xlu0 %4287, %v4517_v13  }
  0x7c   : > { %734 = vperm.xlu1 %4288, %v4528_v16   ;;  %738 = vperm.xlu0 %4287, %v4525_v15  }
  0x80   : > { %742 = vperm.xlu1 %4288, %v4536_v18   ;;  %746 = vperm.xlu0 %4287, %v4533_v17  }
  0x84   : > { %750 = vperm.xlu1 %4288, %v4544_v20   ;;  %754 = vperm.xlu0 %4287, %v4541_v19  }
  0x88   : > { %758 = vperm.xlu1 %4288, %v4552_v22   ;;  %762 = vperm.xlu0 %4287, %v4549_v21  }
  0x8c   : > { %766 = vperm.xlu1 %4288, %v4560_v24   ;;  %770 = vperm.xlu0 %4287, %v4557_v23  }
  0x90   : > { %774 = vperm.xlu1 %4288, %v4568_v26   ;;  %778 = vperm.xlu0 %4287, %v4565_v25  }
  0x94   : > { %782 = vperm.xlu1 %4288, %v4576_v28   ;;  %786 = vperm.xlu0 %4287, %v4573_v27  }
  0x98   : > { %790 = vperm.xlu1 %4288, %v4584_v30   ;;  %794 = vperm.xlu0 %4287, %v4581_v29  }
  0x9c   : > { %798 = vperm.xlu1 %4288, %v4592_v32   ;;  %802 = vperm.xlu0 %4287, %v4589_v31  }
  0x9e   : > { %v4628_v34 = vpop.permute.xlu1 %493  ;;  %v4630_v35 = vpop.permute.xlu0 %483 }
  0xa0   : > { %4289 = vset.pattern.permute.xlu1 %v4359_v36  ;;  %4290 = vset.pattern.permute.xlu0 %v4359_v36 }
  0xa1   : > { %874 = vperm.xlu1 %4289, %v4472_v2   ;;  %878 = vperm.xlu0 %4290, %v4480_v4  }
  0xa2   : > { %v4634_v37 = vpop.permute.xlu1 %498  ;;  %v4636_v38 = vpop.permute.xlu0 %488 }
  0xa5   : > { %882 = vperm.xlu1 %4289, %v4469_v1   ;;  %890 = vperm.xlu0 %4290, %v4488_v6  }
  0xa6   : > { %v4640_v39 = vpop.permute.xlu1 %508  ;;  %v4642_v40 = vpop.permute.xlu0 %503 }
  0xa9   : > { %886 = vperm.xlu1 %4289, %v4477_v3   ;;  %898 = vperm.xlu0 %4290, %v4496_v8  }
  0xaa   : > { %v4646_v41 = vpop.permute.xlu1 %518  ;;  %v4648_v42 = vpop.permute.xlu0 %513 }
  0xad   : > { %894 = vperm.xlu1 %4289, %v4485_v5   ;;  %906 = vperm.xlu0 %4290, %v4504_v10  }
  0xae   : > { %v4652_v43 = vpop.permute.xlu1 %528  ;;  %v4654_v44 = vpop.permute.xlu0 %523 }
  0xb1   : > { %902 = vperm.xlu1 %4289, %v4493_v7   ;;  %914 = vperm.xlu0 %4290, %v4512_v12  }
  0xb2   : > { %v4658_v45 = vpop.permute.xlu1 %538  ;;  %v4660_v46 = vpop.permute.xlu0 %533 }
  0xb5   : > { %910 = vperm.xlu1 %4289, %v4501_v9   ;;  %922 = vperm.xlu0 %4290, %v4520_v14  }
  0xb6   : > { %v4664_v47 = vpop.permute.xlu1 %548  ;;  %v4666_v48 = vpop.permute.xlu0 %543 }
  0xb9   : > { %918 = vperm.xlu1 %4289, %v4509_v11   ;;  %930 = vperm.xlu0 %4290, %v4528_v16  }
  0xba   : > { %v4670_v49 = vpop.permute.xlu1 %558  ;;  %v4672_v50 = vpop.permute.xlu0 %553 }
  0xbd   : > { %926 = vperm.xlu1 %4289, %v4517_v13   ;;  %938 = vperm.xlu0 %4290, %v4536_v18  }
  0xbe   : > { %v4676_v51 = vpop.permute.xlu1 %568  ;;  %v4678_v52 = vpop.permute.xlu0 %563 }
  0xc1   : > { %934 = vperm.xlu1 %4289, %v4525_v15   ;;  %946 = vperm.xlu0 %4290, %v4544_v20  }
  0xc2   : > { %v4682_v53 = vpop.permute.xlu1 %578  ;;  %v4684_v54 = vpop.permute.xlu0 %573 }
  0xc5   : > { %942 = vperm.xlu1 %4289, %v4533_v17   ;;  %954 = vperm.xlu0 %4290, %v4552_v22  }
  0xc6   : > { %v4688_v55 = vpop.permute.xlu1 %588  ;;  %v4690_v56 = vpop.permute.xlu0 %583 }
  0xc9   : > { %950 = vperm.xlu1 %4289, %v4541_v19   ;;  %962 = vperm.xlu0 %4290, %v4560_v24  }
  0xca   : > { %v4694_v57 = vpop.permute.xlu1 %598  ;;  %v4696_v58 = vpop.permute.xlu0 %593 }
  0xcd   : > { %958 = vperm.xlu1 %4289, %v4549_v21   ;;  %970 = vperm.xlu0 %4290, %v4568_v26  }
  0xce   : > { %v4700_v59 = vpop.permute.xlu1 %608  ;;  %v4702_v60 = vpop.permute.xlu0 %603 }
  0xcf   : > { %6486 = vst [vmem:[#allocation10_spill] sm:$0xff] %v4700_v59  ;;  %6487 = vst [vmem:[#allocation11_spill] sm:$0xff] %v4702_v60 }
  0xd1   : > { %966 = vperm.xlu1 %4289, %v4557_v23   ;;  %978 = vperm.xlu0 %4290, %v4576_v28  }
  0xd2   : > { %v4706_v61 = vpop.permute.xlu1 %618  ;;  %v4708_v62 = vpop.permute.xlu0 %613 }
  0xd3   : > { %6488 = vst [vmem:[#allocation12_spill] sm:$0xff] %v4706_v61  ;;  %6489 = vst [vmem:[#allocation13_spill] sm:$0xff] %v4708_v62  ;;  %v4360_v62 = vmov 3   ;;  %v4361_v61 = vmov 0.0  }
  0xd4   : > { %1367 = vst.msk [vmem:[#allocation2 + $0x18] sm:$0xff] %vm1362_vm0, %v4361_v61  ;;  %1368 = vst.msk [vmem:[#allocation2 + $0x20] sm:$0xff] %vm1362_vm0, %v4361_v61 }
  0xd5   : > { %974 = vperm.xlu1 %4289, %v4565_v25   ;;  %986 = vperm.xlu0 %4290, %v4584_v30   ;;  %1363 = vst.msk [vmem:[#allocation2] sm:$0xff] %vm1362_vm0, %v4361_v61  ;;  %1364 = vst.msk [vmem:[#allocation2 + $0x8] sm:$0xff] %vm1362_vm0, %v4361_v61 }
  0xd6   : > { %v4712_v63 = vpop.permute.xlu1 %628  ;;  %v4714_v0 = vpop.permute.xlu0 %623  ;;  %1370 = vst.msk [vmem:[#allocation2 + $0x30] sm:$0xff] %vm1362_vm0, %v4361_v61  ;;  %1371 = vst.msk [vmem:[#allocation2 + $0x38] sm:$0xff] %vm1362_vm0, %v4361_v61 }
  0xd7   : > { %6490 = vst [vmem:[#allocation14_spill] sm:$0xff] %v4712_v63  ;;  %1373 = vst.msk [vmem:[#allocation2 + $0x48] sm:$0xff] %vm1362_vm0, %v4361_v61 }
  0xd8   : > { %1374 = vst.msk [vmem:[#allocation2 + $0x50] sm:$0xff] %vm1362_vm0, %v4361_v61  ;;  %1376 = vst.msk [vmem:[#allocation2 + $0x60] sm:$0xff] %vm1362_vm0, %v4361_v61 }
  0xd9   : > { %982 = vperm.xlu1 %4289, %v4573_v27   ;;  %994 = vperm.xlu0 %4290, %v4592_v32   ;;  %1377 = vst.msk [vmem:[#allocation2 + $0x68] sm:$0xff] %vm1362_vm0, %v4361_v61  ;;  %1379 = vst.msk [vmem:[#allocation2 + $0x78] sm:$0xff] %vm1362_vm0, %v4361_v61 }
  0xda   : > { %v4718_v33 = vpop.permute.xlu1 %638  ;;  %v4720_v36 = vpop.permute.xlu0 %633  ;;  %1380 = vst.msk [vmem:[#allocation2 + $0x80] sm:$0xff] %vm1362_vm0, %v4361_v61  ;;  %1382 = vst.msk [vmem:[#allocation2 + $0x90] sm:$0xff] %vm1362_vm0, %v4361_v61 }
  0xdb   : > { %6491 = vst [vmem:[#allocation15_spill] sm:$0xff] %v4718_v33  ;;  %1383 = vst.msk [vmem:[#allocation2 + $0x98] sm:$0xff] %vm1362_vm0, %v4361_v61 }
  0xdc   : > { %1385 = vst.msk [vmem:[#allocation2 + $0xa8] sm:$0xff] %vm1362_vm0, %v4361_v61  ;;  %1386 = vst.msk [vmem:[#allocation2 + $0xb0] sm:$0xff] %vm1362_vm0, %v4361_v61 }
  0xdd   : > { %990 = vperm.xlu1 %4289, %v4581_v29   ;;  %4291 = vset.pattern.permute.xlu0 %v4360_v62  ;;  %1388 = vst.msk [vmem:[#allocation2 + $0xc0] sm:$0xff] %vm1362_vm0, %v4361_v61  ;;  %1389 = vst.msk [vmem:[#allocation2 + $0xc8] sm:$0xff] %vm1362_vm0, %v4361_v61 }
  0xde   : > { %1391 = vst.msk [vmem:[#allocation2 + $0xd8] sm:$0xff] %vm1362_vm0, %v4361_v61  ;;  %1392 = vst.msk [vmem:[#allocation2 + $0xe0] sm:$0xff] %vm1362_vm0, %v4361_v61  ;;  %1070 = vperm.xlu0 %4291, %v4472_v2  }
  0xdf   : > { %1394 = vst.msk [vmem:[#allocation2 + $0xf0] sm:$0xff] %vm1362_vm0, %v4361_v61  ;;  %1395 = vst.msk [vmem:[#allocation2 + $0xf8] sm:$0xff] %vm1362_vm0, %v4361_v61  ;;  %v4796_v33 = vpop.permute.xlu1 %682  ;;  %v4798_v63 = vpop.permute.xlu0 %678 }
  0xe0   : > { %1397 = vst.msk [vmem:[#allocation2 + $0x108] sm:$0xff] %vm1362_vm0, %v4361_v61  ;;  %1398 = vst.msk [vmem:[#allocation2 + $0x110] sm:$0xff] %vm1362_vm0, %v4361_v61 }
  0xe1   : > { %1400 = vst.msk [vmem:[#allocation2 + $0x120] sm:$0xff] %vm1362_vm0, %v4361_v61  ;;  %1401 = vst.msk [vmem:[#allocation2 + $0x128] sm:$0xff] %vm1362_vm0, %v4361_v61  ;;  %998 = vperm.xlu1 %4289, %v4589_v31  }
  0xe2   : > { %1403 = vst.msk [vmem:[#allocation2 + $0x138] sm:$0xff] %vm1362_vm0, %v4361_v61  ;;  %1404 = vst.msk [vmem:[#allocation2 + $0x140] sm:$0xff] %vm1362_vm0, %v4361_v61  ;;  %1082 = vperm.xlu0 %4291, %v4477_v3  }
  0xe3   : > { %1406 = vst.msk [vmem:[#allocation2 + $0x150] sm:$0xff] %vm1362_vm0, %v4361_v61  ;;  %1407 = vst.msk [vmem:[#allocation2 + $0x158] sm:$0xff] %vm1362_vm0, %v4361_v61  ;;  %v4802_v60 = vpop.permute.xlu1 %686  ;;  %v4804_v59 = vpop.permute.xlu0 %690 }
  0xe4   : > { %1409 = vst.msk [vmem:[#allocation2 + $0x168] sm:$0xff] %vm1362_vm0, %v4361_v61  ;;  %1410 = vst.msk [vmem:[#allocation2 + $0x170] sm:$0xff] %vm1362_vm0, %v4361_v61 }
  0xe5   : > { %1412 = vst.msk [vmem:[#allocation2 + $0x180] sm:$0xff] %vm1362_vm0, %v4361_v61  ;;  %1413 = vst.msk [vmem:[#allocation2 + $0x188] sm:$0xff] %vm1362_vm0, %v4361_v61  ;;  %4292 = vset.pattern.permute.xlu1 %v4360_v62 }
  0xe6   : > { %1415 = vst.msk [vmem:[#allocation2 + $0x198] sm:$0xff] %vm1362_vm0, %v4361_v61  ;;  %1416 = vst.msk [vmem:[#allocation2 + $0x1a0] sm:$0xff] %vm1362_vm0, %v4361_v61  ;;  %1074 = vperm.xlu1 %4292, %v4480_v4   ;;  %1090 = vperm.xlu0 %4291, %v4485_v5  }
  0xe7   : > { %6492 = vst [vmem:[#allocation16_spill] sm:$0xff] %v4804_v59  ;;  %1372 = vst.msk [vmem:[#allocation2 + $0x40] sm:$0x3] %vm1365_vm1, %v4361_v61  ;;  %v4844_v2 = vpop.permute.xlu1 %694  ;;  %v4846_v3 = vpop.permute.xlu0 %698 }
  0xe8   : > { %1366 = vst.msk [vmem:[#allocation2 + $0x10] sm:$0x3] %vm1365_vm1, %v4361_v61  ;;  %1369 = vst.msk [vmem:[#allocation2 + $0x28] sm:$0x3] %vm1365_vm1, %v4361_v61 }
  0xe9   : > { %1375 = vst.msk [vmem:[#allocation2 + $0x58] sm:$0x3] %vm1365_vm1, %v4361_v61  ;;  %1378 = vst.msk [vmem:[#allocation2 + $0x70] sm:$0x3] %vm1365_vm1, %v4361_v61 }
  0xea   : > { %1381 = vst.msk [vmem:[#allocation2 + $0x88] sm:$0x3] %vm1365_vm1, %v4361_v61  ;;  %1384 = vst.msk [vmem:[#allocation2 + $0xa0] sm:$0x3] %vm1365_vm1, %v4361_v61  ;;  %1078 = vperm.xlu1 %4292, %v4469_v1   ;;  %1098 = vperm.xlu0 %4291, %v4493_v7  }
  0xeb   : > { %1387 = vst.msk [vmem:[#allocation2 + $0xb8] sm:$0x3] %vm1365_vm1, %v4361_v61  ;;  %1390 = vst.msk [vmem:[#allocation2 + $0xd0] sm:$0x3] %vm1365_vm1, %v4361_v61  ;;  %v4850_v62 = vpop.permute.xlu1 %702  ;;  %v4852_v59 = vpop.permute.xlu0 %706 }
  0xec   : > { %1393 = vst.msk [vmem:[#allocation2 + $0xe8] sm:$0x3] %vm1365_vm1, %v4361_v61  ;;  %1396 = vst.msk [vmem:[#allocation2 + $0x100] sm:$0x3] %vm1365_vm1, %v4361_v61 }
  0xed   : > { %1399 = vst.msk [vmem:[#allocation2 + $0x118] sm:$0x3] %vm1365_vm1, %v4361_v61  ;;  %1402 = vst.msk [vmem:[#allocation2 + $0x130] sm:$0x3] %vm1365_vm1, %v4361_v61 }
  0xee   : > { %1405 = vst.msk [vmem:[#allocation2 + $0x148] sm:$0x3] %vm1365_vm1, %v4361_v61  ;;  %1408 = vst.msk [vmem:[#allocation2 + $0x160] sm:$0x3] %vm1365_vm1, %v4361_v61  ;;  %1086 = vperm.xlu1 %4292, %v4488_v6   ;;  %1106 = vperm.xlu0 %4291, %v4501_v9  }
  0xef   : > { %1411 = vst.msk [vmem:[#allocation2 + $0x178] sm:$0x3] %vm1365_vm1, %v4361_v61  ;;  %1414 = vst.msk [vmem:[#allocation2 + $0x190] sm:$0x3] %vm1365_vm1, %v4361_v61  ;;  %v4858_v4 = vpop.permute.xlu0 %714 }
  0xf0   : > { %1417 = vst.msk [vmem:[#allocation2 + $0x1a8] sm:$0x3] %vm1365_vm1, %v4361_v61  ;;  %v4856_v61 = vpop.permute.xlu1 %710 }
  0xf2   : > { %1094 = vperm.xlu1 %4292, %v4496_v8   ;;  %1114 = vperm.xlu0 %4291, %v4509_v11  }
  0xf3   : > { %v4864_v1 = vpop.permute.xlu0 %722 }
  0xf4   : > { %v4862_v5 = vpop.permute.xlu1 %718 }
  0xf6   : > { %1102 = vperm.xlu1 %4292, %v4504_v10   ;;  %1146 = vperm.xlu0 %4291, %v4541_v19  }
  0xf7   : > { %v4870_v6 = vpop.permute.xlu0 %730 }
  0xf8   : > { %v4868_v7 = vpop.permute.xlu1 %726 }
  0xfa   : > { %1110 = vperm.xlu1 %4292, %v4512_v12   ;;  %1118 = vperm.xlu0 %4291, %v4520_v14  }
  0xfb   : > { %v4876_v8 = vpop.permute.xlu0 %738 }
  0xfc   : > { %v4874_v9 = vpop.permute.xlu1 %734 }
  0xfe   : > { %1142 = vperm.xlu1 %4292, %v4544_v20   ;;  %1122 = vperm.xlu0 %4291, %v4517_v13   ;;  %v333_v13 = vlaneseq }
  0xff   : > { %v4882_v10 = vpop.permute.xlu0 %746 }
 0x100   : > { %v4880_v11 = vpop.permute.xlu1 %742 }
 0x102   : > { %1150 = vperm.xlu1 %4292, %v4552_v22   ;;  %1162 = vperm.xlu0 %4291, %v4557_v23  }
 0x103   : > { %v4888_v12 = vpop.permute.xlu0 %754 }
 0x104   : > { %v4886_v19 = vpop.permute.xlu1 %750 }
 0x105   : > { %6493 = vst [vmem:[#allocation17_spill] sm:$0xff] %v4886_v19  ;;  %v4902_v19 = vshrl.u32 %v333_v13, 7 }
 0x106   : > { %1154 = vperm.xlu1 %4292, %v4549_v21   ;;  %1130 = vperm.xlu0 %4291, %v4525_v15  }
 0x107   : > { %v4894_v20 = vpop.permute.xlu0 %762  ;;  %6497 = vst [vmem:[#allocation21_spill] sm:$0xff] %v4902_v19 }
 0x108   : > { %v4892_v14 = vpop.permute.xlu1 %758  ;;  %6494 = vst [vmem:[#allocation18_spill] sm:$0xff] %v4894_v20  ;;  %v643_v20 = vsub.s32 0, %v4902_v19 }
 0x10a   : > { %1158 = vperm.xlu1 %4292, %v4560_v24   ;;  %1170 = vperm.xlu0 %4291, %v4565_v25   ;;  %v807_v24 = vsub.s32 1, %v4902_v19  ;;  %v4917_v25 = vld [vmem:[%s6476_s1] sm:$0xf] }
 0x10b   : > { %v4900_v23 = vpop.permute.xlu0 %770  ;;  %v4924_v13 = vrot.slane %v4917_v25, %v643_v20 }
 0x10c   : > { %v4898_v22 = vpop.permute.xlu1 %766  ;;  %6496 = vst [vmem:[#allocation20_spill] sm:$0xff] %v4900_v23 }
 0x10d   : > { %6495 = vst [vmem:[#allocation19_spill] sm:$0xff] %v4898_v22 }
 0x10e   : > { %1126 = vperm.xlu1 %4292, %v4528_v16   ;;  %1138 = vperm.xlu0 %4291, %v4533_v17  }
 0x10f   : > { %v4908_v21 = vpop.permute.xlu0 %778 }
 0x110   : > { %v4906_v15 = vpop.permute.xlu1 %774  ;;  %6499 = vst [vmem:[#allocation23_spill] sm:$0xff] %v4908_v21  ;;  %v4927_v21 = vrot.slane %v4917_v25, %v807_v24 }
 0x111   : > { %6498 = vst [vmem:[#allocation22_spill] sm:$0xff] %v4906_v15  ;;  %v673_v15 = vmul.f32 %v4924_v13, %v4714_v0  ;;  %v1709_v0 = vld [vmem:[#allocation2 + $0xa] sm:$0xff] }
 0x112   : > { %1166 = vperm.xlu1 %4292, %v4568_v26   ;;  %1178 = vperm.xlu0 %4291, %v4573_v27  }
 0x113   : > { %v4921_v17 = vpop.permute.xlu0 %786 }
 0x114   : > { %v4919_v16 = vpop.permute.xlu1 %782  ;;  %6501 = vst [vmem:[#allocation25_spill] sm:$0xff] %v4921_v17 }
 0x115   : > { %6500 = vst [vmem:[#allocation24_spill] sm:$0xff] %v4919_v16 }
 0x116   : > { %1134 = vperm.xlu1 %4292, %v4536_v18   ;;  %1186 = vperm.xlu0 %4291, %v4581_v29   ;;  %v1516_v18 = vld [vmem:[#allocation2 + $0x9] sm:$0xff]  ;;  %v675_v29 = vmul.f32 %v4924_v13, %v4720_v36  ;;  %v1515_v36 = vld [vmem:[#allocation2 + $0x1] sm:$0xff] }
 0x117   : > { %v4931_v27 = vpop.permute.xlu0 %794 }
 0x118   : > { %v791_v26 = vpop.permute.xlu1 %790  ;;  %6502 = vst [vmem:[#allocation26_spill] sm:$0xff] %v4931_v27 }
 0x119   : > { %v837_v16 = vmul.f32 %v4927_v21, %v791_v26 }
 0x11a   : > { %1174 = vperm.xlu1 %4292, %v4576_v28   ;;  %1194 = vperm.xlu0 %4291, %v4589_v31  }
 0x11b   : > { %v4936_v23 = vadd.f32 %v837_v16, %v673_v15  ;;  %v4940_v24 = vpop.permute.xlu0 %802 }
 0x11c   : > { %v799_v20 = vpop.permute.xlu1 %798  ;;  %6503 = vst [vmem:[#allocation27_spill] sm:$0xff] %v4940_v24 }
 0x11d   : > { %v839_v27 = vmul.f32 %v4927_v21, %v799_v20 }
 0x11e   : > { %1182 = vperm.xlu1 %4292, %v4584_v30   ;;  %1581 = vrot.lane.b32.xlu0 %v1516_v18, %s4362_s18  ;;  %v1708_v30 = vld [vmem:[#allocation2 + $0x2] sm:$0xff] }
 0x11f   : > { %v4945_v17 = vadd.f32 %v839_v27, %v675_v29 }
 0x120   : > { %v4949_v28 = vpop.permute.xlu1 %874  ;;  %v4951_v31 = vpop.permute.xlu0 %878 }
 0x122   : > { %1190 = vperm.xlu1 %4292, %v4592_v32   ;;  %1774 = vrot.lane.b32.xlu0 %v1709_v0, %s4363_s19 }
 0x124   : > { %v4955_v15 = vpop.permute.xlu1 %882  ;;  %v4957_v16 = vpop.permute.xlu0 %890 }
 0x125   : > { %6504 = vst [vmem:[#allocation28_spill] sm:$0xff] %v4955_v15  ;;  %6505 = vst [vmem:[#allocation29_spill] sm:$0xff] %v4957_v16 }
 0x126   : > { %1579 = vrot.lane.b32.xlu1 %v1515_v36, %s4362_s18 }
 0x128   : > { %v4960_v26 = vpop.permute.xlu1 %886  ;;  %v4962_v27 = vpop.permute.xlu0 %898 }
 0x129   : > { %6506 = vst [vmem:[#allocation30_spill] sm:$0xff] %v4962_v27 }
 0x12a   : > { %1772 = vrot.lane.b32.xlu1 %v1708_v30, %s4363_s19 }
 0x12c   : > { %v4965_v20 = vpop.permute.xlu1 %894  ;;  %v4967_v32 = vpop.permute.xlu0 %906 }
 0x12d   : > { %6507 = vst [vmem:[#allocation31_spill] sm:$0xff] %v4967_v32 }
 0x130   : > { %v4969_v18 = vpop.permute.xlu1 %902  ;;  %v4971_v29 = vpop.permute.xlu0 %914 }
 0x131   : > { %6508 = vst [vmem:[#allocation32_spill] sm:$0xff] %v4969_v18  ;;  %6509 = vst [vmem:[#allocation33_spill] sm:$0xff] %v4971_v29 }
 0x134   : > { %v4973_v0 = vpop.permute.xlu1 %910  ;;  %v4975_v24 = vpop.permute.xlu0 %922 }
 0x135   : > { %6510 = vst [vmem:[#allocation34_spill] sm:$0xff] %v4973_v0  ;;  %6511 = vst [vmem:[#allocation35_spill] sm:$0xff] %v4975_v24  ;;  %v1003_v24 = vsub.s32 2, %v4902_v19 }
 0x138   : > { %v4977_v36 = vpop.permute.xlu1 %918  ;;  %v4979_v16 = vpop.permute.xlu0 %930 }
 0x139   : > { %6512 = vst [vmem:[#allocation36_spill] sm:$0xff] %v4977_v36  ;;  %6513 = vst [vmem:[#allocation37_spill] sm:$0xff] %v4979_v16 }
 0x13c   : > { %v4981_v15 = vpop.permute.xlu1 %926  ;;  %v4983_v27 = vpop.permute.xlu0 %938 }
 0x13d   : > { %6514 = vst [vmem:[#allocation38_spill] sm:$0xff] %v4981_v15  ;;  %6515 = vst [vmem:[#allocation39_spill] sm:$0xff] %v4983_v27  ;;  %v647_v27 = vmul.f32 %v4924_v13, %v4628_v34  ;;  %v652_v34 = vmul.f32 %v4924_v13, %v4646_v41  ;;  %v5037_v41 = vmul.f32 %v4924_v13, %v4664_v47 }
 0x13e   : > { %v5061_v47 = vmul.f32 %v4924_v13, %v4678_v52  ;;  %v5082_v52 = vmul.f32 %v4924_v13, %v4694_v57  ;;  %v810_v57 = vmul.f32 %v4927_v21, %v4796_v33 }
 0x140   : > { %v4985_v30 = vpop.permute.xlu1 %934  ;;  %v4987_v22 = vpop.permute.xlu0 %946  ;;  %6526 = vst [vmem:[#allocation50_spill] sm:$0xff] %v5082_v52 }
 0x141   : > { %6516 = vst [vmem:[#allocation40_spill] sm:$0xff] %v4985_v30  ;;  %6517 = vst [vmem:[#allocation41_spill] sm:$0xff] %v4987_v22  ;;  %v645_v30 = vmul.f32 %v4924_v13, %v4630_v35  ;;  %v5013_v22 = vrot.slane %v4917_v25, %v1003_v24  ;;  %v651_v35 = vmul.f32 %v4924_v13, %v4648_v42 }
 0x142   : > { %v5045_v24 = vmul.f32 %v4924_v13, %v4666_v48  ;;  %v5065_v48 = vmul.f32 %v4924_v13, %v4682_v53  ;;  %v5086_v53 = vmul.f32 %v4924_v13, %v4696_v58 }
 0x144   : > { %v4989_v32 = vpop.permute.xlu1 %942  ;;  %v4991_v18 = vpop.permute.xlu0 %954  ;;  %6527 = vst [vmem:[#allocation51_spill] sm:$0xff] %v5086_v53  ;;  %v6539_v53 = vld [vmem:[#allocation16_spill] sm:$0xff] }
 0x145   : > { %6518 = vst [vmem:[#allocation42_spill] sm:$0xff] %v4989_v32  ;;  %6519 = vst [vmem:[#allocation43_spill] sm:$0xff] %v4991_v18  ;;  %v648_v32 = vmul.f32 %v4924_v13, %v4634_v37  ;;  %v646_v18 = vmul.f32 %v4924_v13, %v4636_v38  ;;  %v5023_v37 = vmul.f32 %v4924_v13, %v4652_v43 }
 0x146   : > { %v653_v38 = vmul.f32 %v4924_v13, %v4654_v44  ;;  %v5049_v44 = vmul.f32 %v4924_v13, %v4670_v49  ;;  %v5069_v49 = vmul.f32 %v4924_v13, %v4684_v54  ;;  %v6528_v54 = vld [vmem:[#allocation10_spill] sm:$0xff] }
 0x148   : > { %v4993_v29 = vpop.permute.xlu1 %950  ;;  %v4995_v0 = vpop.permute.xlu0 %962 }
 0x149   : > { %6520 = vst [vmem:[#allocation44_spill] sm:$0xff] %v4993_v29  ;;  %6521 = vst [vmem:[#allocation45_spill] sm:$0xff] %v4995_v0  ;;  %v650_v0 = vmul.f32 %v4924_v13, %v4640_v39  ;;  %v5031_v39 = vmul.f32 %v4924_v13, %v4658_v45  ;;  %v5053_v45 = vmul.f32 %v4924_v13, %v4672_v50  ;;  %v6535_v29 = vld [vmem:[#allocation13_spill] sm:$0xff] }
 0x14a   : > { %v5074_v50 = vmul.f32 %v4924_v13, %v4688_v55  ;;  %v5106_v52 = vmul.f32 %v4924_v13, %v6535_v29  ;;  %v812_v29 = vmul.f32 %v4927_v21, %v6539_v53  ;;  %v815_v53 = vmul.f32 %v4927_v21, %v4850_v62 }
 0x14c   : > { %v4998_v36 = vpop.permute.xlu1 %958  ;;  %v5000_v16 = vpop.permute.xlu0 %970  ;;  %6536 = vst [vmem:[#allocation13_spill] sm:$0xff] %v5106_v52  ;;  %v844_v62 = vadd.f32 %v812_v29, %v648_v32 }
 0x14d   : > { %6522 = vst [vmem:[#allocation46_spill] sm:$0xff] %v4998_v36  ;;  %6523 = vst [vmem:[#allocation47_spill] sm:$0xff] %v5000_v16  ;;  %v649_v16 = vmul.f32 %v4924_v13, %v4642_v40  ;;  %v655_v40 = vmul.f32 %v4924_v13, %v4660_v46  ;;  %v5057_v46 = vmul.f32 %v4924_v13, %v4676_v51 }
 0x14e   : > { %v5078_v51 = vmul.f32 %v4924_v13, %v4690_v56  ;;  %v5090_v36 = vmul.f32 %v4924_v13, %v6528_v54  ;;  %v6537_v54 = vld [vmem:[#allocation14_spill] sm:$0xff] }
 0x150   : > { %v5039_v42 = vpop.permute.xlu1 %966  ;;  %v5041_v43 = vpop.permute.xlu0 %978  ;;  %6529 = vst [vmem:[#allocation10_spill] sm:$0xff] %v5090_v36  ;;  %v5110_v36 = vmul.f32 %v4924_v13, %v6537_v54 }
 0x151   : > { %6524 = vst [vmem:[#allocation48_spill] sm:$0xff] %v5039_v42  ;;  %6525 = vst [vmem:[#allocation49_spill] sm:$0xff] %v5041_v43  ;;  %v1199_v43 = vsub.s32 3, %v4902_v19  ;;  %v6530_v19 = vld [vmem:[#allocation11_spill] sm:$0xff]  ;;  %v6532_v42 = vld [vmem:[#allocation12_spill] sm:$0xff] }
 0x152   : > { %v5094_v55 = vmul.f32 %v4924_v13, %v6530_v19  ;;  %v5098_v56 = vmul.f32 %v4924_v13, %v6532_v42  ;;  %v809_v19 = vmul.f32 %v4927_v21, %v4798_v63  ;;  %v813_v63 = vmul.f32 %v4927_v21, %v4844_v2 }
 0x153   : > { %v5124_v52 = vrot.slane %v4917_v25, %v1199_v43  ;;  %v816_v25 = vmul.f32 %v4927_v21, %v4852_v59  ;;  %v817_v43 = vmul.f32 %v4927_v21, %v4856_v61  ;;  %v820_v59 = vmul.f32 %v4927_v21, %v4864_v1 }
 0x154   : > { %6531 = vst [vmem:[#allocation11_spill] sm:$0xff] %v5094_v55  ;;  %6533 = vst [vmem:[#allocation12_spill] sm:$0xff] %v5098_v56  ;;  %v5102_v15 = vpop.permute.xlu1 %974  ;;  %v987_v58 = vpop.permute.xlu0 %986  ;;  %v1451_v56 = vld [vmem:[#allocation2] sm:$0xff]  ;;  %v6538_v55 = vld [vmem:[#allocation15_spill] sm:$0xff]  ;;  %v841_v54 = vadd.f32 %v809_v19, %v645_v30  ;;  %v1005_v61 = vmul.f32 %v5013_v22, %v4949_v28  ;;  %v822_v1 = vmul.f32 %v4927_v21, %v4870_v6 }
 0x155   : > { %6534 = vst [vmem:[#allocation52_spill] sm:$0xff] %v5102_v15  ;;  %v1033_v42 = vmul.f32 %v5013_v22, %v987_v58  ;;  %v5117_v33 = vmul.f32 %v4924_v13, %v6538_v55  ;;  %v811_v15 = vmul.f32 %v4927_v21, %v4802_v60  ;;  %1483 = vst.msk [vmem:[#allocation3] sm:$0xff] %vm1362_vm0, %v1451_v56  ;;  %v5135_v55 = vstv %s5025_s20  ;;  %s4369_s20 = smov 32  }
 0x156   : > { %v814_v58 = vmul.f32 %v4927_v21, %v4846_v3  ;;  %v842_v60 = vadd.f32 %v810_v57, %v646_v18  ;;  %v818_v3 = vmul.f32 %v4927_v21, %v4858_v4  ;;  %v821_v4 = vmul.f32 %v4927_v21, %v4868_v7 }
 0x157   : > { %v5132_v13 = vadd.f32 %v1033_v42, %v4936_v23  ;;  %v819_v23 = vmul.f32 %v4927_v21, %v4862_v5  ;;  %v5150_v57 = vadd.f32 %v811_v15, %v647_v27  ;;  %v5156_v42 = vadd.f32 %v813_v63, %v649_v16 }
 0x158   : > { %v5143_v56 = vpop.permute.xlu1 %982  ;;  %v995_v2 = vpop.permute.xlu0 %994  ;;  %v846_v30 = vadd.f32 %v814_v58, %v650_v0  ;;  %v5163_v5 = vadd.f32 %v815_v53, %v651_v35  ;;  %v5165_v15 = vadd.f32 %v816_v25, %v652_v34  ;;  %v5167_v27 = vadd.f32 %v817_v43, %v653_v38  ;;  %v1452_v53 = vld [vmem:[#allocation2 + $0x8] sm:$0xff] }
 0x159   : > { %v1035_v18 = vmul.f32 %v5013_v22, %v995_v2  ;;  %v5174_v28 = vadd.f32 %v818_v3, %v5023_v37  ;;  %v5176_v16 = vadd.f32 %v819_v23, %v655_v40  ;;  %v823_v7 = vmul.f32 %v4927_v21, %v4874_v9  ;;  %1484 = vst.msk [vmem:[#allocation3 + $0x8] sm:$0xff] %vm1362_vm0, %v1452_v53 }
 0x15a   : > { %v5183_v34 = vadd.f32 %v820_v59, %v5031_v39  ;;  %v1037_v35 = vadd.f32 %v1005_v61, %v841_v54  ;;  %v1008_v6 = vmul.f32 %v5013_v22, %v4960_v26  ;;  %v5189_v37 = vadd.f32 %v821_v4, %v5045_v24  ;;  %v6541_v54 = vld [vmem:[#allocation18_spill] sm:$0xff]  ;;  %v6542_v59 = vld [vmem:[#allocation19_spill] sm:$0xff]  ;;  %v6543_v61 = vld [vmem:[#allocation20_spill] sm:$0xff] }
 0x15b   : > { %v5161_v19 = vadd.f32 %v1035_v18, %v4945_v17  ;;  %v824_v17 = vmul.f32 %v4927_v21, %v4876_v8  ;;  %v825_v40 = vmul.f32 %v4927_v21, %v4880_v11  ;;  %v826_v9 = vmul.f32 %v4927_v21, %v4882_v10  ;;  %v6540_v8 = vld [vmem:[#allocation17_spill] sm:$0xff] }
 0x15c   : > { %v5171_v32 = vpop.permute.xlu1 %990  ;;  %v827_v29 = vmul.f32 %v4927_v21, %v6540_v8  ;;  %v5198_v39 = vadd.f32 %v822_v1, %v5037_v41  ;;  %v828_v26 = vmul.f32 %v4927_v21, %v4888_v12  ;;  %v829_v63 = vmul.f32 %v4927_v21, %v4892_v14 }
 0x15d   : > { %v1071_v0 = vpop.permute.xlu0 %1070  ;;  %v5207_v11 = vadd.f32 %v823_v7, %v5053_v45  ;;  %v5210_v10 = vadd.f32 %v824_v17, %v5049_v44  ;;  %v1006_v41 = vmul.f32 %v5013_v22, %v4951_v31  ;;  %v1010_v25 = vmul.f32 %v5013_v22, %v4965_v20 }
 0x15e   : > { %v1201_v38 = vmul.f32 %v5124_v52, %v1071_v0  ;;  %v1040_v14 = vadd.f32 %v1008_v6, %v844_v62  ;;  %v5220_v45 = vadd.f32 %v825_v40, %v5061_v47  ;;  %v5223_v44 = vadd.f32 %v826_v9, %v5057_v46  ;;  %v6547_v9 = vld [vmem:[#allocation23_spill] sm:$0xff] }
 0x15f   : > { %v5226_v31 = vadd.f32 %v827_v29, %v5069_v49  ;;  %v830_v20 = vmul.f32 %v4927_v21, %v6541_v54  ;;  %v5231_v3 = vadd.f32 %v828_v26, %v5065_v48  ;;  %v5234_v23 = vadd.f32 %v829_v63, %v5078_v51 }
 0x160   : > { %v1233_v24 = vadd.f32 %v1201_v38, %v1037_v35  ;;  %v5204_v58 = vpop.permute.xlu1 %998  ;;  %v831_v47 = vmul.f32 %v4927_v21, %v6542_v59  ;;  %v832_v46 = vmul.f32 %v4927_v21, %v6543_v61  ;;  %v1038_v4 = vadd.f32 %v1006_v41, %v842_v60  ;;  %v6544_v35 = vld [vmem:[#allocation22_spill] sm:$0xff]  ;;  %v6545_v38 = vld [vmem:[#allocation28_spill] sm:$0xff] }
 0x161   : > { %v1083_v12 = vpop.permute.xlu0 %1082  ;;  %v1042_v49 = vadd.f32 %v1010_v25, %v846_v30  ;;  %v5245_v0 = vadd.f32 %v830_v20, %v5074_v50  ;;  %v833_v6 = vmul.f32 %v4927_v21, %v6544_v35  ;;  %v1007_v60 = vmul.f32 %v5013_v22, %v6545_v38  ;;  %v6546_v30 = vld [vmem:[#allocation32_spill] sm:$0xff]  ;;  %v6549_v50 = vld [vmem:[#allocation50_spill] sm:$0xff]  ;;  %v6550_v25 = vld [vmem:[#allocation29_spill] sm:$0xff] }
 0x162   : > { %vm1265_vm2 = vcmp.ge.f32.partialorder %v1233_v24, 0.0  ;;  %v1298_v43 = vmul.f32 %v5135_v55, %v1233_v24  ;;  %v1204_v2 = vmul.f32 %v5124_v52, %v1083_v12  ;;  %v1012_v40 = vmul.f32 %v5013_v22, %v6546_v30  ;;  %v6554_v35 = vld [vmem:[#allocation30_spill] sm:$0xff] }
 0x163   : > { %v834_v8 = vmul.f32 %v4927_v21, %v6547_v9  ;;  %v5259_v41 = vadd.f32 %v832_v46, %v6549_v50  ;;  %v1009_v12 = vmul.f32 %v5013_v22, %v6550_v25  ;;  %v6552_v46 = vld [vmem:[#allocation11_spill] sm:$0xff] }
 0x164   : > { %v1330_v18 = vsel %vm1265_vm2, %v1233_v24, %v1298_v43  ;;  %v1236_v62 = vadd.f32 %v1204_v2, %v1040_v14  ;;  %v6548_v24 = vld [vmem:[#allocation51_spill] sm:$0xff]  ;;  %v6551_v14 = vld [vmem:[#allocation34_spill] sm:$0xff]  ;;  %v1044_v59 = vadd.f32 %v1012_v40, %v5165_v15  ;;  %v6555_v40 = vld [vmem:[#allocation36_spill] sm:$0xff] }
 0x165   : > { %1419 = vst.msk [vmem:[#allocation2 + $0x19] sm:$0xff] %vm1362_vm0, %v1330_v18  ;;  %v1075_v1 = vpop.permute.xlu1 %1074  ;;  %v1091_v7 = vpop.permute.xlu0 %1090  ;;  %v5256_v53 = vadd.f32 %v831_v47, %v6548_v24  ;;  %v1014_v43 = vmul.f32 %v5013_v22, %v6551_v14  ;;  %v6557_v50 = vld [vmem:[#allocation31_spill] sm:$0xff] }
 0x166   : > { %vm1268_vm3 = vcmp.ge.f32.partialorder %v1236_v62, 0.0  ;;  %v1301_v48 = vmul.f32 %v5135_v55, %v1236_v62  ;;  %v1202_v51 = vmul.f32 %v5124_v52, %v1075_v1  ;;  %v1206_v17 = vmul.f32 %v5124_v52, %v1091_v7 }
 0x167   : > { %v1046_v30 = vadd.f32 %v1014_v43, %v5174_v28  ;;  %v1013_v25 = vmul.f32 %v5013_v22, %v6557_v50  ;;  %v6558_v43 = vld [vmem:[#allocation25_spill] sm:$0xff] }
 0x168   : > { %v1333_v29 = vsel %vm1268_vm3, %v1236_v62, %v1301_v48  ;;  %v1234_v26 = vadd.f32 %v1202_v51, %v1038_v4  ;;  %v1238_v63 = vadd.f32 %v1206_v17, %v1042_v49  ;;  %v1039_v62 = vadd.f32 %v1007_v60, %v5150_v57  ;;  %v6553_v49 = vld [vmem:[#allocation10_spill] sm:$0xff] }
 0x169   : > { %1422 = vst.msk [vmem:[#allocation2 + $0x39] sm:$0xff] %vm1362_vm0, %v1333_v29  ;;  %v1079_v2 = vpop.permute.xlu1 %1078  ;;  %v1099_v54 = vpop.permute.xlu0 %1098  ;;  %v5273_v4 = vadd.f32 %v833_v6, %v6552_v46  ;;  %v5276_v1 = vadd.f32 %v834_v8, %v6553_v49  ;;  %v1041_v17 = vadd.f32 %v1009_v12, %v5156_v42  ;;  %v1011_v57 = vmul.f32 %v5013_v22, %v6554_v35 }
 0x16a   : > { %vm1266_vm4 = vcmp.ge.f32.partialorder %v1234_v26, 0.0  ;;  %v1299_v20 = vmul.f32 %v5135_v55, %v1234_v26  ;;  %vm1270_vm5 = vcmp.ge.f32.partialorder %v1238_v63, 0.0  ;;  %v1303_v18 = vmul.f32 %v5135_v55, %v1238_v63 }
 0x16b   : > { %v1203_v47 = vmul.f32 %v5124_v52, %v1079_v2  ;;  %v1208_v61 = vmul.f32 %v5124_v52, %v1099_v54  ;;  %v1016_v42 = vmul.f32 %v5013_v22, %v6555_v40  ;;  %v836_v2 = vmul.f32 %v4927_v21, %v6558_v43  ;;  %v6559_v54 = vld [vmem:[#allocation44_spill] sm:$0xff]  ;;  %v6561_v40 = vld [vmem:[#allocation33_spill] sm:$0xff] }
 0x16c   : > { %v1331_v7 = vsel %vm1266_vm4, %v1234_v26, %v1299_v20  ;;  %v1335_v48 = vsel %vm1270_vm5, %v1238_v63, %v1303_v18  ;;  %v1901_v51 = vld [vmem:[#allocation2 + $0x18] sm:$0xff]  ;;  %v6556_v63 = vld [vmem:[#allocation24_spill] sm:$0xff]  ;;  %v1024_v20 = vmul.f32 %v5013_v22, %v6559_v54  ;;  %v1043_v49 = vadd.f32 %v1011_v57, %v5163_v5 }
 0x16d   : > { %1420 = vst.msk [vmem:[#allocation2 + $0x21] sm:$0xff] %vm1362_vm0, %v1331_v7  ;;  %1424 = vst.msk [vmem:[#allocation2 + $0x51] sm:$0xff] %vm1362_vm0, %v1335_v48  ;;  %v1235_v15 = vadd.f32 %v1203_v47, %v1039_v62  ;;  %v1240_v38 = vadd.f32 %v1208_v61, %v1044_v59  ;;  %v1087_v60 = vpop.permute.xlu1 %1086  ;;  %1965 = vrot.lane.b32.xlu1 %v1901_v51, %s4364_s21  ;;  %v1107_v6 = vpop.permute.xlu0 %1106  ;;  %v835_v24 = vmul.f32 %v4927_v21, %v6556_v63  ;;  %v2094_v14 = vld [vmem:[#allocation2 + $0x19] sm:$0xff] }
 0x16e   : > { %1485 = vst.msk [vmem:[#allocation3 + $0x10] sm:$0xff] %vm1362_vm0, %v1901_v51  ;;  %v1205_v9 = vmul.f32 %v5124_v52, %v1087_v60  ;;  %v1210_v8 = vmul.f32 %v5124_v52, %v1107_v6  ;;  %v1048_v7 = vadd.f32 %v1016_v42, %v5183_v34 }
 0x16f   : > { %vm1267_vm6 = vcmp.ge.f32.partialorder %v1235_v15, 0.0  ;;  %v1300_v29 = vmul.f32 %v5135_v55, %v1235_v15  ;;  %vm1272_vm7 = vcmp.ge.f32.partialorder %v1240_v38, 0.0  ;;  %v1305_v26 = vmul.f32 %v5135_v55, %v1240_v38 }
 0x170   : > { %v1237_v28 = vadd.f32 %v1205_v9, %v1041_v17  ;;  %v1242_v12 = vadd.f32 %v1210_v8, %v1046_v30  ;;  %v6560_v17 = vld [vmem:[#allocation13_spill] sm:$0xff]  ;;  %v1015_v9 = vmul.f32 %v5013_v22, %v6561_v40 }
 0x171   : > { %v1332_v18 = vsel %vm1267_vm6, %v1235_v15, %v1300_v29  ;;  %v1337_v62 = vsel %vm1272_vm7, %v1240_v38, %v1305_v26  ;;  %v1095_v59 = vpop.permute.xlu1 %1094  ;;  %2158 = vrot.lane.b32.xlu1 %v2094_v14, %s4365_s22  ;;  %v1115_v47 = vpop.permute.xlu0 %1114  ;;  %v5310_v35 = vadd.f32 %v835_v24, %v6560_v17  ;;  %v1045_v15 = vadd.f32 %v1013_v25, %v5167_v27  ;;  %v6562_v27 = vld [vmem:[#allocation35_spill] sm:$0xff]  ;;  %v6563_v25 = vld [vmem:[#allocation12_spill] sm:$0xff] }
 0x172   : > { %1421 = vst.msk [vmem:[#allocation2 + $0x31] sm:$0xff] %vm1362_vm0, %v1332_v18  ;;  %1426 = vst.msk [vmem:[#allocation2 + $0x69] sm:$0xff] %vm1362_vm0, %v1337_v62  ;;  %vm1269_vm8 = vcmp.ge.f32.partialorder %v1237_v28, 0.0  ;;  %v1302_v61 = vmul.f32 %v5135_v55, %v1237_v28  ;;  %vm1274_vm9 = vcmp.ge.f32.partialorder %v1242_v12, 0.0  ;;  %v1307_v46 = vmul.f32 %v5135_v55, %v1242_v12  ;;  %v6565_v62 = vld [vmem:[#allocation41_spill] sm:$0xff] }
 0x173   : > { %v1207_v48 = vmul.f32 %v5124_v52, %v1095_v59  ;;  %v1212_v51 = vmul.f32 %v5124_v52, %v1115_v47  ;;  %v1017_v8 = vmul.f32 %v5013_v22, %v6562_v27  ;;  %v1056_v29 = vadd.f32 %v1024_v20, %v5231_v3 }
 0x174   : > { %v1334_v38 = vsel %vm1269_vm8, %v1237_v28, %v1302_v61  ;;  %v1339_v60 = vsel %vm1274_vm9, %v1242_v12, %v1307_v46  ;;  %v1902_v6 = vld [vmem:[#allocation2 + $0x20] sm:$0xff]  ;;  %v5328_v28 = vadd.f32 %v836_v2, %v6563_v25  ;;  %v6564_v12 = vld [vmem:[#allocation38_spill] sm:$0xff]  ;;  %v1023_v3 = vmul.f32 %v5013_v22, %v6565_v62 }
 0x175   : > { %v2095_v30 = vld [vmem:[#allocation2 + $0x21] sm:$0xff]  ;;  %1423 = vst.msk [vmem:[#allocation2 + $0x49] sm:$0xff] %vm1362_vm0, %v1334_v38  ;;  %1428 = vst.msk [vmem:[#allocation2 + $0x81] sm:$0xff] %vm1362_vm0, %v1339_v60  ;;  %v1239_v5 = vadd.f32 %v1207_v48, %v1043_v49  ;;  %v1244_v34 = vadd.f32 %v1212_v51, %v1048_v7  ;;  %v1103_v57 = vpop.permute.xlu1 %1102  ;;  %1967 = vrot.lane.b32.xlu0 %v1902_v6, %s4364_s21  ;;  %v1147_v42 = vpop.permute.xlu0 %1146  ;;  %v1018_v43 = vmul.f32 %v5013_v22, %v6564_v12  ;;  %v6566_v38 = vld [vmem:[#allocation26_spill] sm:$0xff] }
 0x176   : > { %2160 = vrot.lane.b32.xlu1 %v2095_v30, %s4365_s22  ;;  %1486 = vst.msk [vmem:[#allocation3 + $0x18] sm:$0xff] %vm1362_vm0, %v1902_v6  ;;  %v1209_v26 = vmul.f32 %v5124_v52, %v1103_v57  ;;  %v1220_v63 = vmul.f32 %v5124_v52, %v1147_v42  ;;  %v1049_v48 = vadd.f32 %v1017_v8, %v5189_v37  ;;  %v6568_v8 = vld [vmem:[#allocation48_spill] sm:$0xff]  ;;  %v6570_v62 = vld [vmem:[#allocation46_spill] sm:$0xff] }
 0x177   : > { %vm1271_vm10 = vcmp.ge.f32.partialorder %v1239_v5, 0.0  ;;  %v1304_v24 = vmul.f32 %v5135_v55, %v1239_v5  ;;  %vm1276_vm11 = vcmp.ge.f32.partialorder %v1244_v34, 0.0  ;;  %v1309_v50 = vmul.f32 %v5135_v55, %v1244_v34  ;;  %v6569_v12 = vld [vmem:[#allocation40_spill] sm:$0xff] }
 0x178   : > { %v1241_v54 = vadd.f32 %v1209_v26, %v1045_v15  ;;  %v1252_v18 = vadd.f32 %v1220_v63, %v1056_v29  ;;  %v2288_v15 = vld [vmem:[#allocation2 + $0x22] sm:$0xff]  ;;  %v838_v60 = vmul.f32 %v4927_v21, %v6566_v38  ;;  %v1050_v6 = vadd.f32 %v1018_v43, %v5198_v39 }
 0x179   : > { %v1336_v20 = vsel %vm1271_vm10, %v1239_v5, %v1304_v24  ;;  %v1341_v59 = vsel %vm1276_vm11, %v1244_v34, %v1309_v50  ;;  %v1111_v47 = vpop.permute.xlu1 %1110  ;;  %1583 = vrot.lane.b32.xlu0 %v2094_v14, %s4362_s18  ;;  %v1119_v61 = vpop.permute.xlu0 %1118  ;;  %v5336_v46 = vld [vmem:[#allocation2 + $0x30] sm:$0xff]  ;;  %v5338_v2 = vld [vmem:[#allocation2 + $0x38] sm:$0xff]  ;;  %v1047_v14 = vadd.f32 %v1015_v9, %v5176_v16  ;;  %v1055_v16 = vadd.f32 %v1023_v3, %v5226_v31  ;;  %v6571_v38 = vld [vmem:[#allocation37_spill] sm:$0xff] }
 0x17a   : > { %1585 = vrot.lane.b32.xlu1 %v2095_v30, %s4362_s18  ;;  %1425 = vst.msk [vmem:[#allocation2 + $0x61] sm:$0xff] %vm1362_vm0, %v1336_v20  ;;  %1430 = vst.msk [vmem:[#allocation2 + $0x99] sm:$0xff] %vm1362_vm0, %v1341_v59  ;;  %vm1273_vm12 = vcmp.ge.f32.partialorder %v1241_v54, 0.0  ;;  %v1306_v49 = vmul.f32 %v5135_v55, %v1241_v54  ;;  %vm1284_vm13 = vcmp.ge.f32.partialorder %v1252_v18, 0.0  ;;  %v1317_v7 = vmul.f32 %v5135_v55, %v1252_v18  ;;  %v2287_v5 = vld [vmem:[#allocation2 + $0x1a] sm:$0xff] }
 0x17b   : > { %1487 = vst.msk [vmem:[#allocation3 + $0x20] sm:$0xff] %vm1362_vm0, %v5336_v46  ;;  %1488 = vst.msk [vmem:[#allocation3 + $0x28] sm:$0xff] %vm1362_vm0, %v5338_v2  ;;  %v1211_v51 = vmul.f32 %v5124_v52, %v1111_v47  ;;  %v1213_v17 = vmul.f32 %v5124_v52, %v1119_v61  ;;  %v6567_v31 = vld [vmem:[#allocation43_spill] sm:$0xff]  ;;  %v1028_v29 = vmul.f32 %v5013_v22, %v6568_v8  ;;  %vm3194_vm11 = vcmask 1043456  }
 0x17c   : > { %v1338_v30 = vsel %vm1273_vm12, %v1241_v54, %v1306_v49  ;;  %v1349_v40 = vsel %vm1284_vm13, %v1252_v18, %v1317_v7  ;;  %v5355_v34 = vld [vmem:[#allocation2 + $0x48] sm:$0xff]  ;;  %v5357_v57 = vld [vmem:[#allocation2 + $0x50] sm:$0xff]  ;;  %v1025_v27 = vmul.f32 %v5013_v22, %v6567_v31  ;;  %v5377_v25 = vadd.f32 %v838_v60, %v5110_v36  ;;  %v6573_v31 = vld [vmem:[#allocation52_spill] sm:$0xff] }
 0x17d   : > { %1427 = vst.msk [vmem:[#allocation2 + $0x79] sm:$0xff] %vm1362_vm0, %v1338_v30  ;;  %1438 = vst.msk [vmem:[#allocation2 + $0xf9] sm:$0xff] %vm1362_vm0, %v1349_v40  ;;  %v1243_v37 = vadd.f32 %v1211_v51, %v1047_v14  ;;  %v1245_v9 = vadd.f32 %v1213_v17, %v1049_v48  ;;  %v1143_v42 = vpop.permute.xlu1 %1142  ;;  %2351 = vrot.lane.b32.xlu0 %v2287_v5, %s4366_s23  ;;  %v1123_v39 = vpop.permute.xlu0 %1122  ;;  %v1020_v43 = vmul.f32 %v5013_v22, %v6569_v12 }
 0x17e   : > { %2353 = vrot.lane.b32.xlu1 %v2288_v15, %s4366_s23  ;;  %1489 = vst.msk [vmem:[#allocation3 + $0x30] sm:$0xff] %vm1362_vm0, %v5355_v34  ;;  %1490 = vst.msk [vmem:[#allocation3 + $0x38] sm:$0xff] %vm1362_vm0, %v5357_v57  ;;  %v1219_v26 = vmul.f32 %v5124_v52, %v1143_v42  ;;  %v1214_v63 = vmul.f32 %v5124_v52, %v1123_v39  ;;  %v1026_v3 = vmul.f32 %v5013_v22, %v6570_v62 }
 0x17f   : > { %vm1275_vm14 = vcmp.ge.f32.partialorder %v1243_v37, 0.0  ;;  %v1308_v24 = vmul.f32 %v5135_v55, %v1243_v37  ;;  %vm1277_vm15 = vcmp.ge.f32.partialorder %v1245_v9, 0.0  ;;  %v1310_v50 = vmul.f32 %v5135_v55, %v1245_v9 }
 0x180   : > { %v1251_v54 = vadd.f32 %v1219_v26, %v1055_v16  ;;  %v1246_v18 = vadd.f32 %v1214_v63, %v1050_v6  ;;  %v1057_v48 = vadd.f32 %v1025_v27, %v5234_v23  ;;  %v1060_v51 = vadd.f32 %v1028_v29, %v5259_v41 }
 0x181   : > { %v1340_v20 = vsel %vm1275_vm14, %v1243_v37, %v1308_v24  ;;  %v1342_v59 = vsel %vm1277_vm15, %v1245_v9, %v1310_v50  ;;  %v1151_v47 = vpop.permute.xlu1 %1150  ;;  %1776 = vrot.lane.b32.xlu0 %v2287_v5, %s4363_s19  ;;  %v1163_v61 = vpop.permute.xlu0 %1162  ;;  %v5385_v49 = vld [vmem:[#allocation2 + $0x60] sm:$0xff]  ;;  %v5387_v36 = vld [vmem:[#allocation2 + $0x68] sm:$0xff]  ;;  %v1019_v60 = vmul.f32 %v5013_v22, %v6571_v38  ;;  %v1052_v6 = vadd.f32 %v1020_v43, %v5210_v10  ;;  %v6574_v24 = vld [vmem:[#allocation27_spill] sm:$0xff] }
 0x182   : > { %1778 = vrot.lane.b32.xlu1 %v2288_v15, %s4363_s19  ;;  %1429 = vst.msk [vmem:[#allocation2 + $0x91] sm:$0xff] %vm1362_vm0, %v1340_v20  ;;  %1431 = vst.msk [vmem:[#allocation2 + $0xa9] sm:$0xff] %vm1362_vm0, %v1342_v59  ;;  %vm1283_vm1 = vcmp.ge.f32.partialorder %v1251_v54, 0.0  ;;  %v1316_v7 = vmul.f32 %v5135_v55, %v1251_v54  ;;  %vm1278_vm2 = vcmp.ge.f32.partialorder %v1246_v18, 0.0  ;;  %v1311_v14 = vmul.f32 %v5135_v55, %v1246_v18  ;;  %v6572_v37 = vld [vmem:[#allocation45_spill] sm:$0xff] }
 0x183   : > { %1491 = vst.msk [vmem:[#allocation3 + $0x40] sm:$0xff] %vm1362_vm0, %v5385_v49  ;;  %1492 = vst.msk [vmem:[#allocation3 + $0x48] sm:$0xff] %vm1362_vm0, %v5387_v36  ;;  %v1221_v17 = vmul.f32 %v5124_v52, %v1151_v47  ;;  %v1224_v15 = vmul.f32 %v5124_v52, %v1163_v61  ;;  %v1027_v23 = vmul.f32 %v5013_v22, %v6572_v37 }
 0x184   : > { %v1348_v30 = vsel %vm1283_vm1, %v1251_v54, %v1316_v7  ;;  %v1343_v40 = vsel %vm1278_vm2, %v1246_v18, %v1311_v14  ;;  %v5404_v5 = vld [vmem:[#allocation2 + $0x78] sm:$0xff]  ;;  %v5406_v16 = vld [vmem:[#allocation2 + $0x80] sm:$0xff]  ;;  %v1058_v39 = vadd.f32 %v1026_v3, %v5245_v0  ;;  %v1030_v27 = vmul.f32 %v5013_v22, %v6573_v31  ;;  %v6575_v54 = vld [vmem:[#allocation42_spill] sm:$0xff] }
 0x185   : > { %1437 = vst.msk [vmem:[#allocation2 + $0xf1] sm:$0xff] %vm1362_vm0, %v1348_v30  ;;  %1432 = vst.msk [vmem:[#allocation2 + $0xb1] sm:$0xff] %vm1362_vm0, %v1343_v40  ;;  %v1253_v41 = vadd.f32 %v1221_v17, %v1057_v48  ;;  %v1256_v9 = vadd.f32 %v1224_v15, %v1060_v51  ;;  %v1155_v42 = vpop.permute.xlu1 %1154  ;;  %2545 = vrot.lane.b32.xlu0 %v5336_v46, %s4367_s24  ;;  %v1131_v10 = vpop.permute.xlu0 %1130  ;;  %v5429_v50 = vmul.f32 %v4927_v21, %v6574_v24  ;;  %v6576_v51 = vld [vmem:[#allocation39_spill] sm:$0xff]  ;;  %vm1675_vm1 = vcmask 64544  }
 0x186   : > { %2547 = vrot.lane.b32.xlu1 %v5338_v2, %s4367_s24  ;;  %1493 = vst.msk [vmem:[#allocation3 + $0x50] sm:$0xff] %vm1362_vm0, %v5404_v5  ;;  %1494 = vst.msk [vmem:[#allocation3 + $0x58] sm:$0xff] %vm1362_vm0, %v5406_v16  ;;  %v1222_v8 = vmul.f32 %v5124_v52, %v1155_v42  ;;  %v1216_v29 = vmul.f32 %v5124_v52, %v1131_v10  ;;  %v1051_v12 = vadd.f32 %v1019_v60, %v5207_v11  ;;  %v6577_v15 = vld [vmem:[#allocation47_spill] sm:$0xff]  ;;  %v3092_v42 = vld [vmem:[%s6478_s3] sm:$0xff] }
 0x187   : > { %vm1285_vm3 = vcmp.ge.f32.partialorder %v1253_v41, 0.0  ;;  %v1318_v26 = vmul.f32 %v5135_v55, %v1253_v41  ;;  %vm1288_vm4 = vcmp.ge.f32.partialorder %v1256_v9, 0.0  ;;  %v1321_v63 = vmul.f32 %v5135_v55, %v1256_v9  ;;  %v2674_v30 = vld [vmem:[#allocation2 + $0x31] sm:$0xff]  ;;  %v5462_v40 = vld [vmem:[#allocation2 + $0x39] sm:$0xff] }
 0x188   : > { %v1254_v0 = vadd.f32 %v1222_v8, %v1058_v39  ;;  %v1248_v43 = vadd.f32 %v1216_v29, %v1052_v6  ;;  %v1022_v18 = vmul.f32 %v5013_v22, %v6575_v54  ;;  %v1021_v17 = vmul.f32 %v5013_v22, %v6576_v51 }
 0x189   : > { %v1350_v62 = vsel %vm1285_vm3, %v1253_v41, %v1318_v26  ;;  %v1353_v3 = vsel %vm1288_vm4, %v1256_v9, %v1321_v63  ;;  %v1159_v20 = vpop.permute.xlu1 %1158  ;;  %1969 = vrot.lane.b32.xlu0 %v5336_v46, %s4364_s21  ;;  %v1171_v59 = vpop.permute.xlu0 %1170  ;;  %v5438_v47 = vld [vmem:[#allocation2 + $0x90] sm:$0xff]  ;;  %v5440_v21 = vld [vmem:[#allocation2 + $0x98] sm:$0xff]  ;;  %v5446_v7 = vld [vmem:[#allocation2 + $0xa8] sm:$0xff]  ;;  %v1059_v46 = vadd.f32 %v1027_v23, %v5256_v53  ;;  %v1029_v38 = vmul.f32 %v5013_v22, %v6577_v15 }
 0x18a   : > { %1971 = vrot.lane.b32.xlu1 %v5338_v2, %s4364_s21  ;;  %1439 = vst.msk [vmem:[#allocation2 + $0x109] sm:$0xff] %vm1362_vm0, %v1350_v62  ;;  %1442 = vst.msk [vmem:[#allocation2 + $0x129] sm:$0xff] %vm1362_vm0, %v1353_v3  ;;  %vm1286_vm5 = vcmp.ge.f32.partialorder %v1254_v0, 0.0  ;;  %v1319_v11 = vmul.f32 %v5135_v55, %v1254_v0  ;;  %vm1280_vm6 = vcmp.ge.f32.partialorder %v1248_v43, 0.0  ;;  %v1313_v61 = vmul.f32 %v5135_v55, %v1248_v43 }
 0x18b   : > { %1495 = vst.msk [vmem:[#allocation3 + $0x60] sm:$0xff] %vm1362_vm0, %v5438_v47  ;;  %1496 = vst.msk [vmem:[#allocation3 + $0x68] sm:$0xff] %vm1362_vm0, %v5440_v21  ;;  %v1062_v2 = vadd.f32 %v1030_v27, %v5276_v1  ;;  %v1223_v14 = vmul.f32 %v5124_v52, %v1159_v20  ;;  %v1226_v48 = vmul.f32 %v5124_v52, %v1171_v59  ;;  %vm1868_vm4 = vcmask 97344  }
 0x18c   : > { %1497 = vst.msk [vmem:[#allocation3 + $0x70] sm:$0xff] %vm1362_vm0, %v5446_v7  ;;  %v1351_v60 = vsel %vm1286_vm5, %v1254_v0, %v1319_v11  ;;  %v1345_v6 = vsel %vm1280_vm6, %v1248_v43, %v1313_v61  ;;  %v5464_v53 = vld [vmem:[#allocation2 + $0xb0] sm:$0xff]  ;;  %v1054_v1 = vadd.f32 %v1022_v18, %v5223_v44  ;;  %v3093_v44 = vld [vmem:[%s6478_s3 + $0x8] sm:$0xff]  ;;  %v1032_v10 = vmul.f32 %v5013_v22, %v5143_v56  ;;  %v5490_v63 = vld [vmem:[#allocation2 + $0xf8] sm:$0xff] }
 0x18d   : > { %1440 = vst.msk [vmem:[#allocation2 + $0x111] sm:$0xff] %vm1362_vm0, %v1351_v60  ;;  %1434 = vst.msk [vmem:[#allocation2 + $0xc9] sm:$0xff] %vm1362_vm0, %v1345_v6  ;;  %v1255_v37 = vadd.f32 %v1223_v14, %v1059_v46  ;;  %v1258_v23 = vadd.f32 %v1226_v48, %v1062_v2  ;;  %v1127_v41 = vpop.permute.xlu1 %1126  ;;  %2738 = vrot.lane.b32.xlu0 %v2674_v30, %s4368_s4  ;;  %v1139_v9 = vpop.permute.xlu0 %1138  ;;  %v4218_v27 = vpack.c.bf16 %v3093_v44, %v3092_v42  ;;  %v5484_v8 = vld [vmem:[#allocation2 + $0xf0] sm:$0xff]  ;;  %v6578_v48 = vld [vmem:[#allocation49_spill] sm:$0xff] }
 0x18e   : > { %2740 = vrot.lane.b32.xlu1 %v5462_v40, %s4368_s4  ;;  %1498 = vst.msk [vmem:[#allocation3 + $0x78] sm:$0xff] %vm1362_vm0, %v5464_v53  ;;  %v1215_v39 = vmul.f32 %v5124_v52, %v1127_v41  ;;  %v1218_v31 = vmul.f32 %v5124_v52, %v1139_v9  ;;  %1503 = vst.msk [vmem:[#allocation3 + $0xa0] sm:$0xff] %vm1362_vm0, %v5484_v8  ;;  %v1061_v56 = vadd.f32 %v1029_v38, %v5273_v4  ;;  %v3094_v4 = vld [vmem:[%s6478_s3 + $0x10] sm:$0xff] }
 0x18f   : > { %vm1287_vm7 = vcmp.ge.f32.partialorder %v1255_v37, 0.0  ;;  %v1320_v29 = vmul.f32 %v5135_v55, %v1255_v37  ;;  %vm1290_vm8 = vcmp.ge.f32.partialorder %v1258_v23, 0.0  ;;  %v1323_v26 = vmul.f32 %v5135_v55, %v1258_v23  ;;  %4219 = vmatprep.subr.bf16.mxu0 %v4218_v27  ;;  %1504 = vst.msk [vmem:[#allocation3 + $0xa8] sm:$0xff] %vm1362_vm0, %v5490_v63  ;;  %4226 = vmatprep.subr.bf16.mxu1 %v4218_v27  ;;  %v5519_v60 = vld [vmem:[#allocation2 + $0x32] sm:$0xff] }
 0x190   : > { %v1247_v24 = vadd.f32 %v1215_v39, %v1051_v12  ;;  %v1250_v0 = vadd.f32 %v1218_v31, %v1054_v1  ;;  %v1034_v43 = vmul.f32 %v5013_v22, %v5171_v32  ;;  %v3095_v12 = vld [vmem:[%s6478_s3 + $0x18] sm:$0xff]  ;;  %4221 = vmatpush3.bf16.msra.mxu0 %v4218_v27  ;;  %4229 = vmatpush3.bf16.msra.mxu1 %v4218_v27 }
 0x191   : > { %v1352_v54 = vsel %vm1287_vm7, %v1255_v37, %v1320_v29  ;;  %v1355_v18 = vsel %vm1290_vm8, %v1258_v23, %v1323_v26  ;;  %v1167_v62 = vpop.permute.xlu1 %1166  ;;  %2162 = vrot.lane.b32.xlu0 %v2674_v30, %s4365_s22  ;;  %v1179_v3 = vpop.permute.xlu0 %1178  ;;  %v5505_v20 = vld [vmem:[#allocation2 + $0x108] sm:$0xff]  ;;  %v1064_v11 = vadd.f32 %v1032_v10, %v5328_v28  ;;  %v4222_v2 = vpack.c.bf16 %v3095_v12, %v3094_v4 }
 0x192   : > { %1587 = vrot.lane.b32.xlu1 %v2674_v30, %s4362_s18  ;;  %1441 = vst.msk [vmem:[#allocation2 + $0x121] sm:$0xff] %vm1362_vm0, %v1352_v54  ;;  %1444 = vst.msk [vmem:[#allocation2 + $0x141] sm:$0xff] %vm1362_vm0, %v1355_v18  ;;  %vm1279_vm9 = vcmp.ge.f32.partialorder %v1247_v24, 0.0  ;;  %v1312_v32 = vmul.f32 %v5135_v55, %v1247_v24  ;;  %vm1282_vm10 = vcmp.ge.f32.partialorder %v1250_v0, 0.0  ;;  %v1315_v59 = vmul.f32 %v5135_v55, %v1250_v0  ;;  %v2868_v54 = vld [vmem:[#allocation2 + $0x3a] sm:$0xff] }
 0x193   : > { %1505 = vst.msk [vmem:[#allocation3 + $0xb0] sm:$0xff] %vm1362_vm0, %v5505_v20  ;;  %v1225_v61 = vmul.f32 %v5124_v52, %v1167_v62  ;;  %v1228_v46 = vmul.f32 %v5124_v52, %v1179_v3  ;;  %v1053_v14 = vadd.f32 %v1021_v17, %v5220_v45  ;;  %v1031_v51 = vmul.f32 %v5013_v22, %v6578_v48  ;;  %v3096_v17 = vld [vmem:[%s6478_s3 + $0x20] sm:$0xf] }
 0x194   : > { %v1344_v15 = vsel %vm1279_vm9, %v1247_v24, %v1312_v32  ;;  %v1347_v38 = vsel %vm1282_vm10, %v1250_v0, %v1315_v59  ;;  %v5521_v6 = vld [vmem:[#allocation2 + $0x110] sm:$0xff]  ;;  %v1066_v30 = vadd.f32 %v1034_v43, %v5377_v25  ;;  %v1036_v25 = vmul.f32 %v5013_v22, %v5204_v58  ;;  %4223 = vmatprep.subr.bf16.mxu0 %v4222_v2 }
 0x195   : > { %1433 = vst.msk [vmem:[#allocation2 + $0xc1] sm:$0xff] %vm1362_vm0, %v1344_v15  ;;  %1436 = vst.msk [vmem:[#allocation2 + $0xe1] sm:$0xff] %vm1362_vm0, %v1347_v38  ;;  %v1257_v28 = vadd.f32 %v1225_v61, %v1061_v56  ;;  %v1260_v1 = vadd.f32 %v1228_v46, %v1064_v11  ;;  %v1135_v37 = vpop.permute.xlu1 %1134  ;;  %2931 = vrot.lane.b32.xlu0 %v5519_v60, %s4369_s20  ;;  %v1187_v45 = vpop.permute.xlu0 %1186  ;;  %4227 = vmatprep.subr.bf16.mxu1 %v4222_v2  ;;  %vm2061_vm7 = vcmask 130144   ;;  %vm2254_vm8 = vcmask 162944  }
 0x196   : > { %2355 = vrot.lane.b32.xlu1 %v5519_v60, %s4366_s23  ;;  %1506 = vst.msk [vmem:[#allocation3 + $0xb8] sm:$0xff] %vm1362_vm0, %v5521_v6  ;;  %v1217_v23 = vmul.f32 %v5124_v52, %v1135_v37  ;;  %v1230_v41 = vmul.f32 %v5124_v52, %v1187_v45  ;;  %4225 = vmatpush3.bf16.msra.mxu0 %v4222_v2  ;;  %vm2447_vm9 = vcmask 195744   ;;  %vm2641_vm10 = vcmask 228544  }
 0x197   : > { %vm1289_vm12 = vcmp.ge.f32.partialorder %v1257_v28, 0.0  ;;  %v1322_v9 = vmul.f32 %v5135_v55, %v1257_v28  ;;  %vm1292_vm13 = vcmp.ge.f32.partialorder %v1260_v1, 0.0  ;;  %v1325_v42 = vmul.f32 %v5135_v55, %v1260_v1  ;;  %4230 = vmatpush3.bf16.msra.mxu1 %v4222_v2  ;;  %4154 = vmatprep.subr.msk.mxu0 %vm3194_vm11, %v3096_v17 }
 0x198   : > { %v872_v44 = vadd.f32 %v5429_v50, %v5117_v33  ;;  %v1249_v10 = vadd.f32 %v1217_v23, %v1053_v14  ;;  %v1262_v39 = vadd.f32 %v1230_v41, %v1066_v30  ;;  %4228 = vmatprep.subr.msk.mxu1 %vm3194_vm11, %v3096_v17  ;;  %v1063_v22 = vadd.f32 %v1031_v51, %v5310_v35  ;;  %v2676_v41 = vld [vmem:[#allocation2 + $0x49] sm:$0xff] }
 0x199   : > { %v1354_v58 = vsel %vm1289_vm12, %v1257_v28, %v1322_v9  ;;  %v1357_v31 = vsel %vm1292_vm13, %v1260_v1, %v1325_v42  ;;  %v1175_v27 = vpop.permute.xlu1 %1174  ;;  %2164 = vrot.lane.b32.xlu0 %v5462_v40, %s4365_s22  ;;  %v1195_v29 = vpop.permute.xlu0 %1194  ;;  %v5550_v26 = vld [vmem:[#allocation2 + $0x120] sm:$0xff]  ;;  %v5552_v33 = vld [vmem:[#allocation2 + $0x128] sm:$0xff]  ;;  %v2870_v42 = vld [vmem:[#allocation2 + $0x52] sm:$0xff]  ;;  %vm3027_vm12 = vcmask 294144   ;;  %vm3097_vm13 = vcmask 293888  }
 0x19a   : > { %1589 = vrot.lane.b32.xlu1 %v5462_v40, %s4362_s18  ;;  %1443 = vst.msk [vmem:[#allocation2 + $0x139] sm:$0xff] %vm1362_vm0, %v1354_v58  ;;  %1446 = vst.msk [vmem:[#allocation2 + $0x159] sm:$0xff] %vm1362_vm0, %v1357_v31  ;;  %vm1281_vm14 = vcmp.ge.f32.partialorder %v1249_v10, 0.0  ;;  %v1314_v35 = vmul.f32 %v5135_v55, %v1249_v10  ;;  %vm1294_vm15 = vcmp.ge.f32.partialorder %v1262_v39, 0.0  ;;  %v1327_v50 = vmul.f32 %v5135_v55, %v1262_v39 }
 0x19b   : > { %1507 = vst.msk [vmem:[#allocation3 + $0xc0] sm:$0xff] %vm1362_vm0, %v5550_v26  ;;  %1508 = vst.msk [vmem:[#allocation3 + $0xc8] sm:$0xff] %vm1362_vm0, %v5552_v33  ;;  %v1068_v40 = vadd.f32 %v1036_v25, %v872_v44  ;;  %v1227_v56 = vmul.f32 %v5124_v52, %v1175_v27  ;;  %v1232_v24 = vmul.f32 %v5124_v52, %v1195_v29  ;;  %4155 = vmatpush3.msk.msra.mxu0 %vm3194_vm11, %v3096_v17  ;;  %v2678_v44 = vld [vmem:[#allocation2 + $0x61] sm:$0xff] }
 0x19c   : > { %4231 = vmatpush3.msk.msra.mxu1 %vm3194_vm11, %v3096_v17  ;;  %v1346_v0 = vsel %vm1281_vm14, %v1249_v10, %v1314_v35  ;;  %v1359_v43 = vsel %vm1294_vm15, %v1262_v39, %v1327_v50  ;;  %v5566_v18 = vld [vmem:[#allocation2 + $0xc0] sm:$0xff]  ;;  %v5568_v62 = vld [vmem:[#allocation2 + $0xc8] sm:$0xff]  ;;  %vm2834_vm11 = vcmask 261344  }
 0x19d   : > { %1435 = vst.msk [vmem:[#allocation2 + $0xd9] sm:$0xff] %vm1362_vm0, %v1346_v0  ;;  %1448 = vst.msk [vmem:[#allocation2 + $0x171] sm:$0xff] %vm1362_vm0, %v1359_v43  ;;  %v1259_v3 = vadd.f32 %v1227_v56, %v1063_v22  ;;  %v1264_v4 = vadd.f32 %v1232_v24, %v1068_v40  ;;  %v1183_v12 = vpop.permute.xlu1 %1182  ;;  %2933 = vrot.lane.b32.xlu0 %v2868_v54, %s4369_s20  ;;  %v1582_v32 = vpop.permute.xlu0 %1581  ;;  %v2679_v10 = vld [vmem:[#allocation2 + $0x69] sm:$0xff]  ;;  %v2680_v35 = vld [vmem:[#allocation2 + $0x79] sm:$0xff] }
 0x19e   : > { %2357 = vrot.lane.b32.xlu1 %v2868_v54, %s4366_s23  ;;  %1499 = vst.msk [vmem:[#allocation3 + $0x80] sm:$0xff] %vm1362_vm0, %v5566_v18  ;;  %1500 = vst.msk [vmem:[#allocation3 + $0x88] sm:$0xff] %vm1362_vm0, %v5568_v62  ;;  %v1229_v59 = vmul.f32 %v5124_v52, %v1183_v12  ;;  %v2871_v39 = vld [vmem:[#allocation2 + $0x62] sm:$0xff]  ;;  %v2873_v24 = vld [vmem:[#allocation2 + $0x7a] sm:$0xff] }
 0x19f   : > { %1677 = vst.msk [vmem:[#allocation3 + $0x8] sm:$0xff] %vm1675_vm1, %v1582_v32  ;;  %vm1291_vm2 = vcmp.ge.f32.partialorder %v1259_v3, 0.0  ;;  %v1324_v11 = vmul.f32 %v5135_v55, %v1259_v3  ;;  %vm1296_vm3 = vcmp.ge.f32.partialorder %v1264_v4, 0.0  ;;  %v1329_v61 = vmul.f32 %v5135_v55, %v1264_v4  ;;  %v2681_v50 = vld [vmem:[#allocation2 + $0x81] sm:$0xff] }
 0x1a0   : > { %v1261_v46 = vadd.f32 %v1229_v59, %v5132_v13  ;;  %v1535_v59 = vld [vmem:[#allocation2 + $0xf1] sm:$0xff] }
 0x1a1   : > { %v1356_v2 = vsel %vm1291_vm2, %v1259_v3, %v1324_v11  ;;  %v1361_v14 = vsel %vm1296_vm3, %v1264_v4, %v1329_v61  ;;  %v1191_v48 = vpop.permute.xlu1 %1190  ;;  %1780 = vrot.lane.b32.xlu0 %v5519_v60, %s4363_s19  ;;  %v1775_v51 = vpop.permute.xlu0 %1774  ;;  %v5586_v15 = vld [vmem:[#allocation2 + $0x138] sm:$0xff]  ;;  %v5588_v38 = vld [vmem:[#allocation2 + $0x140] sm:$0xff] }
 0x1a2   : > { %1782 = vrot.lane.b32.xlu1 %v2868_v54, %s4363_s19  ;;  %1445 = vst.msk [vmem:[#allocation2 + $0x151] sm:$0xff] %vm1362_vm0, %v1356_v2  ;;  %1450 = vst.msk [vmem:[#allocation2 + $0x189] sm:$0xff] %vm1362_vm0, %v1361_v14  ;;  %vm1293_vm5 = vcmp.ge.f32.partialorder %v1261_v46, 0.0  ;;  %v1326_v13 = vmul.f32 %v5135_v55, %v1261_v46  ;;  %v1231_v30 = vmul.f32 %v5124_v52, %v1191_v48  ;;  %v2874_v4 = vld [vmem:[#allocation2 + $0x82] sm:$0xff]  ;;  %v2682_v14 = vld [vmem:[#allocation2 + $0x91] sm:$0xff] }
 0x1a3   : > { %1870 = vst.msk [vmem:[#allocation3 + $0x8] sm:$0xff] %vm1868_vm4, %v1775_v51 }
 0x1a4   : > { %1509 = vst.msk [vmem:[#allocation3 + $0xd0] sm:$0xff] %vm1362_vm0, %v5586_v15  ;;  %1510 = vst.msk [vmem:[#allocation3 + $0xd8] sm:$0xff] %vm1362_vm0, %v5588_v38  ;;  %v1358_v60 = vsel %vm1293_vm5, %v1261_v46, %v1326_v13  ;;  %v1263_v28 = vadd.f32 %v1231_v30, %v5161_v19  ;;  %v5600_v1 = vld [vmem:[#allocation2 + $0xd8] sm:$0xff]  ;;  %v5602_v37 = vld [vmem:[#allocation2 + $0xe0] sm:$0xff] }
 0x1a5   : > { %1447 = vst.msk [vmem:[#allocation2 + $0x169] sm:$0xff] %vm1362_vm0, %v1358_v60  ;;  %2549 = vrot.lane.b32.xlu0 %v5355_v34, %s4367_s24  ;;  %v1580_v52 = vpop.permute.xlu1 %1579  ;;  %1501 = vst.msk [vmem:[#allocation3 + $0x90] sm:$0xff] %vm1362_vm0, %v5600_v1  ;;  %v1728_v13 = vld [vmem:[#allocation2 + $0xf2] sm:$0xff] }
 0x1a6   : > { %2551 = vrot.lane.b32.xlu1 %v5357_v57, %s4367_s24  ;;  %1502 = vst.msk [vmem:[#allocation3 + $0x98] sm:$0xff] %vm1362_vm0, %v5602_v37  ;;  %vm1295_vm6 = vcmp.ge.f32.partialorder %v1263_v28, 0.0  ;;  %v1328_v19 = vmul.f32 %v5135_v55, %v1263_v28  ;;  %v2677_v55 = vld [vmem:[#allocation2 + $0x51] sm:$0xff] }
 0x1a7   : > { %1676 = vst.msk [vmem:[#allocation3] sm:$0xff] %vm1675_vm1, %v1580_v52 }
 0x1a8   : > { %v1360_v45 = vsel %vm1295_vm6, %v1263_v28, %v1328_v19  ;;  %v1536_v28 = vld [vmem:[#allocation2 + $0xf9] sm:$0xff] }
 0x1a9   : > { %1449 = vst.msk [vmem:[#allocation2 + $0x181] sm:$0xff] %vm1362_vm0, %v1360_v45  ;;  %1973 = vrot.lane.b32.xlu0 %v5355_v34, %s4364_s21  ;;  %v1773_v17 = vpop.permute.xlu1 %1772  ;;  %v5620_v25 = vld [vmem:[#allocation2 + $0x150] sm:$0xff]  ;;  %v5622_v23 = vld [vmem:[#allocation2 + $0x158] sm:$0xff] }
 0x1aa   : > { %1975 = vrot.lane.b32.xlu1 %v5357_v57, %s4364_s21  ;;  %1869 = vst.msk [vmem:[#allocation3] sm:$0xff] %vm1868_vm4, %v1773_v17  ;;  %v2869_v57 = vld [vmem:[#allocation2 + $0x4a] sm:$0xff]  ;;  %v2875_v45 = vld [vmem:[#allocation2 + $0x92] sm:$0xff] }
 0x1ab   : > { %1511 = vst.msk [vmem:[#allocation3 + $0xe0] sm:$0xff] %vm1362_vm0, %v5620_v25  ;;  %1512 = vst.msk [vmem:[#allocation3 + $0xe8] sm:$0xff] %vm1362_vm0, %v5622_v23 }
 0x1ac   : > { %v5629_v9 = vld [vmem:[#allocation2 + $0x168] sm:$0xff]  ;;  %v5631_v34 = vld [vmem:[#allocation2 + $0x170] sm:$0xff] }
 0x1ad   : > { %2742 = vrot.lane.b32.xlu0 %v2676_v41, %s4368_s4  ;;  %1513 = vst.msk [vmem:[#allocation3 + $0xf0] sm:$0xff] %vm1362_vm0, %v5629_v9  ;;  %1514 = vst.msk [vmem:[#allocation3 + $0xf8] sm:$0xff] %vm1362_vm0, %v5631_v34 }
 0x1ae   : > { %2744 = vrot.lane.b32.xlu1 %v2677_v55, %s4368_s4 }
 0x1b1   : > { %2166 = vrot.lane.b32.xlu0 %v2676_v41, %s4365_s22 }
 0x1b2   : > { %1591 = vrot.lane.b32.xlu1 %v2676_v41, %s4362_s18 }
 0x1b5   : > { %2935 = vrot.lane.b32.xlu0 %v2869_v57, %s4369_s20 }
 0x1b6   : > { %2359 = vrot.lane.b32.xlu1 %v2869_v57, %s4366_s23 }
 0x1b9   : > { %2168 = vrot.lane.b32.xlu0 %v2677_v55, %s4365_s22 }
 0x1ba   : > { %1593 = vrot.lane.b32.xlu1 %v2677_v55, %s4362_s18 }
 0x1bd   : > { %2937 = vrot.lane.b32.xlu0 %v2870_v42, %s4369_s20 }
 0x1be   : > { %2361 = vrot.lane.b32.xlu1 %v2870_v42, %s4366_s23 }
 0x1c1   : > { %1784 = vrot.lane.b32.xlu0 %v2869_v57, %s4363_s19  ;;  %v1729_v57 = vld [vmem:[#allocation2 + $0xfa] sm:$0xff] }
 0x1c2   : > { %1786 = vrot.lane.b32.xlu1 %v2870_v42, %s4363_s19  ;;  %v2683_v42 = vld [vmem:[#allocation2 + $0x99] sm:$0xff] }
 0x1c5   : > { %2553 = vrot.lane.b32.xlu0 %v5385_v49, %s4367_s24 }
 0x1c6   : > { %2555 = vrot.lane.b32.xlu1 %v5387_v36, %s4367_s24 }
 0x1c9   : > { %1977 = vrot.lane.b32.xlu0 %v5385_v49, %s4364_s21  ;;  %v2872_v49 = vld [vmem:[#allocation2 + $0x6a] sm:$0xff] }
 0x1ca   : > { %1979 = vrot.lane.b32.xlu1 %v5387_v36, %s4364_s21 }
 0x1cd   : > { %2746 = vrot.lane.b32.xlu0 %v2678_v44, %s4368_s4 }
 0x1ce   : > { %2748 = vrot.lane.b32.xlu1 %v2679_v10, %s4368_s4 }
 0x1d1   : > { %2170 = vrot.lane.b32.xlu0 %v2678_v44, %s4365_s22 }
 0x1d2   : > { %1595 = vrot.lane.b32.xlu1 %v2678_v44, %s4362_s18 }
 0x1d5   : > { %2939 = vrot.lane.b32.xlu0 %v2871_v39, %s4369_s20 }
 0x1d6   : > { %2363 = vrot.lane.b32.xlu1 %v2871_v39, %s4366_s23 }
 0x1d9   : > { %2172 = vrot.lane.b32.xlu0 %v2679_v10, %s4365_s22 }
 0x1da   : > { %1597 = vrot.lane.b32.xlu1 %v2679_v10, %s4362_s18 }
 0x1dd   : > { %2941 = vrot.lane.b32.xlu0 %v2872_v49, %s4369_s20 }
 0x1de   : > { %2365 = vrot.lane.b32.xlu1 %v2872_v49, %s4366_s23 }
 0x1df   : > { %v1966_v36 = vpop.permute.xlu1 %1965 }
 0x1e0   : > { %2062 = vst.msk [vmem:[#allocation3] sm:$0xff] %vm2061_vm7, %v1966_v36 }
 0x1e1   : > { %1788 = vrot.lane.b32.xlu0 %v2871_v39, %s4363_s19 }
 0x1e2   : > { %1790 = vrot.lane.b32.xlu1 %v2872_v49, %s4363_s19  ;;  %v2876_v49 = vld [vmem:[#allocation2 + $0x9a] sm:$0xff] }
 0x1e3   : > { %v2159_v22 = vpop.permute.xlu1 %2158 }
 0x1e4   : > { %2255 = vst.msk [vmem:[#allocation3] sm:$0xff] %vm2254_vm8, %v2159_v22 }
 0x1e5   : > { %2557 = vrot.lane.b32.xlu0 %v5404_v5, %s4367_s24 }
 0x1e6   : > { %2559 = vrot.lane.b32.xlu1 %v5406_v16, %s4367_s24 }
 0x1e7   : > { %v1968_v31 = vpop.permute.xlu0 %1967 }
 0x1e8   : > { %v2161_v58 = vpop.permute.xlu1 %2160  ;;  %2063 = vst.msk [vmem:[#allocation3 + $0x8] sm:$0xff] %vm2061_vm7, %v1968_v31 }
 0x1e9   : > { %2256 = vst.msk [vmem:[#allocation3 + $0x8] sm:$0xff] %vm2254_vm8, %v2161_v58  ;;  %1981 = vrot.lane.b32.xlu0 %v5404_v5, %s4364_s21 }
 0x1ea   : > { %1983 = vrot.lane.b32.xlu1 %v5406_v16, %s4364_s21 }
 0x1eb   : > { %v1584_v29 = vpop.permute.xlu0 %1583 }
 0x1ec   : > { %v1586_v27 = vpop.permute.xlu1 %1585  ;;  %1678 = vst.msk [vmem:[#allocation3 + $0x10] sm:$0xff] %vm1675_vm1, %v1584_v29 }
 0x1ed   : > { %1679 = vst.msk [vmem:[#allocation3 + $0x18] sm:$0xff] %vm1675_vm1, %v1586_v27  ;;  %2750 = vrot.lane.b32.xlu0 %v2680_v35, %s4368_s4  ;;  %v2114_v27 = vld [vmem:[#allocation2 + $0x109] sm:$0xff] }
 0x1ee   : > { %2752 = vrot.lane.b32.xlu1 %v2681_v50, %s4368_s4 }
 0x1ef   : > { %v2352_v56 = vpop.permute.xlu0 %2351 }
 0x1f0   : > { %v2354_v40 = vpop.permute.xlu1 %2353  ;;  %2448 = vst.msk [vmem:[#allocation3] sm:$0xff] %vm2447_vm9, %v2352_v56 }
 0x1f1   : > { %2449 = vst.msk [vmem:[#allocation3 + $0x8] sm:$0xff] %vm2447_vm9, %v2354_v40  ;;  %2174 = vrot.lane.b32.xlu0 %v2680_v35, %s4365_s22 }
 0x1f2   : > { %1599 = vrot.lane.b32.xlu1 %v2680_v35, %s4362_s18 }
 0x1f3   : > { %v1777_v16 = vpop.permute.xlu0 %1776 }
 0x1f4   : > { %v1779_v5 = vpop.permute.xlu1 %1778  ;;  %1871 = vst.msk [vmem:[#allocation3 + $0x10] sm:$0xff] %vm1868_vm4, %v1777_v16 }
 0x1f5   : > { %1872 = vst.msk [vmem:[#allocation3 + $0x18] sm:$0xff] %vm1868_vm4, %v1779_v5  ;;  %2943 = vrot.lane.b32.xlu0 %v2873_v24, %s4369_s20 }
 0x1f6   : > { %2367 = vrot.lane.b32.xlu1 %v2873_v24, %s4366_s23 }
 0x1f7   : > { %v2546_v43 = vpop.permute.xlu0 %2545 }
 0x1f8   : > { %v2548_v0 = vpop.permute.xlu1 %2547  ;;  %2642 = vst.msk [vmem:[#allocation3] sm:$0xff] %vm2641_vm10, %v2546_v43 }
 0x1f9   : > { %2643 = vst.msk [vmem:[#allocation3 + $0x8] sm:$0xff] %vm2641_vm10, %v2548_v0  ;;  %2176 = vrot.lane.b32.xlu0 %v2681_v50, %s4365_s22 }
 0x1fa   : > { %1601 = vrot.lane.b32.xlu1 %v2681_v50, %s4362_s18 }
 0x1fb   : > { %v1970_v3 = vpop.permute.xlu0 %1969 }
 0x1fc   : > { %v1972_v54 = vpop.permute.xlu1 %1971  ;;  %2064 = vst.msk [vmem:[#allocation3 + $0x10] sm:$0xff] %vm2061_vm7, %v1970_v3  ;;  %v2307_v3 = vld [vmem:[#allocation2 + $0x10a] sm:$0xff] }
 0x1fd   : > { %2065 = vst.msk [vmem:[#allocation3 + $0x18] sm:$0xff] %vm2061_vm7, %v1972_v54  ;;  %2945 = vrot.lane.b32.xlu0 %v2874_v4, %s4369_s20 }
 0x1fe   : > { %2369 = vrot.lane.b32.xlu1 %v2874_v4, %s4366_s23 }
 0x1ff   : > { %v2739_v32 = vpop.permute.xlu0 %2738 }
 0x200   : > { %v2741_v12 = vpop.permute.xlu1 %2740  ;;  %2835 = vst.msk [vmem:[#allocation3] sm:$0xff] %vm2834_vm11, %v2739_v32  ;;  %v2684_v32 = vld [vmem:[#allocation2 + $0xa9] sm:$0xff] }
 0x201   : > { %2836 = vst.msk [vmem:[#allocation3 + $0x8] sm:$0xff] %vm2834_vm11, %v2741_v12  ;;  %1792 = vrot.lane.b32.xlu0 %v2873_v24, %s4363_s19 }
 0x202   : > { %1619 = vrot.lane.b32.xlu1 %v1535_v59, %s4362_s18 }
 0x203   : > { %v2163_v61 = vpop.permute.xlu0 %2162 }
 0x204   : > { %v1588_v11 = vpop.permute.xlu1 %1587  ;;  %2257 = vst.msk [vmem:[#allocation3 + $0x10] sm:$0xff] %vm2254_vm8, %v2163_v61 }
 0x205   : > { %1680 = vst.msk [vmem:[#allocation3 + $0x20] sm:$0xff] %vm1675_vm1, %v1588_v11  ;;  %2561 = vrot.lane.b32.xlu0 %v5438_v47, %s4367_s24  ;;  %v2308_v11 = vld [vmem:[#allocation2 + $0x112] sm:$0xff] }
 0x206   : > { %1985 = vrot.lane.b32.xlu1 %v5438_v47, %s4364_s21 }
 0x207   : > { %v2932_v2 = vpop.permute.xlu0 %2931 }
 0x208   : > { %v2356_v46 = vpop.permute.xlu1 %2355  ;;  %3028 = vst.msk [vmem:[#allocation3] sm:$0xff] %vm3027_vm12, %v2932_v2 }
 0x209   : > { %2450 = vst.msk [vmem:[#allocation3 + $0x10] sm:$0xff] %vm2447_vm9, %v2356_v46  ;;  %1794 = vrot.lane.b32.xlu0 %v2874_v4, %s4363_s19 }
 0x20a   : > { %2754 = vrot.lane.b32.xlu1 %v2682_v14, %s4368_s4 }
 0x20b   : > { %v2165_v51 = vpop.permute.xlu0 %2164 }
 0x20c   : > { %v1590_v48 = vpop.permute.xlu1 %1589  ;;  %2258 = vst.msk [vmem:[#allocation3 + $0x18] sm:$0xff] %vm2254_vm8, %v2165_v51 }
 0x20d   : > { %1681 = vst.msk [vmem:[#allocation3 + $0x28] sm:$0xff] %vm1675_vm1, %v1590_v48  ;;  %2563 = vrot.lane.b32.xlu0 %v5440_v21, %s4367_s24 }
 0x20e   : > { %1812 = vrot.lane.b32.xlu1 %v1728_v13, %s4363_s19 }
 0x20f   : > { %v2934_v30 = vpop.permute.xlu0 %2933  ;;  %v3060_v60 = vld [vmem:[#allocation3] sm:$0xff] }
 0x210   : > { %v2358_v47 = vpop.permute.xlu1 %2357  ;;  %3029 = vst.msk [vmem:[#allocation3 + $0x8] sm:$0xff] %vm3027_vm12, %v2934_v30  ;;  %4156 = vmatprep.mubr.msk.f32.mxu0 %vm3097_vm13, %v3060_v60 }
 0x211   : > { %2451 = vst.msk [vmem:[#allocation3 + $0x18] sm:$0xff] %vm2447_vm9, %v2358_v47  ;;  %1621 = vrot.lane.b32.xlu0 %v1536_v28, %s4362_s18  ;;  %v2877_v47 = vld [vmem:[#allocation2 + $0xaa] sm:$0xff] }
 0x212   : > { %2178 = vrot.lane.b32.xlu1 %v2682_v14, %s4365_s22 }
 0x213   : > { %v1781_v19 = vpop.permute.xlu0 %1780 }
 0x214   : > { %v1783_v52 = vpop.permute.xlu1 %1782  ;;  %1873 = vst.msk [vmem:[#allocation3 + $0x20] sm:$0xff] %vm1868_vm4, %v1781_v19 }
 0x215   : > { %1874 = vst.msk [vmem:[#allocation3 + $0x28] sm:$0xff] %vm1868_vm4, %v1783_v52  ;;  %1987 = vrot.lane.b32.xlu0 %v5440_v21, %s4364_s21 }
 0x216   : > { %2947 = vrot.lane.b32.xlu1 %v2875_v45, %s4369_s20 }
 0x217   : > { %v2550_v55 = vpop.permute.xlu0 %2549  ;;  %v3061_v41 = vld [vmem:[#allocation3 + $0x8] sm:$0xff] }
 0x218   : > { %v2552_v17 = vpop.permute.xlu1 %2551  ;;  %2644 = vst.msk [vmem:[#allocation3 + $0x10] sm:$0xff] %vm2641_vm10, %v2550_v55  ;;  %4157 = vmatmul.mubr.msk.f32.vlgmr.msra.gmra.mrb[0].mxu0 %vm3097_vm13, %v3061_v41 }
 0x219   : > { %2645 = vst.msk [vmem:[#allocation3 + $0x18] sm:$0xff] %vm2641_vm10, %v2552_v17  ;;  %2756 = vrot.lane.b32.xlu0 %v2683_v42, %s4368_s4 }
 0x21a   : > { %1814 = vrot.lane.b32.xlu1 %v1729_v57, %s4363_s19  ;;  %v2878_v57 = vld [vmem:[#allocation2 + $0xb2] sm:$0xff] }
 0x21b   : > { %v1974_v10 = vpop.permute.xlu0 %1973 }
 0x21c   : > { %v1976_v44 = vpop.permute.xlu1 %1975  ;;  %2066 = vst.msk [vmem:[#allocation3 + $0x20] sm:$0xff] %vm2061_vm7, %v1974_v10 }
 0x21d   : > { %2067 = vst.msk [vmem:[#allocation3 + $0x28] sm:$0xff] %vm2061_vm7, %v1976_v44  ;;  %1603 = vrot.lane.b32.xlu0 %v2682_v14, %s4362_s18 }
 0x21e   : > { %2180 = vrot.lane.b32.xlu1 %v2683_v42, %s4365_s22 }
 0x21f   : > { %v2743_v39 = vpop.permute.xlu0 %2742 }
 0x220   : > { %v2745_v21 = vpop.permute.xlu1 %2744  ;;  %2837 = vst.msk [vmem:[#allocation3 + $0x10] sm:$0xff] %vm2834_vm11, %v2743_v39  ;;  %v2695_v39 = vld [vmem:[#allocation2 + $0x129] sm:$0xff] }
 0x221   : > { %2838 = vst.msk [vmem:[#allocation3 + $0x18] sm:$0xff] %vm2834_vm11, %v2745_v21  ;;  %2005 = vrot.lane.b32.xlu0 %v5505_v20, %s4364_s21 }
 0x222   : > { %2949 = vrot.lane.b32.xlu1 %v2876_v49, %s4369_s20 }
 0x223   : > { %v2167_v22 = vpop.permute.xlu0 %2166 }
 0x224   : > { %v1592_v36 = vpop.permute.xlu1 %1591  ;;  %2259 = vst.msk [vmem:[#allocation3 + $0x20] sm:$0xff] %vm2254_vm8, %v2167_v22 }
 0x225   : > { %1682 = vst.msk [vmem:[#allocation3 + $0x30] sm:$0xff] %vm1675_vm1, %v1592_v36  ;;  %2371 = vrot.lane.b32.xlu0 %v2875_v45, %s4366_s23 }
 0x226   : > { %1796 = vrot.lane.b32.xlu1 %v2875_v45, %s4363_s19 }
 0x227   : > { %v2936_v31 = vpop.permute.xlu0 %2935 }
 0x228   : > { %v2360_v58 = vpop.permute.xlu1 %2359  ;;  %3030 = vst.msk [vmem:[#allocation3 + $0x10] sm:$0xff] %vm3027_vm12, %v2936_v31  ;;  %v2887_v31 = vld [vmem:[#allocation2 + $0x122] sm:$0xff] }
 0x229   : > { %2452 = vst.msk [vmem:[#allocation3 + $0x20] sm:$0xff] %vm2447_vm9, %v2360_v58  ;;  %1605 = vrot.lane.b32.xlu0 %v2683_v42, %s4362_s18 }
 0x22a   : > { %2198 = vrot.lane.b32.xlu1 %v2114_v27, %s4365_s22 }
 0x22b   : > { %v2169_v29 = vpop.permute.xlu0 %2168 }
 0x22c   : > { %v1594_v20 = vpop.permute.xlu1 %1593  ;;  %2260 = vst.msk [vmem:[#allocation3 + $0x28] sm:$0xff] %vm2254_vm8, %v2169_v29 }
 0x22d   : > { %1683 = vst.msk [vmem:[#allocation3 + $0x38] sm:$0xff] %vm1675_vm1, %v1594_v20  ;;  %2007 = vrot.lane.b32.xlu0 %v5521_v6, %s4364_s21  ;;  %v2115_v6 = vld [vmem:[#allocation2 + $0x111] sm:$0xff] }
 0x22e   : > { %2565 = vrot.lane.b32.xlu1 %v5446_v7, %s4367_s24 }
 0x22f   : > { %v2938_v50 = vpop.permute.xlu0 %2937  ;;  %v3062_v40 = vld [vmem:[#allocation3 + $0x10] sm:$0xff] }
 0x230   : > { %v2362_v35 = vpop.permute.xlu1 %2361  ;;  %3031 = vst.msk [vmem:[#allocation3 + $0x18] sm:$0xff] %vm3027_vm12, %v2938_v50  ;;  %4159 = vmatprep.mubr.msk.f32.mxu0 %vm3097_vm13, %v3062_v40 }
 0x231   : > { %2453 = vst.msk [vmem:[#allocation3 + $0x28] sm:$0xff] %vm2447_vm9, %v2362_v35  ;;  %2373 = vrot.lane.b32.xlu0 %v2876_v49, %s4366_s23 }
 0x232   : > { %1798 = vrot.lane.b32.xlu1 %v2876_v49, %s4363_s19 }
 0x233   : > { %v1785_v5 = vpop.permute.xlu0 %1784 }
 0x234   : > { %v1787_v56 = vpop.permute.xlu1 %1786  ;;  %1875 = vst.msk [vmem:[#allocation3 + $0x30] sm:$0xff] %vm1868_vm4, %v1785_v5 }
 0x235   : > { %1876 = vst.msk [vmem:[#allocation3 + $0x38] sm:$0xff] %vm1868_vm4, %v1787_v56  ;;  %1623 = vrot.lane.b32.xlu0 %v2114_v27, %s4362_s18 }
 0x236   : > { %2200 = vrot.lane.b32.xlu1 %v2115_v6, %s4365_s22 }
 0x237   : > { %v2554_v24 = vpop.permute.xlu0 %2553  ;;  %v3063_v0 = vld [vmem:[#allocation3 + $0x18] sm:$0xff] }
 0x238   : > { %v2556_v16 = vpop.permute.xlu1 %2555  ;;  %2646 = vst.msk [vmem:[#allocation3 + $0x20] sm:$0xff] %vm2641_vm10, %v2554_v24  ;;  %4160 = vmatmul.mubr.msk.f32.gmra.mrb[2].mxu0 %vm3097_vm13, %v3063_v0 }
 0x239   : > { %2647 = vst.msk [vmem:[#allocation3 + $0x28] sm:$0xff] %vm2641_vm10, %v2556_v16  ;;  %1989 = vrot.lane.b32.xlu0 %v5446_v7, %s4364_s21  ;;  %v2888_v16 = vld [vmem:[#allocation2 + $0x12a] sm:$0xff] }
 0x23a   : > { %2567 = vrot.lane.b32.xlu1 %v5464_v53, %s4367_s24 }
 0x23b   : > { %v1978_v54 = vpop.permute.xlu0 %1977 }
 0x23c   : > { %v1980_v43 = vpop.permute.xlu1 %1979  ;;  %2068 = vst.msk [vmem:[#allocation3 + $0x30] sm:$0xff] %vm2061_vm7, %v1978_v54 }
 0x23d   : > { %2069 = vst.msk [vmem:[#allocation3 + $0x38] sm:$0xff] %vm2061_vm7, %v1980_v43  ;;  %2391 = vrot.lane.b32.xlu0 %v2307_v3, %s4366_s23 }
 0x23e   : > { %1625 = vrot.lane.b32.xlu1 %v2115_v6, %s4362_s18 }
 0x23f   : > { %v2747_v12 = vpop.permute.xlu0 %2746 }
 0x240   : > { %v2749_v4 = vpop.permute.xlu1 %2748  ;;  %2839 = vst.msk [vmem:[#allocation3 + $0x20] sm:$0xff] %vm2834_vm11, %v2747_v12 }
 0x241   : > { %2840 = vst.msk [vmem:[#allocation3 + $0x28] sm:$0xff] %vm2834_vm11, %v2749_v4  ;;  %2758 = vrot.lane.b32.xlu0 %v2684_v32, %s4368_s4 }
 0x242   : > { %1991 = vrot.lane.b32.xlu1 %v5464_v53, %s4364_s21  ;;  %v2685_v53 = vld [vmem:[#allocation2 + $0xb1] sm:$0xff] }
 0x243   : > { %v2171_v59 = vpop.permute.xlu0 %2170 }
 0x244   : > { %v1596_v7 = vpop.permute.xlu1 %1595  ;;  %2261 = vst.msk [vmem:[#allocation3 + $0x30] sm:$0xff] %vm2254_vm8, %v2171_v59  ;;  %v2879_v59 = vld [vmem:[#allocation2 + $0xc2] sm:$0xff] }
 0x245   : > { %1684 = vst.msk [vmem:[#allocation3 + $0x40] sm:$0xff] %vm1675_vm1, %v1596_v7  ;;  %1816 = vrot.lane.b32.xlu0 %v2307_v3, %s4363_s19  ;;  %v2687_v3 = vld [vmem:[#allocation2 + $0xc9] sm:$0xff] }
 0x246   : > { %2393 = vrot.lane.b32.xlu1 %v2308_v11, %s4366_s23 }
 0x247   : > { %v2940_v46 = vpop.permute.xlu0 %2939 }
 0x248   : > { %v2364_v61 = vpop.permute.xlu1 %2363  ;;  %3032 = vst.msk [vmem:[#allocation3 + $0x20] sm:$0xff] %vm3027_vm12, %v2940_v46 }
 0x249   : > { %2454 = vst.msk [vmem:[#allocation3 + $0x30] sm:$0xff] %vm2447_vm9, %v2364_v61  ;;  %2182 = vrot.lane.b32.xlu0 %v2684_v32, %s4365_s22 }
 0x24a   : > { %2760 = vrot.lane.b32.xlu1 %v2685_v53, %s4368_s4 }
 0x24b   : > { %v2173_v14 = vpop.permute.xlu0 %2172 }
 0x24c   : > { %v1598_v2 = vpop.permute.xlu1 %1597  ;;  %2262 = vst.msk [vmem:[#allocation3 + $0x38] sm:$0xff] %vm2254_vm8, %v2173_v14 }
 0x24d   : > { %1685 = vst.msk [vmem:[#allocation3 + $0x48] sm:$0xff] %vm1675_vm1, %v1598_v2  ;;  %2585 = vrot.lane.b32.xlu0 %v5550_v26, %s4367_s24  ;;  %v2696_v2 = vld [vmem:[#allocation2 + $0x139] sm:$0xff] }
 0x24e   : > { %1607 = vrot.lane.b32.xlu1 %v2684_v32, %s4362_s18 }
 0x24f   : > { %v2942_v51 = vpop.permute.xlu0 %2941  ;;  %v3064_v13 = vld [vmem:[#allocation3 + $0x20] sm:$0xff] }
 0x250   : > { %v2366_v48 = vpop.permute.xlu1 %2365  ;;  %3033 = vst.msk [vmem:[#allocation3 + $0x28] sm:$0xff] %vm3027_vm12, %v2942_v51  ;;  %4162 = vmatprep.mubr.msk.f32.mxu0 %vm3097_vm13, %v3064_v13 }
 0x251   : > { %2455 = vst.msk [vmem:[#allocation3 + $0x38] sm:$0xff] %vm2447_vm9, %v2366_v48  ;;  %2951 = vrot.lane.b32.xlu0 %v2877_v47, %s4369_s20 }
 0x252   : > { %2009 = vrot.lane.b32.xlu1 %v5550_v26, %s4364_s21  ;;  %v2694_v26 = vld [vmem:[#allocation2 + $0x121] sm:$0xff] }
 0x253   : > { %v1789_v60 = vpop.permute.xlu0 %1788 }
 0x254   : > { %v1791_v30 = vpop.permute.xlu1 %1790  ;;  %1877 = vst.msk [vmem:[#allocation3 + $0x40] sm:$0xff] %vm1868_vm4, %v1789_v60 }
 0x255   : > { %1878 = vst.msk [vmem:[#allocation3 + $0x48] sm:$0xff] %vm1868_vm4, %v1791_v30  ;;  %1818 = vrot.lane.b32.xlu0 %v2308_v11, %s4363_s19 }
 0x256   : > { %2375 = vrot.lane.b32.xlu1 %v2877_v47, %s4366_s23 }
 0x257   : > { %v2558_v52 = vpop.permute.xlu0 %2557  ;;  %v3065_v19 = vld [vmem:[#allocation3 + $0x28] sm:$0xff] }
 0x258   : > { %v2560_v28 = vpop.permute.xlu1 %2559  ;;  %2648 = vst.msk [vmem:[#allocation3 + $0x30] sm:$0xff] %vm2641_vm10, %v2558_v52  ;;  %4163 = vmatmul.mubr.msk.f32.gmra.mrb[4].mxu0 %vm3097_vm13, %v3065_v19  ;;  %v2697_v19 = vld [vmem:[#allocation2 + $0x141] sm:$0xff] }
 0x259   : > { %2649 = vst.msk [vmem:[#allocation3 + $0x38] sm:$0xff] %vm2641_vm10, %v2560_v28  ;;  %2184 = vrot.lane.b32.xlu0 %v2685_v53, %s4365_s22 }
 0x25a   : > { %2778 = vrot.lane.b32.xlu1 %v2694_v26, %s4368_s4 }
 0x25b   : > { %v1982_v17 = vpop.permute.xlu0 %1981 }
 0x25c   : > { %v1984_v45 = vpop.permute.xlu1 %1983  ;;  %2070 = vst.msk [vmem:[#allocation3 + $0x40] sm:$0xff] %vm2061_vm7, %v1982_v17 }
 0x25d   : > { %2071 = vst.msk [vmem:[#allocation3 + $0x48] sm:$0xff] %vm2061_vm7, %v1984_v45  ;;  %2587 = vrot.lane.b32.xlu0 %v5552_v33, %s4367_s24 }
 0x25e   : > { %1609 = vrot.lane.b32.xlu1 %v2685_v53, %s4362_s18 }
 0x25f   : > { %v2751_v41 = vpop.permute.xlu0 %2750 }
 0x260   : > { %v2753_v55 = vpop.permute.xlu1 %2752  ;;  %2841 = vst.msk [vmem:[#allocation3 + $0x30] sm:$0xff] %vm2834_vm11, %v2751_v41 }
 0x261   : > { %2842 = vst.msk [vmem:[#allocation3 + $0x38] sm:$0xff] %vm2834_vm11, %v2753_v55  ;;  %2953 = vrot.lane.b32.xlu0 %v2878_v57, %s4369_s20  ;;  %v2889_v55 = vld [vmem:[#allocation2 + $0x13a] sm:$0xff] }
 0x262   : > { %2011 = vrot.lane.b32.xlu1 %v5552_v33, %s4364_s21 }
 0x263   : > { %v2175_v44 = vpop.permute.xlu0 %2174 }
 0x264   : > { %v1600_v42 = vpop.permute.xlu1 %1599  ;;  %2263 = vst.msk [vmem:[#allocation3 + $0x40] sm:$0xff] %vm2254_vm8, %v2175_v44 }
 0x265   : > { %1686 = vst.msk [vmem:[#allocation3 + $0x50] sm:$0xff] %vm1675_vm1, %v1600_v42  ;;  %1800 = vrot.lane.b32.xlu0 %v2877_v47, %s4363_s19  ;;  %v2880_v47 = vld [vmem:[#allocation2 + $0xca] sm:$0xff] }
 0x266   : > { %2377 = vrot.lane.b32.xlu1 %v2878_v57, %s4366_s23 }
 0x267   : > { %v2944_v21 = vpop.permute.xlu0 %2943 }
 0x268   : > { %v2368_v10 = vpop.permute.xlu1 %2367  ;;  %3034 = vst.msk [vmem:[#allocation3 + $0x30] sm:$0xff] %vm3027_vm12, %v2944_v21 }
 0x269   : > { %2456 = vst.msk [vmem:[#allocation3 + $0x40] sm:$0xff] %vm2447_vm9, %v2368_v10  ;;  %2202 = vrot.lane.b32.xlu0 %v2694_v26, %s4365_s22  ;;  %v2688_v10 = vld [vmem:[#allocation2 + $0xd9] sm:$0xff] }
 0x26a   : > { %2780 = vrot.lane.b32.xlu1 %v2695_v39, %s4368_s4 }
 0x26b   : > { %v2177_v49 = vpop.permute.xlu0 %2176 }
 0x26c   : > { %v1602_v33 = vpop.permute.xlu1 %1601  ;;  %2264 = vst.msk [vmem:[#allocation3 + $0x48] sm:$0xff] %vm2254_vm8, %v2177_v49  ;;  %v2890_v49 = vld [vmem:[#allocation2 + $0x142] sm:$0xff] }
 0x26d   : > { %1687 = vst.msk [vmem:[#allocation3 + $0x58] sm:$0xff] %vm1675_vm1, %v1602_v33  ;;  %2569 = vrot.lane.b32.xlu0 %v5566_v18, %s4367_s24 }
 0x26e   : > { %1627 = vrot.lane.b32.xlu1 %v2694_v26, %s4362_s18 }
 0x26f   : > { %v2946_v22 = vpop.permute.xlu0 %2945  ;;  %v3066_v58 = vld [vmem:[#allocation3 + $0x30] sm:$0xff] }
 0x270   : > { %v2370_v36 = vpop.permute.xlu1 %2369  ;;  %3035 = vst.msk [vmem:[#allocation3 + $0x38] sm:$0xff] %vm3027_vm12, %v2946_v22  ;;  %4165 = vmatprep.mubr.msk.f32.mxu0 %vm3097_vm13, %v3066_v58 }
 0x271   : > { %2457 = vst.msk [vmem:[#allocation3 + $0x48] sm:$0xff] %vm2447_vm9, %v2370_v36  ;;  %2971 = vrot.lane.b32.xlu0 %v2887_v31, %s4369_s20 }
 0x272   : > { %1993 = vrot.lane.b32.xlu1 %v5566_v18, %s4364_s21  ;;  %v2686_v18 = vld [vmem:[#allocation2 + $0xc1] sm:$0xff] }
 0x273   : > { %v1793_v20 = vpop.permute.xlu0 %1792 }
 0x274   : > { %v1620_v27 = vpop.permute.xlu1 %1619  ;;  %1879 = vst.msk [vmem:[#allocation3 + $0x50] sm:$0xff] %vm1868_vm4, %v1793_v20 }
 0x275   : > { %1696 = vst.msk [vmem:[#allocation3 + $0xa0] sm:$0xff] %vm1675_vm1, %v1620_v27  ;;  %1802 = vrot.lane.b32.xlu0 %v2878_v57, %s4363_s19  ;;  %v2689_v27 = vld [vmem:[#allocation2 + $0xe1] sm:$0xff] }
 0x276   : > { %2395 = vrot.lane.b32.xlu1 %v2887_v31, %s4366_s23 }
 0x277   : > { %v2562_v35 = vpop.permute.xlu0 %2561  ;;  %v3067_v50 = vld [vmem:[#allocation3 + $0x38] sm:$0xff] }
 0x278   : > { %v1986_v29 = vpop.permute.xlu1 %1985  ;;  %2650 = vst.msk [vmem:[#allocation3 + $0x40] sm:$0xff] %vm2641_vm10, %v2562_v35  ;;  %4166 = vmatmul.mubr.msk.f32.gmra.mrb[6].mxu0 %vm3097_vm13, %v3067_v50 }
 0x279   : > { %2072 = vst.msk [vmem:[#allocation3 + $0x50] sm:$0xff] %vm2061_vm7, %v1986_v29  ;;  %2204 = vrot.lane.b32.xlu0 %v2695_v39, %s4365_s22 }
 0x27a   : > { %2762 = vrot.lane.b32.xlu1 %v2686_v18, %s4368_s4 }
 0x27b   : > { %v1795_v56 = vpop.permute.xlu0 %1794 }
 0x27c   : > { %v2755_v40 = vpop.permute.xlu1 %2754  ;;  %1880 = vst.msk [vmem:[#allocation3 + $0x58] sm:$0xff] %vm1868_vm4, %v1795_v56 }
 0x27d   : > { %2843 = vst.msk [vmem:[#allocation3 + $0x40] sm:$0xff] %vm2834_vm11, %v2755_v40  ;;  %2571 = vrot.lane.b32.xlu0 %v5568_v62, %s4367_s24 }
 0x27e   : > { %1629 = vrot.lane.b32.xlu1 %v2695_v39, %s4362_s18 }
 0x27f   : > { %v2564_v6 = vpop.permute.xlu0 %2563 }
 0x280   : > { %v1813_v5 = vpop.permute.xlu1 %1812  ;;  %2651 = vst.msk [vmem:[#allocation3 + $0x48] sm:$0xff] %vm2641_vm10, %v2564_v6 }
 0x281   : > { %1889 = vst.msk [vmem:[#allocation3 + $0xa0] sm:$0xff] %vm1868_vm4, %v1813_v5  ;;  %2973 = vrot.lane.b32.xlu0 %v2888_v16, %s4369_s20 }
 0x282   : > { %1995 = vrot.lane.b32.xlu1 %v5568_v62, %s4364_s21 }
 0x283   : > { %v1622_v0 = vpop.permute.xlu0 %1621 }
 0x284   : > { %v2179_v24 = vpop.permute.xlu1 %2178  ;;  %1697 = vst.msk [vmem:[#allocation3 + $0xa8] sm:$0xff] %vm1675_vm1, %v1622_v0 }
 0x285   : > { %2265 = vst.msk [vmem:[#allocation3 + $0x50] sm:$0xff] %vm2254_vm8, %v2179_v24  ;;  %1820 = vrot.lane.b32.xlu0 %v2887_v31, %s4363_s19 }
 0x286   : > { %2397 = vrot.lane.b32.xlu1 %v2888_v16, %s4366_s23 }
 0x287   : > { %v1988_v54 = vpop.permute.xlu0 %1987 }
 0x288   : > { %v2948_v43 = vpop.permute.xlu1 %2947  ;;  %2073 = vst.msk [vmem:[#allocation3 + $0x58] sm:$0xff] %vm2061_vm7, %v1988_v54 }
 0x289   : > { %3036 = vst.msk [vmem:[#allocation3 + $0x40] sm:$0xff] %vm3027_vm12, %v2948_v43  ;;  %2186 = vrot.lane.b32.xlu0 %v2686_v18, %s4365_s22 }
 0x28a   : > { %2764 = vrot.lane.b32.xlu1 %v2687_v3, %s4368_s4 }
 0x28b   : > { %v2757_v4 = vpop.permute.xlu0 %2756 }
 0x28c   : > { %v1815_v62 = vpop.permute.xlu1 %1814  ;;  %2844 = vst.msk [vmem:[#allocation3 + $0x48] sm:$0xff] %vm2834_vm11, %v2757_v4 }
 0x28d   : > { %1890 = vst.msk [vmem:[#allocation3 + $0xa8] sm:$0xff] %vm1868_vm4, %v1815_v62  ;;  %2589 = vrot.lane.b32.xlu0 %v5586_v15, %s4367_s24 }
 0x28e   : > { %1611 = vrot.lane.b32.xlu1 %v2686_v18, %s4362_s18  ;;  %v2881_v18 = vld [vmem:[#allocation2 + $0xda] sm:$0xff] }
 0x28f   : > { %v1604_v32 = vpop.permute.xlu0 %1603 }
 0x290   : > { %v2181_v12 = vpop.permute.xlu1 %2180  ;;  %v3068_v7 = vld [vmem:[#allocation3 + $0x40] sm:$0xff]  ;;  %1688 = vst.msk [vmem:[#allocation3 + $0x60] sm:$0xff] %vm1675_vm1, %v1604_v32 }
 0x291   : > { %2266 = vst.msk [vmem:[#allocation3 + $0x58] sm:$0xff] %vm2254_vm8, %v2181_v12  ;;  %4168 = vmatprep.mubr.msk.f32.mxu0 %vm3097_vm13, %v3068_v7  ;;  %2955 = vrot.lane.b32.xlu0 %v2879_v59, %s4369_s20  ;;  %v5979_v7 = vstv %s253_s11 }
 0x292   : > { %2013 = vrot.lane.b32.xlu1 %v5586_v15, %s4364_s21 }
 0x293   : > { %v2006_v61 = vpop.permute.xlu0 %2005 }
 0x294   : > { %v2950_v11 = vpop.permute.xlu1 %2949  ;;  %2082 = vst.msk [vmem:[#allocation3 + $0xa0] sm:$0xff] %vm2061_vm7, %v2006_v61 }
 0x295   : > { %3037 = vst.msk [vmem:[#allocation3 + $0x48] sm:$0xff] %vm3027_vm12, %v2950_v11  ;;  %1822 = vrot.lane.b32.xlu0 %v2888_v16, %s4363_s19  ;;  %v2698_v16 = vld [vmem:[#allocation2 + $0x151] sm:$0xff] }
 0x296   : > { %2379 = vrot.lane.b32.xlu1 %v2879_v59, %s4366_s23 }
 0x297   : > { %v2372_v53 = vpop.permute.xlu0 %2371 }
 0x298   : > { %v1797_v46 = vpop.permute.xlu1 %1796  ;;  %2458 = vst.msk [vmem:[#allocation3 + $0x50] sm:$0xff] %vm2447_vm9, %v2372_v53 }
 0x299   : > { %1881 = vst.msk [vmem:[#allocation3 + $0x60] sm:$0xff] %vm1868_vm4, %v1797_v46  ;;  %2188 = vrot.lane.b32.xlu0 %v2687_v3, %s4365_s22 }
 0x29a   : > { %2782 = vrot.lane.b32.xlu1 %v2696_v2, %s4368_s4 }
 0x29b   : > { %v1606_v14 = vpop.permute.xlu0 %1605 }
 0x29c   : > { %v2199_v15 = vpop.permute.xlu1 %2198  ;;  %v3069_v48 = vld [vmem:[#allocation3 + $0x48] sm:$0xff]  ;;  %1689 = vst.msk [vmem:[#allocation3 + $0x68] sm:$0xff] %vm1675_vm1, %v1606_v14 }
 0x29d   : > { %2275 = vst.msk [vmem:[#allocation3 + $0xa0] sm:$0xff] %vm2254_vm8, %v2199_v15  ;;  %4169 = vmatmul.mubr.msk.f32.gmra.mrb[8].mxu0 %vm3097_vm13, %v3069_v48  ;;  %2591 = vrot.lane.b32.xlu0 %v5588_v38, %s4367_s24 }
 0x29e   : > { %1613 = vrot.lane.b32.xlu1 %v2687_v3, %s4362_s18  ;;  %v2882_v3 = vld [vmem:[#allocation2 + $0xe2] sm:$0xff] }
 0x29f   : > { %v2008_v13 = vpop.permute.xlu0 %2007 }
 0x2a0   : > { %v2566_v51 = vpop.permute.xlu1 %2565  ;;  %2083 = vst.msk [vmem:[#allocation3 + $0xa8] sm:$0xff] %vm2061_vm7, %v2008_v13 }
 0x2a1   : > { %2652 = vst.msk [vmem:[#allocation3 + $0x50] sm:$0xff] %vm2641_vm10, %v2566_v51  ;;  %2957 = vrot.lane.b32.xlu0 %v2880_v47, %s4369_s20 }
 0x2a2   : > { %2015 = vrot.lane.b32.xlu1 %v5588_v38, %s4364_s21 }
 0x2a3   : > { %v2374_v60 = vpop.permute.xlu0 %2373 }
 0x2a4   : > { %v1799_v30 = vpop.permute.xlu1 %1798  ;;  %2459 = vst.msk [vmem:[#allocation3 + $0x58] sm:$0xff] %vm2447_vm9, %v2374_v60 }
 0x2a5   : > { %1882 = vst.msk [vmem:[#allocation3 + $0x68] sm:$0xff] %vm1868_vm4, %v1799_v30  ;;  %1804 = vrot.lane.b32.xlu0 %v2879_v59, %s4363_s19 }
 0x2a6   : > { %2381 = vrot.lane.b32.xlu1 %v2880_v47, %s4366_s23 }
 0x2a7   : > { %v1624_v52 = vpop.permute.xlu0 %1623 }
 0x2a8   : > { %v2201_v28 = vpop.permute.xlu1 %2200  ;;  %1698 = vst.msk [vmem:[#allocation3 + $0xb0] sm:$0xff] %vm1675_vm1, %v1624_v52 }
 0x2a9   : > { %2276 = vst.msk [vmem:[#allocation3 + $0xa8] sm:$0xff] %vm2254_vm8, %v2201_v28  ;;  %2206 = vrot.lane.b32.xlu0 %v2696_v2, %s4365_s22 }
 0x2aa   : > { %2784 = vrot.lane.b32.xlu1 %v2697_v19, %s4368_s4 }
 0x2ab   : > { %v1990_v26 = vpop.permute.xlu0 %1989 }
 0x2ac   : > { %v2568_v38 = vpop.permute.xlu1 %2567  ;;  %2074 = vst.msk [vmem:[#allocation3 + $0x60] sm:$0xff] %vm2061_vm7, %v1990_v26 }
 0x2ad   : > { %2653 = vst.msk [vmem:[#allocation3 + $0x58] sm:$0xff] %vm2641_vm10, %v2568_v38  ;;  %2573 = vrot.lane.b32.xlu0 %v5600_v1, %s4367_s24 }
 0x2ae   : > { %1631 = vrot.lane.b32.xlu1 %v2696_v2, %s4362_s18 }
 0x2af   : > { %v2392_v17 = vpop.permute.xlu0 %2391 }
 0x2b0   : > { %v1626_v45 = vpop.permute.xlu1 %1625  ;;  %2468 = vst.msk [vmem:[#allocation3 + $0xa0] sm:$0xff] %vm2447_vm9, %v2392_v17 }
 0x2b1   : > { %1699 = vst.msk [vmem:[#allocation3 + $0xb8] sm:$0xff] %vm1675_vm1, %v1626_v45  ;;  %2975 = vrot.lane.b32.xlu0 %v2889_v55, %s4369_s20 }
 0x2b2   : > { %1997 = vrot.lane.b32.xlu1 %v5600_v1, %s4364_s21 }
 0x2b3   : > { %v2759_v57 = vpop.permute.xlu0 %2758 }
 0x2b4   : > { %v1992_v41 = vpop.permute.xlu1 %1991  ;;  %2845 = vst.msk [vmem:[#allocation3 + $0x50] sm:$0xff] %vm2834_vm11, %v2759_v57 }
 0x2b5   : > { %2075 = vst.msk [vmem:[#allocation3 + $0x68] sm:$0xff] %vm2061_vm7, %v1992_v41  ;;  %1806 = vrot.lane.b32.xlu0 %v2880_v47, %s4363_s19  ;;  %v2891_v47 = vld [vmem:[#allocation2 + $0x152] sm:$0xff] }
 0x2b6   : > { %2399 = vrot.lane.b32.xlu1 %v2889_v55, %s4366_s23 }
 0x2b7   : > { %v1817_v44 = vpop.permute.xlu0 %1816 }
 0x2b8   : > { %v2394_v42 = vpop.permute.xlu1 %2393  ;;  %1891 = vst.msk [vmem:[#allocation3 + $0xb0] sm:$0xff] %vm1868_vm4, %v1817_v44 }
 0x2b9   : > { %2469 = vst.msk [vmem:[#allocation3 + $0xa8] sm:$0xff] %vm2447_vm9, %v2394_v42  ;;  %2208 = vrot.lane.b32.xlu0 %v2697_v19, %s4365_s22 }
 0x2ba   : > { %2766 = vrot.lane.b32.xlu1 %v2688_v10, %s4368_s4 }
 0x2bb   : > { %v2183_v21 = vpop.permute.xlu0 %2182 }
 0x2bc   : > { %v2761_v1 = vpop.permute.xlu1 %2760  ;;  %2267 = vst.msk [vmem:[#allocation3 + $0x60] sm:$0xff] %vm2254_vm8, %v2183_v21 }
 0x2bd   : > { %2846 = vst.msk [vmem:[#allocation3 + $0x58] sm:$0xff] %vm2834_vm11, %v2761_v1  ;;  %2575 = vrot.lane.b32.xlu0 %v5602_v37, %s4367_s24 }
 0x2be   : > { %1633 = vrot.lane.b32.xlu1 %v2697_v19, %s4362_s18  ;;  %v2690_v19 = vld [vmem:[#allocation2 + $0xf1] sm:$0xff] }
 0x2bf   : > { %v2586_v33 = vpop.permute.xlu0 %2585 }
 0x2c0   : > { %v1608_v39 = vpop.permute.xlu1 %1607  ;;  %2662 = vst.msk [vmem:[#allocation3 + $0xa0] sm:$0xff] %vm2641_vm10, %v2586_v33 }
 0x2c1   : > { %1690 = vst.msk [vmem:[#allocation3 + $0x70] sm:$0xff] %vm1675_vm1, %v1608_v39  ;;  %2977 = vrot.lane.b32.xlu0 %v2890_v49, %s4369_s20 }
 0x2c2   : > { %1999 = vrot.lane.b32.xlu1 %v5602_v37, %s4364_s21 }
 0x2c3   : > { %v2952_v22 = vpop.permute.xlu0 %2951 }
 0x2c4   : > { %v2010_v36 = vpop.permute.xlu1 %2009  ;;  %3038 = vst.msk [vmem:[#allocation3 + $0x50] sm:$0xff] %vm3027_vm12, %v2952_v22 }
 0x2c5   : > { %2084 = vst.msk [vmem:[#allocation3 + $0xb0] sm:$0xff] %vm2061_vm7, %v2010_v36  ;;  %1824 = vrot.lane.b32.xlu0 %v2889_v55, %s4363_s19  ;;  %v2892_v55 = vld [vmem:[#allocation2 + $0x15a] sm:$0xff] }
 0x2c6   : > { %2401 = vrot.lane.b32.xlu1 %v2890_v49, %s4366_s23 }
 0x2c7   : > { %v1819_v31 = vpop.permute.xlu0 %1818 }
 0x2c8   : > { %v2376_v58 = vpop.permute.xlu1 %2375  ;;  %1892 = vst.msk [vmem:[#allocation3 + $0xb8] sm:$0xff] %vm1868_vm4, %v1819_v31 }
 0x2c9   : > { %2460 = vst.msk [vmem:[#allocation3 + $0x60] sm:$0xff] %vm2447_vm9, %v2376_v58  ;;  %2190 = vrot.lane.b32.xlu0 %v2688_v10, %s4365_s22 }
 0x2ca   : > { %2768 = vrot.lane.b32.xlu1 %v2689_v27, %s4368_s4 }
 0x2cb   : > { %v2185_v20 = vpop.permute.xlu0 %2184  ;;  %v3070_v29 = vld [vmem:[#allocation3 + $0x50] sm:$0xff] }
 0x2cc   : > { %v2779_v37 = vpop.permute.xlu1 %2778  ;;  %2268 = vst.msk [vmem:[#allocation3 + $0x68] sm:$0xff] %vm2254_vm8, %v2185_v20  ;;  %4171 = vmatprep.mubr.msk.f32.mxu0 %vm3097_vm13, %v3070_v29 }
 0x2cd   : > { %2855 = vst.msk [vmem:[#allocation3 + $0xa0] sm:$0xff] %vm2834_vm11, %v2779_v37  ;;  %2593 = vrot.lane.b32.xlu0 %v5620_v25, %s4367_s24 }
 0x2ce   : > { %1615 = vrot.lane.b32.xlu1 %v2688_v10, %s4362_s18  ;;  %v2691_v10 = vld [vmem:[#allocation2 + $0xf9] sm:$0xff] }
 0x2cf   : > { %v2588_v50 = vpop.permute.xlu0 %2587 }
 0x2d0   : > { %v1610_v35 = vpop.permute.xlu1 %1609  ;;  %2663 = vst.msk [vmem:[#allocation3 + $0xa8] sm:$0xff] %vm2641_vm10, %v2588_v50 }
 0x2d1   : > { %1691 = vst.msk [vmem:[#allocation3 + $0x78] sm:$0xff] %vm1675_vm1, %v1610_v35  ;;  %2959 = vrot.lane.b32.xlu0 %v2881_v18, %s4369_s20 }
 0x2d2   : > { %2017 = vrot.lane.b32.xlu1 %v5620_v25, %s4364_s21 }
 0x2d3   : > { %v2954_v56 = vpop.permute.xlu0 %2953 }
 0x2d4   : > { %v2012_v40 = vpop.permute.xlu1 %2011  ;;  %3039 = vst.msk [vmem:[#allocation3 + $0x58] sm:$0xff] %vm3027_vm12, %v2954_v56 }
 0x2d5   : > { %2085 = vst.msk [vmem:[#allocation3 + $0xb8] sm:$0xff] %vm2061_vm7, %v2012_v40  ;;  %1826 = vrot.lane.b32.xlu0 %v2890_v49, %s4363_s19  ;;  %v2883_v40 = vld [vmem:[#allocation2 + $0xf2] sm:$0xff] }
 0x2d6   : > { %2383 = vrot.lane.b32.xlu1 %v2881_v18, %s4366_s23 }
 0x2d7   : > { %v1801_v6 = vpop.permute.xlu0 %1800 }
 0x2d8   : > { %v2378_v5 = vpop.permute.xlu1 %2377  ;;  %1883 = vst.msk [vmem:[#allocation3 + $0x70] sm:$0xff] %vm1868_vm4, %v1801_v6 }
 0x2d9   : > { %2461 = vst.msk [vmem:[#allocation3 + $0x68] sm:$0xff] %vm2447_vm9, %v2378_v5  ;;  %2192 = vrot.lane.b32.xlu0 %v2689_v27, %s4365_s22 }
 0x2da   : > { %2786 = vrot.lane.b32.xlu1 %v2698_v16, %s4368_s4 }
 0x2db   : > { %v2203_v24 = vpop.permute.xlu0 %2202  ;;  %v3071_v0 = vld [vmem:[#allocation3 + $0x58] sm:$0xff] }
 0x2dc   : > { %v2781_v25 = vpop.permute.xlu1 %2780  ;;  %2277 = vst.msk [vmem:[#allocation3 + $0xb0] sm:$0xff] %vm2254_vm8, %v2203_v24  ;;  %4172 = vmatmul.mubr.msk.f32.gmra.mrb[10].mxu0 %vm3097_vm13, %v3071_v0 }
 0x2dd   : > { %2856 = vst.msk [vmem:[#allocation3 + $0xa8] sm:$0xff] %vm2834_vm11, %v2781_v25  ;;  %2595 = vrot.lane.b32.xlu0 %v5622_v23, %s4367_s24 }
 0x2de   : > { %1617 = vrot.lane.b32.xlu1 %v2689_v27, %s4362_s18  ;;  %v6579_v27 = vld [vmem:[#allocation21_spill] sm:$0xff] }
 0x2df   : > { %v2570_v54 = vpop.permute.xlu0 %2569  ;;  %vm335_vm5 = vcmp.eq.s32.totalorder %v6579_v27, 0 }
 0x2e0   : > { %v1628_v43 = vpop.permute.xlu1 %1627  ;;  %2654 = vst.msk [vmem:[#allocation3 + $0x60] sm:$0xff] %vm2641_vm10, %v2570_v54  ;;  %v2884_v54 = vld [vmem:[#allocation2 + $0xfa] sm:$0xff] }
 0x2e1   : > { %1700 = vst.msk [vmem:[#allocation3 + $0xc0] sm:$0xff] %vm1675_vm1, %v1628_v43  ;;  %2961 = vrot.lane.b32.xlu0 %v2882_v3, %s4369_s20 }
 0x2e2   : > { %2019 = vrot.lane.b32.xlu1 %v5622_v23, %s4364_s21  ;;  %v2699_v23 = vld [vmem:[#allocation2 + $0x159] sm:$0xff] }
 0x2e3   : > { %v2972_v4 = vpop.permute.xlu0 %2971 }
 0x2e4   : > { %v1994_v62 = vpop.permute.xlu1 %1993  ;;  %3048 = vst.msk [vmem:[#allocation3 + $0xa0] sm:$0xff] %vm3027_vm12, %v2972_v4 }
 0x2e5   : > { %2076 = vst.msk [vmem:[#allocation3 + $0x70] sm:$0xff] %vm2061_vm7, %v1994_v62  ;;  %1808 = vrot.lane.b32.xlu0 %v2881_v18, %s4363_s19 }
 0x2e6   : > { %2385 = vrot.lane.b32.xlu1 %v2882_v3, %s4366_s23 }
 0x2e7   : > { %v1803_v32 = vpop.permute.xlu0 %1802 }
 0x2e8   : > { %v2396_v12 = vpop.permute.xlu1 %2395  ;;  %1884 = vst.msk [vmem:[#allocation3 + $0x78] sm:$0xff] %vm1868_vm4, %v1803_v32 }
 0x2e9   : > { %2470 = vst.msk [vmem:[#allocation3 + $0xb0] sm:$0xff] %vm2447_vm9, %v2396_v12  ;;  %2210 = vrot.lane.b32.xlu0 %v2698_v16, %s4365_s22 }
 0x2ea   : > { %2788 = vrot.lane.b32.xlu1 %v2699_v23, %s4368_s4 }
 0x2eb   : > { %v4158_v11 = vpop.f32.mrb[0].mxu0  ;;  %v3080_v61 = vld [vmem:[#allocation3 + $0xa0] sm:$0xff]  ;;  %v2205_v53 = vpop.permute.xlu0 %2204 }
 0x2ec   : > { %v2763_v59 = vpop.permute.xlu1 %2762  ;;  %vm3424_vm14 = vcmp.ge.f32.partialorder %v4158_v11, 0.0  ;;  %v3457_v46 = vmul.f32 %v4158_v11, %v5979_v7  ;;  %v3264_v2 = vpop.f32.mrb[1].mxu0  ;;  %4186 = vmatprep.mubr.msk.f32.mxu1 %vm3097_vm13, %v3080_v61  ;;  %2278 = vst.msk [vmem:[#allocation3 + $0xb8] sm:$0xff] %vm2254_vm8, %v2205_v53 }
 0x2ed   : > { %2847 = vst.msk [vmem:[#allocation3 + $0x60] sm:$0xff] %vm2834_vm11, %v2763_v59  ;;  %vm3423_vm15 = vcmp.ge.f32.partialorder %v3264_v2, 0.0  ;;  %v3456_v15 = vmul.f32 %v5979_v7, %v3264_v2  ;;  %2577 = vrot.lane.b32.xlu0 %v5484_v8, %s4367_s24 }
 0x2ee   : > { %1635 = vrot.lane.b32.xlu1 %v2698_v16, %s4362_s18  ;;  %v3489_v14 = vsel %vm3424_vm14, %v4158_v11, %v3457_v46  ;;  %v2122_v11 = vld [vmem:[#allocation2 + $0x169] sm:$0xff] }
 0x2ef   : > { %3521 = vst.msk [vmem:[#allocation4 + $0x8] sm:$0xff] %vm1362_vm0, %v3489_v14  ;;  %v3488_v48 = vsel %vm3423_vm15, %v3264_v2, %v3456_v15  ;;  %v2572_v13 = vpop.permute.xlu0 %2571  ;;  %v2499_v14 = vld [vmem:[#allocation2 + $0x108] sm:$0xff] }
 0x2f0   : > { %v1630_v51 = vpop.permute.xlu1 %1629  ;;  %3520 = vst.msk [vmem:[#allocation4] sm:$0xff] %vm1362_vm0, %v3488_v48 }
 0x2f1   : > { %1701 = vst.msk [vmem:[#allocation3 + $0xc8] sm:$0xff] %vm1675_vm1, %v1630_v51  ;;  %2979 = vrot.lane.b32.xlu0 %v2891_v47, %s4369_s20 }
 0x2f2   : > { %2655 = vst.msk [vmem:[#allocation3 + $0x68] sm:$0xff] %vm2641_vm10, %v2572_v13  ;;  %2001 = vrot.lane.b32.xlu1 %v5484_v8, %s4364_s21 }
 0x2f3   : > { %v2974_v60 = vpop.permute.xlu0 %2973 }
 0x2f4   : > { %v1996_v30 = vpop.permute.xlu1 %1995  ;;  %3049 = vst.msk [vmem:[#allocation3 + $0xa8] sm:$0xff] %vm3027_vm12, %v2974_v60 }
 0x2f5   : > { %2077 = vst.msk [vmem:[#allocation3 + $0x78] sm:$0xff] %vm2061_vm7, %v1996_v30  ;;  %1810 = vrot.lane.b32.xlu0 %v2882_v3, %s4363_s19  ;;  %v2893_v30 = vld [vmem:[#allocation2 + $0x16a] sm:$0xff] }
 0x2f6   : > { %2403 = vrot.lane.b32.xlu1 %v2891_v47, %s4366_s23 }
 0x2f7   : > { %v1821_v52 = vpop.permute.xlu0 %1820  ;;  %v3552_v22 = vld [vmem:[#allocation4] ss:$2 sm:$0xff] }
 0x2f8   : > { %v2398_v28 = vpop.permute.xlu1 %2397  ;;  %1893 = vst.msk [vmem:[#allocation3 + $0xc0] sm:$0xff] %vm1868_vm4, %v1821_v52  ;;  %v3647_v35 = vmul.f32 2.0, %v3552_v22  ;;  %v2123_v52 = vld [vmem:[#allocation2 + $0x171] sm:$0xff] }
 0x2f9   : > { %2471 = vst.msk [vmem:[#allocation3 + $0xb8] sm:$0xff] %vm2447_vm9, %v2398_v28  ;;  %2212 = vrot.lane.b32.xlu0 %v2699_v23, %s4365_s22 }
 0x2fa   : > { %2770 = vrot.lane.b32.xlu1 %v2690_v19, %s4368_s4 }
 0x2fb   : > { %v2187_v38 = vpop.permute.xlu0 %2186  ;;  %v3081_v26 = vld [vmem:[#allocation3 + $0xa8] sm:$0xff] }
 0x2fc   : > { %v2765_v8 = vpop.permute.xlu1 %2764  ;;  %2269 = vst.msk [vmem:[#allocation3 + $0x70] sm:$0xff] %vm2254_vm8, %v2187_v38  ;;  %4187 = vmatmul.mubr.msk.f32.vlgmr.msra.gmra.mrb[0].mxu1 %vm3097_vm13, %v3081_v26 }
 0x2fd   : > { %2848 = vst.msk [vmem:[#allocation3 + $0x68] sm:$0xff] %vm2834_vm11, %v2765_v8  ;;  %2579 = vrot.lane.b32.xlu0 %v5490_v63, %s4367_s24 }
 0x2fe   : > { %1637 = vrot.lane.b32.xlu1 %v2699_v23, %s4362_s18 }
 0x2ff   : > { %v2590_v17 = vpop.permute.xlu0 %2589 }
 0x300   : > { %v1612_v45 = vpop.permute.xlu1 %1611  ;;  %2664 = vst.msk [vmem:[#allocation3 + $0xb0] sm:$0xff] %vm2641_vm10, %v2590_v17 }
 0x301   : > { %1692 = vst.msk [vmem:[#allocation3 + $0x80] sm:$0xff] %vm1675_vm1, %v1612_v45  ;;  %2981 = vrot.lane.b32.xlu0 %v2892_v55, %s4369_s20 }
 0x302   : > { %2003 = vrot.lane.b32.xlu1 %v5490_v63, %s4364_s21  ;;  %v3584_v63 = vld [vmem:[#allocation4 + $0x1] ss:$2 sm:$0xff] }
 0x303   : > { %v2956_v57 = vpop.permute.xlu0 %2955  ;;  %v3615_v58 = vrot.slane %v3584_v63, 7 }
 0x304   : > { %v2014_v41 = vpop.permute.xlu1 %2013  ;;  %3040 = vst.msk [vmem:[#allocation3 + $0x60] sm:$0xff] %vm3027_vm12, %v2956_v57 }
 0x305   : > { %2086 = vst.msk [vmem:[#allocation3 + $0xc0] sm:$0xff] %vm2061_vm7, %v2014_v41  ;;  %1828 = vrot.lane.b32.xlu0 %v2891_v47, %s4363_s19  ;;  %v3631_v18 = vsel %vm335_vm5, %v3584_v63, %v3615_v58 }
 0x306   : > { %2405 = vrot.lane.b32.xlu1 %v2892_v55, %s4366_s23  ;;  %v3663_v5 = vadd.f32 %v3647_v35, %v3631_v18  ;;  %v2693_v35 = vld [vmem:[#allocation2 + $0x111] sm:$0xff] }
 0x307   : > { %v1823_v44 = vpop.permute.xlu0 %1822 }
 0x308   : > { %v2380_v42 = vpop.permute.xlu1 %2379  ;;  %1894 = vst.msk [vmem:[#allocation3 + $0xc8] sm:$0xff] %vm1868_vm4, %v1823_v44  ;;  %v3679_v0 = vadd.f32 %v3663_v5, %v3584_v63  ;;  %v2894_v63 = vld [vmem:[#allocation2 + $0x172] sm:$0xff] }
 0x309   : > { %2462 = vst.msk [vmem:[#allocation3 + $0x70] sm:$0xff] %vm2447_vm9, %v2380_v42  ;;  %2194 = vrot.lane.b32.xlu0 %v2690_v19, %s4365_s22 }
 0x30a   : > { %2772 = vrot.lane.b32.xlu1 %v2691_v10, %s4368_s4  ;;  %v3695_v32 = vmul.f32 0.25, %v3679_v0 }
 0x30b   : > { %v4161_v21 = vpop.f32.mrb[2].mxu0  ;;  %v2189_v33 = vpop.permute.xlu0 %2188  ;;  %v3072_v36 = vld [vmem:[#allocation3 + $0x60] sm:$0xff] }
 0x30c   : > { %v2783_v1 = vpop.permute.xlu1 %2782  ;;  %vm3426_vm2 = vcmp.ge.f32.partialorder %v4161_v21, 0.0  ;;  %v3459_v39 = vmul.f32 %v4161_v21, %v5979_v7  ;;  %v3274_v49 = vpop.f32.mrb[3].mxu0  ;;  %2270 = vst.msk [vmem:[#allocation3 + $0x78] sm:$0xff] %vm2254_vm8, %v2189_v33  ;;  %4174 = vmatprep.mubr.msk.f32.mxu0 %vm3097_vm13, %v3072_v36  ;;  %v3711_v2 = vmul.f32 2.0, %v3695_v32  ;;  %v2509_v36 = vld [vmem:[#allocation2 + $0x180] sm:$0xff] }
 0x30d   : > { %2857 = vst.msk [vmem:[#allocation3 + $0xb0] sm:$0xff] %vm2834_vm11, %v2783_v1  ;;  %vm3425_vm3 = vcmp.ge.f32.partialorder %v3274_v49, 0.0  ;;  %v3458_v31 = vmul.f32 %v5979_v7, %v3274_v49  ;;  %2597 = vrot.lane.b32.xlu0 %v5629_v9, %s4367_s24 }
 0x30e   : > { %1830 = vrot.lane.b32.xlu1 %v2892_v55, %s4363_s19  ;;  %v3491_v37 = vsel %vm3426_vm2, %v4161_v21, %v3459_v39  ;;  %v2500_v55 = vld [vmem:[#allocation2 + $0x110] sm:$0xff] }
 0x30f   : > { %3523 = vst.msk [vmem:[#allocation4 + $0x18] sm:$0xff] %vm1362_vm0, %v3491_v37  ;;  %v3490_v20 = vsel %vm3425_vm3, %v3274_v49, %v3458_v31  ;;  %v2592_v50 = vpop.permute.xlu0 %2591  ;;  %v2692_v39 = vld [vmem:[#allocation2 + $0x109] sm:$0xff] }
 0x310   : > { %v1614_v29 = vpop.permute.xlu1 %1613  ;;  %3522 = vst.msk [vmem:[#allocation4 + $0x10] sm:$0xff] %vm1362_vm0, %v3490_v20  ;;  %v2885_v37 = vld [vmem:[#allocation2 + $0x10a] sm:$0xff] }
 0x311   : > { %1693 = vst.msk [vmem:[#allocation3 + $0x88] sm:$0xff] %vm1675_vm1, %v1614_v29  ;;  %2963 = vrot.lane.b32.xlu0 %v2883_v40, %s4369_s20 }
 0x312   : > { %2665 = vst.msk [vmem:[#allocation3 + $0xb8] sm:$0xff] %vm2641_vm10, %v2592_v50  ;;  %2196 = vrot.lane.b32.xlu1 %v2691_v10, %s4365_s22 }
 0x313   : > { %v2958_v6 = vpop.permute.xlu0 %2957 }
 0x314   : > { %v2016_v56 = vpop.permute.xlu1 %2015  ;;  %3041 = vst.msk [vmem:[#allocation3 + $0x68] sm:$0xff] %vm3027_vm12, %v2958_v6 }
 0x315   : > { %2087 = vst.msk [vmem:[#allocation3 + $0xc8] sm:$0xff] %vm2061_vm7, %v2016_v56  ;;  %2021 = vrot.lane.b32.xlu0 %v5629_v9, %s4364_s21 }
 0x316   : > { %2599 = vrot.lane.b32.xlu1 %v5631_v34, %s4367_s24 }
 0x317   : > { %v3554_v25 = vld [vmem:[#allocation4 + $0x10] ss:$2 sm:$0xff]  ;;  %v3586_v24 = vld [vmem:[#allocation4 + $0x11] ss:$2 sm:$0xff]  ;;  %v1805_v43 = vpop.permute.xlu0 %1804 }
 0x318   : > { %v2382_v16 = vpop.permute.xlu1 %2381  ;;  %v3616_v3 = vrot.slane %v3586_v24, 7  ;;  %v3648_v62 = vmul.f32 2.0, %v3554_v25  ;;  %1885 = vst.msk [vmem:[#allocation3 + $0x80] sm:$0xff] %vm1868_vm4, %v1805_v43 }
 0x319   : > { %2463 = vst.msk [vmem:[#allocation3 + $0x78] sm:$0xff] %vm2447_vm9, %v2382_v16  ;;  %2387 = vrot.lane.b32.xlu0 %v2883_v40, %s4366_s23  ;;  %v2702_v40 = vld [vmem:[#allocation2 + $0x181] sm:$0xff] }
 0x31a   : > { %2965 = vrot.lane.b32.xlu1 %v2884_v54, %s4369_s20  ;;  %v3632_v4 = vsel %vm335_vm5, %v3586_v24, %v3616_v3  ;;  %v1932_v16 = vld [vmem:[#allocation2 + $0x188] sm:$0xff] }
 0x31b   : > { %v3664_v12 = vadd.f32 %v3648_v62, %v3632_v4  ;;  %v2207_v23 = vpop.permute.xlu0 %2206  ;;  %v3073_v59 = vld [vmem:[#allocation3 + $0x68] sm:$0xff] }
 0x31c   : > { %v2785_v9 = vpop.permute.xlu1 %2784  ;;  %2279 = vst.msk [vmem:[#allocation3 + $0xc0] sm:$0xff] %vm2254_vm8, %v2207_v23  ;;  %4175 = vmatmul.mubr.msk.f32.gmra.mrb[12].mxu0 %vm3097_vm13, %v3073_v59  ;;  %v2886_v59 = vld [vmem:[#allocation2 + $0x112] sm:$0xff] }
 0x31d   : > { %2858 = vst.msk [vmem:[#allocation3 + $0xb8] sm:$0xff] %vm2834_vm11, %v2785_v9  ;;  %v3680_v61 = vadd.f32 %v3664_v12, %v3586_v24  ;;  %2790 = vrot.lane.b32.xlu0 %v2122_v11, %s4368_s4  ;;  %v2703_v12 = vld [vmem:[#allocation2 + $0x189] sm:$0xff] }
 0x31e   : > { %2214 = vrot.lane.b32.xlu1 %v2122_v11, %s4365_s22 }
 0x31f   : > { %v6057_v53 = vmul.f32 0.25, %v3680_v61  ;;  %v2574_v15 = vpop.permute.xlu0 %2573 }
 0x320   : > { %v1632_v46 = vpop.permute.xlu1 %1631  ;;  %2656 = vst.msk [vmem:[#allocation3 + $0x70] sm:$0xff] %vm2641_vm10, %v2574_v15 }
 0x321   : > { %1702 = vst.msk [vmem:[#allocation3 + $0xd0] sm:$0xff] %vm1675_vm1, %v1632_v46  ;;  %v3719_v48 = vadd.f32 %v3711_v2, %v6057_v53  ;;  %2023 = vrot.lane.b32.xlu0 %v5631_v34, %s4364_s21 }
 0x322   : > { %2581 = vrot.lane.b32.xlu1 %v2499_v14, %s4367_s24 }
 0x323   : > { %v3727_v13 = vadd.f32 %v3719_v48, %v6057_v53  ;;  %v2976_v47 = vpop.permute.xlu0 %2975 }
 0x324   : > { %v1998_v51 = vpop.permute.xlu1 %1997  ;;  %3050 = vst.msk [vmem:[#allocation3 + $0xb0] sm:$0xff] %vm3027_vm12, %v2976_v47  ;;  %v2895_v47 = vld [vmem:[#allocation2 + $0x182] sm:$0xff] }
 0x325   : > { %2078 = vst.msk [vmem:[#allocation3 + $0x80] sm:$0xff] %vm2061_vm7, %v1998_v51  ;;  %v3735_v60 = vmul.f32 0.25, %v3727_v13  ;;  %2389 = vrot.lane.b32.xlu0 %v2884_v54, %s4366_s23  ;;  %v2896_v13 = vld [vmem:[#allocation2 + $0x18a] sm:$0xff] }
 0x326   : > { %2983 = vrot.lane.b32.xlu1 %v2893_v30, %s4369_s20 }
 0x327   : > { %3743 = vst.msk [vmem:[#allocation3] sm:$0xff] %vm1362_vm0, %v3735_v60  ;;  %v1807_v34 = vpop.permute.xlu0 %1806 }
 0x328   : > { %v2400_v28 = vpop.permute.xlu1 %2399  ;;  %1886 = vst.msk [vmem:[#allocation3 + $0x88] sm:$0xff] %vm1868_vm4, %v1807_v34 }
 0x329   : > { %2472 = vst.msk [vmem:[#allocation3 + $0xc0] sm:$0xff] %vm2447_vm9, %v2400_v28  ;;  %2792 = vrot.lane.b32.xlu0 %v2123_v52, %s4368_s4 }
 0x32a   : > { %2216 = vrot.lane.b32.xlu1 %v2123_v52, %s4365_s22 }
 0x32b   : > { %v4164_v8 = vpop.f32.mrb[4].mxu0  ;;  %v2209_v26 = vpop.permute.xlu0 %2208  ;;  %v3082_v17 = vld [vmem:[#allocation3 + $0xb0] sm:$0xff] }
 0x32c   : > { %v2767_v19 = vpop.permute.xlu1 %2766  ;;  %vm3428_vm6 = vcmp.ge.f32.partialorder %v4164_v8, 0.0  ;;  %v3461_v38 = vmul.f32 %v4164_v8, %v5979_v7  ;;  %v3284_v45 = vpop.f32.mrb[5].mxu0  ;;  %2280 = vst.msk [vmem:[#allocation3 + $0xc8] sm:$0xff] %vm2254_vm8, %v2209_v26  ;;  %4189 = vmatprep.mubr.msk.f32.mxu1 %vm3097_vm13, %v3082_v17  ;;  %v2704_v26 = vld [vmem:[#allocation2 + $0x199] sm:$0xff] }
 0x32d   : > { %2849 = vst.msk [vmem:[#allocation3 + $0x70] sm:$0xff] %vm2834_vm11, %v2767_v19  ;;  %vm3427_vm14 = vcmp.ge.f32.partialorder %v3284_v45, 0.0  ;;  %v3460_v41 = vmul.f32 %v5979_v7, %v3284_v45  ;;  %1639 = vrot.lane.b32.xlu0 %v2122_v11, %s4362_s18 }
 0x32e   : > { %2583 = vrot.lane.b32.xlu1 %v2500_v55, %s4367_s24  ;;  %v3493_v57 = vsel %vm3428_vm6, %v4164_v8, %v3461_v38 }
 0x32f   : > { %3525 = vst.msk [vmem:[#allocation4 + $0x28] sm:$0xff] %vm1362_vm0, %v3493_v57  ;;  %v3492_v42 = vsel %vm3427_vm14, %v3284_v45, %v3460_v41  ;;  %v2576_v10 = vpop.permute.xlu0 %2575 }
 0x330   : > { %v1634_v44 = vpop.permute.xlu1 %1633  ;;  %3524 = vst.msk [vmem:[#allocation4 + $0x20] sm:$0xff] %vm1362_vm0, %v3492_v42 }
 0x331   : > { %1703 = vst.msk [vmem:[#allocation3 + $0xd8] sm:$0xff] %vm1675_vm1, %v1634_v44  ;;  %2407 = vrot.lane.b32.xlu0 %v2893_v30, %s4366_s23 }
 0x332   : > { %2657 = vst.msk [vmem:[#allocation3 + $0x78] sm:$0xff] %vm2641_vm10, %v2576_v10  ;;  %2985 = vrot.lane.b32.xlu1 %v2894_v63, %s4369_s20  ;;  %v2897_v10 = vld [vmem:[#allocation2 + $0x19a] sm:$0xff] }
 0x333   : > { %v2978_v21 = vpop.permute.xlu0 %2977 }
 0x334   : > { %v2000_v1 = vpop.permute.xlu1 %1999  ;;  %3051 = vst.msk [vmem:[#allocation3 + $0xb8] sm:$0xff] %vm3027_vm12, %v2978_v21 }
 0x335   : > { %2079 = vst.msk [vmem:[#allocation3 + $0x88] sm:$0xff] %vm2061_vm7, %v2000_v1  ;;  %2774 = vrot.lane.b32.xlu0 %v2692_v39, %s4368_s4  ;;  %v2512_v1 = vld [vmem:[#allocation2 + $0x1a0] sm:$0xff] }
 0x336   : > { %1832 = vrot.lane.b32.xlu1 %v2893_v30, %s4363_s19  ;;  %v2511_v30 = vld [vmem:[#allocation2 + $0x198] sm:$0xff] }
 0x337   : > { %v1825_v49 = vpop.permute.xlu0 %1824  ;;  %v3588_v56 = vld [vmem:[#allocation4 + $0x21] ss:$2 sm:$0xff]  ;;  %v3556_v25 = vld [vmem:[#allocation4 + $0x20] ss:$2 sm:$0xff] }
 0x338   : > { %v2402_v33 = vpop.permute.xlu1 %2401  ;;  %1895 = vst.msk [vmem:[#allocation3 + $0xd0] sm:$0xff] %vm1868_vm4, %v1825_v49  ;;  %v3617_v24 = vrot.slane %v3588_v56, 7  ;;  %v3649_v54 = vmul.f32 2.0, %v3556_v25 }
 0x339   : > { %2473 = vst.msk [vmem:[#allocation3 + $0xc8] sm:$0xff] %vm2447_vm9, %v2402_v33  ;;  %1641 = vrot.lane.b32.xlu0 %v2123_v52, %s4362_s18 }
 0x33a   : > { %2601 = vrot.lane.b32.xlu1 %v2509_v36, %s4367_s24  ;;  %v3633_v32 = vsel %vm335_vm5, %v3588_v56, %v3617_v24 }
 0x33b   : > { %v2191_v58 = vpop.permute.xlu0 %2190  ;;  %v3083_v31 = vld [vmem:[#allocation3 + $0xb8] sm:$0xff]  ;;  %v3665_v2 = vadd.f32 %v3649_v54, %v3633_v32 }
 0x33c   : > { %v2769_v22 = vpop.permute.xlu1 %2768  ;;  %2271 = vst.msk [vmem:[#allocation3 + $0x80] sm:$0xff] %vm2254_vm8, %v2191_v58  ;;  %4190 = vmatmul.mubr.msk.f32.gmra.mrb[2].mxu1 %vm3097_vm13, %v3083_v31 }
 0x33d   : > { %2850 = vst.msk [vmem:[#allocation3 + $0x78] sm:$0xff] %vm2834_vm11, %v2769_v22  ;;  %2409 = vrot.lane.b32.xlu0 %v2894_v63, %s4366_s23  ;;  %v3681_v48 = vadd.f32 %v3665_v2, %v3588_v56  ;;  %v2705_v22 = vld [vmem:[#allocation2 + $0x1a1] sm:$0xff] }
 0x33e   : > { %2967 = vrot.lane.b32.xlu1 %v2885_v37, %s4369_s20  ;;  %v2898_v37 = vld [vmem:[#allocation2 + $0x1a2] sm:$0xff] }
 0x33f   : > { %v2594_v29 = vpop.permute.xlu0 %2593  ;;  %v3697_v52 = vmul.f32 0.25, %v3681_v48 }
 0x340   : > { %v1616_v20 = vpop.permute.xlu1 %1615  ;;  %2666 = vst.msk [vmem:[#allocation3 + $0xc0] sm:$0xff] %vm2641_vm10, %v2594_v29 }
 0x341   : > { %1694 = vst.msk [vmem:[#allocation3 + $0x90] sm:$0xff] %vm1675_vm1, %v1616_v20  ;;  %2776 = vrot.lane.b32.xlu0 %v2693_v35, %s4368_s4  ;;  %v3712_v41 = vmul.f32 2.0, %v3697_v52 }
 0x342   : > { %2025 = vrot.lane.b32.xlu1 %v2509_v36, %s4364_s21 }
 0x343   : > { %v2960_v18 = vpop.permute.xlu0 %2959  ;;  %v3720_v39 = vadd.f32 %v3712_v41, %v6057_v53 }
 0x344   : > { %v2018_v50 = vpop.permute.xlu1 %2017  ;;  %3042 = vst.msk [vmem:[#allocation3 + $0x70] sm:$0xff] %vm3027_vm12, %v2960_v18 }
 0x345   : > { %2088 = vst.msk [vmem:[#allocation3 + $0xd0] sm:$0xff] %vm2061_vm7, %v2018_v50  ;;  %1834 = vrot.lane.b32.xlu0 %v2894_v63, %s4363_s19 }
 0x346   : > { %2794 = vrot.lane.b32.xlu1 %v2702_v40, %s4368_s4 }
 0x347   : > { %v1827_v6 = vpop.permute.xlu0 %1826 }
 0x348   : > { %v2384_v5 = vpop.permute.xlu1 %2383  ;;  %1896 = vst.msk [vmem:[#allocation3 + $0xd8] sm:$0xff] %vm1868_vm4, %v1827_v6 }
 0x349   : > { %2464 = vst.msk [vmem:[#allocation3 + $0x80] sm:$0xff] %vm2447_vm9, %v2384_v5  ;;  %2603 = vrot.lane.b32.xlu0 %v1932_v16, %s4367_s24 }
 0x34a   : > { %2027 = vrot.lane.b32.xlu1 %v1932_v16, %s4364_s21  ;;  %s244_s21 = sand.u32 1, %s4347_s26  }
 0x34b   : > { %v4167_v43 = vpop.f32.mrb[6].mxu0  ;;  %v2193_v62 = vpop.permute.xlu0 %2192  ;;  %v3074_v9 = vld [vmem:[#allocation3 + $0x70] sm:$0xff]  ;;  %s6433_s16 = scalar_lea.sflag [#allocation8], %s244_s21 }
 0x34c   : > { %v2787_v0 = vpop.permute.xlu1 %2786  ;;  %vm3430_vm15 = vcmp.ge.f32.partialorder %v4167_v43, 0.0  ;;  %v3463_v3 = vmul.f32 %v4167_v43, %v5979_v7  ;;  %v3294_v4 = vpop.f32.mrb[7].mxu0  ;;  %2272 = vst.msk [vmem:[#allocation3 + $0x88] sm:$0xff] %vm2254_vm8, %v2193_v62  ;;  %4177 = vmatprep.mubr.msk.f32.mxu0 %vm3097_vm13, %v3074_v9 }
 0x34d   : > { %2859 = vst.msk [vmem:[#allocation3 + $0xc0] sm:$0xff] %vm2834_vm11, %v2787_v0  ;;  %vm3429_vm2 = vcmp.ge.f32.partialorder %v3294_v4, 0.0  ;;  %v3462_v23 = vmul.f32 %v5979_v7, %v3294_v4  ;;  %2969 = vrot.lane.b32.xlu0 %v2886_v59, %s4369_s20 }
 0x34e   : > { %2796 = vrot.lane.b32.xlu1 %v2703_v12, %s4368_s4  ;;  %v3495_v11 = vsel %vm3430_vm15, %v4167_v43, %v3463_v3 }
 0x34f   : > { %3527 = vst.msk [vmem:[#allocation4 + $0x38] sm:$0xff] %vm1362_vm0, %v3495_v11  ;;  %v3494_v61 = vsel %vm3429_vm2, %v3294_v4, %v3462_v23  ;;  %v2596_v15 = vpop.permute.xlu0 %2595  ;;  %vm3800_vm2 = vcmask 64512  }
 0x350   : > { %v1618_v46 = vpop.permute.xlu1 %1617  ;;  %3526 = vst.msk [vmem:[#allocation4 + $0x30] sm:$0xff] %vm1362_vm0, %v3494_v61 }
 0x351   : > { %1695 = vst.msk [vmem:[#allocation3 + $0x98] sm:$0xff] %vm1675_vm1, %v1618_v46  ;;  %2218 = vrot.lane.b32.xlu0 %v2702_v40, %s4365_s22 }
 0x352   : > { %2667 = vst.msk [vmem:[#allocation3 + $0xc8] sm:$0xff] %vm2641_vm10, %v2596_v15  ;;  %2220 = vrot.lane.b32.xlu1 %v2703_v12, %s4365_s22  ;;  %s4018_s22 = sshll.u32 %s244_s21, 6 }
 0x353   : > { %v2962_v51 = vpop.permute.xlu0 %2961 }
 0x354   : > { %v2020_v14 = vpop.permute.xlu1 %2019  ;;  %3043 = vst.msk [vmem:[#allocation3 + $0x78] sm:$0xff] %vm3027_vm12, %v2962_v51 }
 0x355   : > { %2089 = vst.msk [vmem:[#allocation3 + $0xd8] sm:$0xff] %vm2061_vm7, %v2020_v14  ;;  %2987 = vrot.lane.b32.xlu0 %v2895_v47, %s4369_s20 }
 0x356   : > { %2989 = vrot.lane.b32.xlu1 %v2896_v13, %s4369_s20 }
 0x357   : > { %v3558_v28 = vld [vmem:[#allocation4 + $0x30] ss:$2 sm:$0xff]  ;;  %v3590_v34 = vld [vmem:[#allocation4 + $0x31] ss:$2 sm:$0xff]  ;;  %v1809_v19 = vpop.permute.xlu0 %1808 }
 0x358   : > { %v2386_v60 = vpop.permute.xlu1 %2385  ;;  %v3618_v8 = vrot.slane %v3590_v34, 7  ;;  %v3650_v38 = vmul.f32 2.0, %v3558_v28  ;;  %1887 = vst.msk [vmem:[#allocation3 + $0x90] sm:$0xff] %vm1868_vm4, %v1809_v19 }
 0x359   : > { %2465 = vst.msk [vmem:[#allocation3 + $0x88] sm:$0xff] %vm2447_vm9, %v2386_v60  ;;  %2411 = vrot.lane.b32.xlu0 %v2895_v47, %s4366_s23 }
 0x35a   : > { %2605 = vrot.lane.b32.xlu1 %v2511_v30, %s4367_s24  ;;  %v3634_v45 = vsel %vm335_vm5, %v3590_v34, %v3618_v8 }
 0x35b   : > { %v3666_v55 = vadd.f32 %v3650_v38, %v3634_v45  ;;  %v2211_v57 = vpop.permute.xlu0 %2210  ;;  %v3075_v42 = vld [vmem:[#allocation3 + $0x78] sm:$0xff] }
 0x35c   : > { %v2789_v17 = vpop.permute.xlu1 %2788  ;;  %2281 = vst.msk [vmem:[#allocation3 + $0xd0] sm:$0xff] %vm2254_vm8, %v2211_v57  ;;  %4178 = vmatmul.mubr.msk.f32.gmra.mrb[14].mxu0 %vm3097_vm13, %v3075_v42 }
 0x35d   : > { %2860 = vst.msk [vmem:[#allocation3 + $0xc8] sm:$0xff] %vm2834_vm11, %v2789_v17  ;;  %v3682_v44 = vadd.f32 %v3666_v55, %v3590_v34  ;;  %2413 = vrot.lane.b32.xlu0 %v2896_v13, %s4366_s23  ;;  %s246_s23 = scalar_lea.vmem [#allocation7], %s4018_s22 }
 0x35e   : > { %2798 = vrot.lane.b32.xlu1 %v2704_v26, %s4368_s4 }
 0x35f   : > { %v6143_v21 = vmul.f32 0.25, %v3682_v44  ;;  %v2578_v33 = vpop.permute.xlu0 %2577 }
 0x360   : > { %v1636_v63 = vpop.permute.xlu1 %1635  ;;  %2658 = vst.msk [vmem:[#allocation3 + $0x80] sm:$0xff] %vm2641_vm10, %v2578_v33 }
 0x361   : > { %1704 = vst.msk [vmem:[#allocation3 + $0xe0] sm:$0xff] %vm1675_vm1, %v1636_v63  ;;  %v3728_v49 = vadd.f32 %v3720_v39, %v6143_v21  ;;  %2607 = vrot.lane.b32.xlu0 %v2512_v1, %s4367_s24  ;;  %s4099_s24 = sshll.u32 %s4434_s2, 10 }
 0x362   : > { %2991 = vrot.lane.b32.xlu1 %v2897_v10, %s4369_s20  ;;  %s6427_s14 = scalar_lea.hbm %s6481_s6, %s4099_s24 }
 0x363   : > { %v3736_v58 = vmul.f32 0.25, %v3728_v49  ;;  %v2980_v31 = vpop.permute.xlu0 %2979 }
 0x364   : > { %v2002_v36 = vpop.permute.xlu1 %2001  ;;  %3052 = vst.msk [vmem:[#allocation3 + $0xc0] sm:$0xff] %vm3027_vm12, %v2980_v31 }
 0x365   : > { %2080 = vst.msk [vmem:[#allocation3 + $0x90] sm:$0xff] %vm2061_vm7, %v2002_v36  ;;  %2800 = vrot.lane.b32.xlu0 %v2705_v22, %s4368_s4  ;;  %s3952_s4 = sshll.u32 %s246_s23, 4  ;;  %s6429_s4 = int_to_ptr.vmem [resolvable:$true] %s3952_s4 }
 0x366   : > { %3744 = vst.msk [vmem:[#allocation3 + $0x10] sm:$0xff] %vm1362_vm0, %v3736_v58  ;;  %s4293_s2 = scalar_lea.vmem %s6429_s4, 1024 }
 0x367   : > { %v1811_v20 = vpop.permute.xlu0 %1810  ;;  %p4294_p11 = scmp.ne.s32.totalorder %s6429_s4, %s4293_s2 }
 0x368   : > { %v2404_v53 = vpop.permute.xlu1 %2403  ;;  %1888 = vst.msk [vmem:[#allocation3 + $0x98] sm:$0xff] %vm1868_vm4, %v1811_v20 }
 0x369   : > { %2474 = vst.msk [vmem:[#allocation3 + $0xd0] sm:$0xff] %vm2447_vm9, %v2404_v53  ;;  %2993 = vrot.lane.b32.xlu0 %v2898_v37, %s4369_s20  ;;  %p4295_p12 = pnand %p4294_p11, %p4451_p5  ;;  %s4297_s20 = sshll.u32 %s4370_s17, 4  ;;  %s4298_s20 = int_to_ptr.vmem [resolvable:$false] %s4297_s20 }
 0x36a   : > { %s4299_s30 = scalar_lea.vmem %s4298_s20, 2048  ;;  %p4300_p0 = scmp.lt.s32.totalorder %s6429_s4, %s4298_s20 }
 0x36b   : > { %v2213_v35 = vpop.permute.xlu0 %2212  ;;  %v3084_v50 = vld [vmem:[#allocation3 + $0xc0] sm:$0xff]  ;;  %p4296_p13 = pneg %p4295_p12  ;;  %p4301_p1 = scmp.lt.s32.totalorder %s4299_s30, %s4293_s2 }
 0x36c   : > { %v2771_v29 = vpop.permute.xlu1 %2770  ;;  %2282 = vst.msk [vmem:[#allocation3 + $0xd8] sm:$0xff] %vm2254_vm8, %v2213_v35  ;;  %4192 = vmatprep.mubr.msk.f32.mxu1 %vm3097_vm13, %v3084_v50 }
 0x36d   : > { %2851 = vst.msk [vmem:[#allocation3 + $0x80] sm:$0xff] %vm2834_vm11, %v2771_v29  ;;  %p4302_p2 = por %p4301_p1, %p4300_p0 }
 0x36f   : > { %v2580_v5 = vpop.permute.xlu0 %2579  ;;  %p4303_p3 = pnand %p4302_p2, %p4296_p13 }
 0x370   : > { %v1638_v18 = vpop.permute.xlu1 %1637  ;;  %v4170_v40 = vpop.f32.mrb[8].mxu0  ;;  %2659 = vst.msk [vmem:[#allocation3 + $0x88] sm:$0xff] %vm2641_vm10, %v2580_v5 }
 0x371   : > { %1705 = vst.msk [vmem:[#allocation3 + $0xe8] sm:$0xff] %vm1675_vm1, %v1638_v18  ;;  %vm3432_vm3 = vcmp.ge.f32.partialorder %v4170_v40, 0.0  ;;  %v3465_v56 = vmul.f32 %v4170_v40, %v5979_v7  ;;  %v3304_v6 = vpop.f32.mrb[9].mxu0 }
 0x372   : > { %vm3431_vm6 = vcmp.ge.f32.partialorder %v3304_v6, 0.0  ;;  %v3464_v16 = vmul.f32 %v5979_v7, %v3304_v6 }
 0x373   : > { %v3497_v25 = vsel %vm3432_vm3, %v4170_v40, %v3465_v56  ;;  %v2982_v43 = vpop.permute.xlu0 %2981 }
 0x374   : > { %3529 = vst.msk [vmem:[#allocation4 + $0x48] sm:$0xff] %vm1362_vm0, %v3497_v25  ;;  %v3496_v24 = vsel %vm3431_vm6, %v3304_v6, %v3464_v16  ;;  %v2004_v0 = vpop.permute.xlu1 %2003 }
 0x375   : > { %3528 = vst.msk [vmem:[#allocation4 + $0x40] sm:$0xff] %vm1362_vm0, %v3496_v24 }
 0x376   : > { %2081 = vst.msk [vmem:[#allocation3 + $0x98] sm:$0xff] %vm2061_vm7, %v2004_v0 }
 0x377   : > { %3053 = vst.msk [vmem:[#allocation3 + $0xc8] sm:$0xff] %vm3027_vm12, %v2982_v43  ;;  %v1829_v3 = vpop.permute.xlu0 %1828 }
 0x378   : > { %v2406_v54 = vpop.permute.xlu1 %2405  ;;  %1897 = vst.msk [vmem:[#allocation3 + $0xe0] sm:$0xff] %vm1868_vm4, %v1829_v3 }
 0x379   : > { %2475 = vst.msk [vmem:[#allocation3 + $0xd8] sm:$0xff] %vm2447_vm9, %v2406_v54 }
 0x37b   : > { %v2195_v4 = vpop.permute.xlu0 %2194 }
 0x37c   : > { %v2773_v62 = vpop.permute.xlu1 %2772  ;;  %2273 = vst.msk [vmem:[#allocation3 + $0x90] sm:$0xff] %vm2254_vm8, %v2195_v4  ;;  %v3592_v55 = vld [vmem:[#allocation4 + $0x41] ss:$2 sm:$0xff]  ;;  %v3560_v44 = vld [vmem:[#allocation4 + $0x40] ss:$2 sm:$0xff] }
 0x37d   : > { %2852 = vst.msk [vmem:[#allocation3 + $0x88] sm:$0xff] %vm2834_vm11, %v2773_v62  ;;  %v3619_v10 = vrot.slane %v3592_v55, 7  ;;  %v3651_v39 = vmul.f32 2.0, %v3560_v44 }
 0x37e   : > { %v3085_v9 = vld [vmem:[#allocation3 + $0xc8] sm:$0xff] }
 0x37f   : > { %4193 = vmatmul.mubr.msk.f32.gmra.mrb[4].mxu1 %vm3097_vm13, %v3085_v9  ;;  %v2598_v32 = vpop.permute.xlu0 %2597  ;;  %v3635_v22 = vsel %vm335_vm5, %v3592_v55, %v3619_v10 }
 0x380   : > { %v1831_v12 = vpop.permute.xlu1 %1830  ;;  %2668 = vst.msk [vmem:[#allocation3 + $0xd0] sm:$0xff] %vm2641_vm10, %v2598_v32  ;;  %v3667_v20 = vadd.f32 %v3651_v39, %v3635_v22 }
 0x381   : > { %1898 = vst.msk [vmem:[#allocation3 + $0xe8] sm:$0xff] %vm1868_vm4, %v1831_v12  ;;  %v4036_v12 = vld [vmem:[%s4466_s15 + $0x1] ss:$2 sm:$0xff] }
 0x382   : > { %v3683_v18 = vadd.f32 %v3667_v20, %v3592_v55 }
 0x383   : > { %v2964_v59 = vpop.permute.xlu0 %2963 }
 0x384   : > { %v2197_v23 = vpop.permute.xlu1 %2196  ;;  %3044 = vst.msk [vmem:[#allocation3 + $0x80] sm:$0xff] %vm3027_vm12, %v2964_v59  ;;  %v3699_v16 = vmul.f32 0.25, %v3683_v18  ;;  %v317_v59 = vrot.slane %v4036_v12, 7 }
 0x385   : > { %2274 = vst.msk [vmem:[#allocation3 + $0x98] sm:$0xff] %vm2254_vm8, %v2197_v23  ;;  %v254_v23 = vld [vmem:[%s4466_s15] ss:$2 sm:$0xff] }
 0x386   : > { %v3713_v62 = vmul.f32 2.0, %v3699_v16 }
 0x387   : > { %v2022_v61 = vpop.permute.xlu0 %2021 }
 0x388   : > { %v2600_v11 = vpop.permute.xlu1 %2599  ;;  %2090 = vst.msk [vmem:[#allocation3 + $0xe0] sm:$0xff] %vm2061_vm7, %v2022_v61 }
 0x389   : > { %2669 = vst.msk [vmem:[#allocation3 + $0xd8] sm:$0xff] %vm2641_vm10, %v2600_v11  ;;  %v4038_v11 = vld [vmem:[%s4466_s15 + $0x21] ss:$2 sm:$0xff] }
 0x38b   : > { %v2388_v2 = vpop.permute.xlu0 %2387  ;;  %v3076_v15 = vld [vmem:[#allocation3 + $0x80] sm:$0xff] }
 0x38c   : > { %v2966_v46 = vpop.permute.xlu1 %2965  ;;  %2466 = vst.msk [vmem:[#allocation3 + $0x90] sm:$0xff] %vm2447_vm9, %v2388_v2  ;;  %4180 = vmatprep.mubr.msk.f32.mxu0 %vm3097_vm13, %v3076_v15  ;;  %v4037_v15 = vld [vmem:[%s4466_s15 + $0x11] ss:$2 sm:$0xff] }
 0x38d   : > { %3045 = vst.msk [vmem:[#allocation3 + $0x88] sm:$0xff] %vm3027_vm12, %v2966_v46  ;;  %v3721_v46 = vadd.f32 %v3713_v62, %v6143_v21 }
 0x38f   : > { %v2791_v48 = vpop.permute.xlu0 %2790 }
 0x390   : > { %v2215_v14 = vpop.permute.xlu1 %2214  ;;  %2861 = vst.msk [vmem:[#allocation3 + $0xd0] sm:$0xff] %vm2834_vm11, %v2791_v48  ;;  %v4022_v48 = vld [vmem:[%s4466_s15 + $0x20] ss:$2 sm:$0xff] }
 0x391   : > { %2283 = vst.msk [vmem:[#allocation3 + $0xe0] sm:$0xff] %vm2254_vm8, %v2215_v14  ;;  %v352_v14 = vmul.f32 2.0, %v254_v23 }
 0x393   : > { %v2024_v47 = vpop.permute.xlu0 %2023 }
 0x394   : > { %v2582_v51 = vpop.permute.xlu1 %2581  ;;  %v3077_v13 = vld [vmem:[#allocation3 + $0x88] sm:$0xff]  ;;  %2091 = vst.msk [vmem:[#allocation3 + $0xe8] sm:$0xff] %vm2061_vm7, %v2024_v47  ;;  %v318_v47 = vrot.slane %v4037_v15, 7 }
 0x395   : > { %2660 = vst.msk [vmem:[#allocation3 + $0x90] sm:$0xff] %vm2641_vm10, %v2582_v51  ;;  %4181 = vmatmul.mubr.msk.f32.gmra.mrb[16].mxu0 %vm3097_vm13, %v3077_v13  ;;  %v319_v51 = vrot.slane %v4038_v11, 7  ;;  %v4021_v13 = vld [vmem:[%s4466_s15 + $0x10] ss:$2 sm:$0xff] }
 0x397   : > { %v2390_v60 = vpop.permute.xlu0 %2389 }
 0x398   : > { %v2984_v30 = vpop.permute.xlu1 %2983  ;;  %2467 = vst.msk [vmem:[#allocation3 + $0x98] sm:$0xff] %vm2447_vm9, %v2390_v60  ;;  %v354_v60 = vmul.f32 2.0, %v4022_v48 }
 0x399   : > { %3054 = vst.msk [vmem:[#allocation3 + $0xd0] sm:$0xff] %vm3027_vm12, %v2984_v30  ;;  %v336_v30 = vsel %vm335_vm5, %v4036_v12, %v317_v59 }
 0x39b   : > { %v2793_v34 = vpop.permute.xlu0 %2792 }
 0x39c   : > { %v2217_v28 = vpop.permute.xlu1 %2216  ;;  %2862 = vst.msk [vmem:[#allocation3 + $0xd8] sm:$0xff] %vm2834_vm11, %v2793_v34  ;;  %v368_v34 = vadd.f32 %v352_v14, %v336_v30 }
 0x39d   : > { %2284 = vst.msk [vmem:[#allocation3 + $0xe8] sm:$0xff] %vm2254_vm8, %v2217_v28  ;;  %v353_v28 = vmul.f32 2.0, %v4021_v13 }
 0x39e   : > { %v384_v10 = vadd.f32 %v4036_v12, %v368_v34  ;;  %v4028_v34 = vld [vmem:[%s4466_s15 + $0x80] ss:$2 sm:$0xff] }
 0x39f   : > { %v1640_v8 = vpop.permute.xlu0 %1639 }
 0x3a0   : > { %v2584_v52 = vpop.permute.xlu1 %2583  ;;  %v3086_v19 = vld [vmem:[#allocation3 + $0xd0] sm:$0xff]  ;;  %1706 = vst.msk [vmem:[#allocation3 + $0xf0] sm:$0xff] %vm1675_vm1, %v1640_v8 }
 0x3a1   : > { %2661 = vst.msk [vmem:[#allocation3 + $0x98] sm:$0xff] %vm2641_vm10, %v2584_v52  ;;  %4195 = vmatprep.mubr.msk.f32.mxu1 %vm3097_vm13, %v3086_v19  ;;  %v338_v52 = vsel %vm335_vm5, %v4038_v11, %v319_v51  ;;  %v4040_v19 = vld [vmem:[%s4466_s15 + $0x41] ss:$2 sm:$0xff] }
 0x3a2   : > { %v321_v55 = vrot.slane %v4040_v19, 7 }
 0x3a3   : > { %v2408_v26 = vpop.permute.xlu0 %2407 }
 0x3a4   : > { %v2986_v38 = vpop.permute.xlu1 %2985  ;;  %2476 = vst.msk [vmem:[#allocation3 + $0xe0] sm:$0xff] %vm2447_vm9, %v2408_v26  ;;  %v4039_v26 = vld [vmem:[%s4466_s15 + $0x31] ss:$2 sm:$0xff]  ;;  %v340_v22 = vsel %vm335_vm5, %v4040_v19, %v321_v55 }
 0x3a5   : > { %3055 = vst.msk [vmem:[#allocation3 + $0xd8] sm:$0xff] %vm3027_vm12, %v2986_v38  ;;  %v337_v38 = vsel %vm335_vm5, %v4037_v15, %v318_v47 }
 0x3a6   : > { %v369_v44 = vadd.f32 %v353_v28, %v337_v38 }
 0x3a7   : > { %v2775_v17 = vpop.permute.xlu0 %2774 }
 0x3a8   : > { %v1833_v45 = vpop.permute.xlu1 %1832  ;;  %2853 = vst.msk [vmem:[#allocation3 + $0x90] sm:$0xff] %vm2834_vm11, %v2775_v17  ;;  %v4024_v17 = vld [vmem:[%s4466_s15 + $0x40] ss:$2 sm:$0xff] }
 0x3a9   : > { %1899 = vst.msk [vmem:[#allocation3 + $0xf0] sm:$0xff] %vm1868_vm4, %v1833_v45  ;;  %v370_v45 = vadd.f32 %v354_v60, %v338_v52  ;;  %v356_v39 = vmul.f32 2.0, %v4024_v17  ;;  %v4044_v52 = vld [vmem:[%s4466_s15 + $0x81] ss:$2 sm:$0xff] }
 0x3ab   : > { %v1642_v42 = vpop.permute.xlu0 %1641 }
 0x3ac   : > { %v2602_v41 = vpop.permute.xlu1 %2601  ;;  %v3087_v57 = vld [vmem:[#allocation3 + $0xd8] sm:$0xff]  ;;  %1707 = vst.msk [vmem:[#allocation3 + $0xf8] sm:$0xff] %vm1675_vm1, %v1642_v42 }
 0x3ad   : > { %2670 = vst.msk [vmem:[#allocation3 + $0xe0] sm:$0xff] %vm2641_vm10, %v2602_v41  ;;  %4196 = vmatmul.mubr.msk.f32.gmra.mrb[6].mxu1 %vm3097_vm13, %v3087_v57 }
 0x3af   : > { %v4173_v1 = vpop.f32.mrb[10].mxu0  ;;  %v2410_v49 = vpop.permute.xlu0 %2409 }
 0x3b0   : > { %v2968_v63 = vpop.permute.xlu1 %2967  ;;  %vm3434_vm14 = vcmp.ge.f32.partialorder %v4173_v1, 0.0  ;;  %v3467_v33 = vmul.f32 %v4173_v1, %v5979_v7  ;;  %v3314_v36 = vpop.f32.mrb[11].mxu0  ;;  %2477 = vst.msk [vmem:[#allocation3 + $0xe8] sm:$0xff] %vm2447_vm9, %v2410_v49  ;;  %v386_v49 = vadd.f32 %v4038_v11, %v370_v45  ;;  %v4045_v45 = vld [vmem:[%s4466_s15 + $0x91] ss:$2 sm:$0xff] }
 0x3b1   : > { %3046 = vst.msk [vmem:[#allocation3 + $0x90] sm:$0xff] %vm3027_vm12, %v2968_v63  ;;  %vm3433_vm15 = vcmp.ge.f32.partialorder %v3314_v36, 0.0  ;;  %v3466_v58 = vmul.f32 %v5979_v7, %v3314_v36  ;;  %v4023_v63 = vld [vmem:[%s4466_s15 + $0x30] ss:$2 sm:$0xff] }
 0x3b2   : > { %v3499_v31 = vsel %vm3434_vm14, %v4173_v1, %v3467_v33  ;;  %v320_v1 = vrot.slane %v4039_v26, 7  ;;  %v355_v33 = vmul.f32 2.0, %v4023_v63  ;;  %v402_v18 = vmul.f32 0.25, %v386_v49 }
 0x3b3   : > { %3531 = vst.msk [vmem:[#allocation4 + $0x58] sm:$0xff] %vm1362_vm0, %v3499_v31  ;;  %v3498_v53 = vsel %vm3433_vm15, %v3314_v36, %v3466_v58  ;;  %v2777_v29 = vpop.permute.xlu0 %2776  ;;  %v4041_v36 = vld [vmem:[%s4466_s15 + $0x51] ss:$2 sm:$0xff]  ;;  %v385_v58 = vadd.f32 %v4037_v15, %v369_v44  ;;  %v400_v31 = vmul.f32 0.25, %v384_v10 }
 0x3b4   : > { %v2026_v37 = vpop.permute.xlu1 %2025  ;;  %3530 = vst.msk [vmem:[#allocation4 + $0x50] sm:$0xff] %vm1362_vm0, %v3498_v53  ;;  %v339_v53 = vsel %vm335_vm5, %v4039_v26, %v320_v1  ;;  %v322_v20 = vrot.slane %v4041_v36, 7 }
 0x3b5   : > { %2092 = vst.msk [vmem:[#allocation3 + $0xf0] sm:$0xff] %vm2061_vm7, %v2026_v37  ;;  %v4025_v37 = vld [vmem:[%s4466_s15 + $0x50] ss:$2 sm:$0xff] }
 0x3b6   : > { %2854 = vst.msk [vmem:[#allocation3 + $0x98] sm:$0xff] %vm2834_vm11, %v2777_v29  ;;  %v4042_v29 = vld [vmem:[%s4466_s15 + $0x61] ss:$2 sm:$0xff] }
 0x3b7   : > { %v1835_v40 = vpop.permute.xlu0 %1834 }
 0x3b8   : > { %v2795_v35 = vpop.permute.xlu1 %2794  ;;  %v3078_v50 = vld [vmem:[#allocation3 + $0x90] sm:$0xff]  ;;  %1900 = vst.msk [vmem:[#allocation3 + $0xf8] sm:$0xff] %vm1868_vm4, %v1835_v40  ;;  %v357_v40 = vmul.f32 2.0, %v4025_v37 }
 0x3b9   : > { %2863 = vst.msk [vmem:[#allocation3 + $0xe0] sm:$0xff] %vm2834_vm11, %v2795_v35  ;;  %4183 = vmatprep.mubr.msk.f32.mxu0 %vm3097_vm13, %v3078_v50  ;;  %v371_v50 = vadd.f32 %v355_v33, %v339_v53 }
 0x3bb   : > { %v3562_v5 = vld [vmem:[#allocation4 + $0x50] ss:$2 sm:$0xff]  ;;  %v3594_v6 = vld [vmem:[#allocation4 + $0x51] ss:$2 sm:$0xff]  ;;  %v2604_v25 = vpop.permute.xlu0 %2603 }
 0x3bc   : > { %v2028_v56 = vpop.permute.xlu1 %2027  ;;  %v3620_v24 = vrot.slane %v3594_v6, 7  ;;  %v3652_v0 = vmul.f32 2.0, %v3562_v5  ;;  %2671 = vst.msk [vmem:[#allocation3 + $0xe8] sm:$0xff] %vm2641_vm10, %v2604_v25  ;;  %v4026_v5 = vld [vmem:[%s4466_s15 + $0x60] ss:$2 sm:$0xff]  ;;  %v401_v25 = vmul.f32 0.25, %v385_v58 }
 0x3bd   : > { %2093 = vst.msk [vmem:[#allocation3 + $0xf8] sm:$0xff] %vm2061_vm7, %v2028_v56  ;;  %v372_v56 = vadd.f32 %v356_v39, %v340_v22  ;;  %v358_v59 = vmul.f32 2.0, %v4026_v5  ;;  %v4046_v39 = vld [vmem:[%s4466_s15 + $0xa1] ss:$2 sm:$0xff]  ;;  %v325_v22 = vrot.slane %v4044_v52, 7  ;;  %v326_v58 = vrot.slane %v4045_v45, 7 }
 0x3be   : > { %v3636_v43 = vsel %vm335_vm5, %v3594_v6, %v3620_v24  ;;  %v416_v24 = vmul.f32 2.0, %v400_v31  ;;  %v4030_v31 = vld [vmem:[%s4466_s15 + $0xa0] ss:$2 sm:$0xff]  ;;  %v327_v5 = vrot.slane %v4046_v39, 7 }
 0x3bf   : > { %v3668_v3 = vadd.f32 %v3652_v0, %v3636_v43  ;;  %v2970_v4 = vpop.permute.xlu0 %2969  ;;  %v341_v0 = vsel %vm335_vm5, %v4041_v36, %v322_v20  ;;  %v323_v43 = vrot.slane %v4042_v29, 7  ;;  %v360_v20 = vmul.f32 2.0, %v4028_v34 }
 0x3c0   : > { %v2797_v54 = vpop.permute.xlu1 %2796  ;;  %3047 = vst.msk [vmem:[#allocation3 + $0x98] sm:$0xff] %vm3027_vm12, %v2970_v4  ;;  %v373_v62 = vadd.f32 %v357_v40, %v341_v0  ;;  %v388_v4 = vadd.f32 %v4040_v19, %v372_v56  ;;  %v424_v12 = vadd.f32 %v416_v24, %v401_v25  ;;  %v345_v40 = vsel %vm335_vm5, %v4045_v45, %v326_v58  ;;  %v4031_v56 = vld [vmem:[%s4466_s15 + $0xb0] ss:$2 sm:$0xff] }
 0x3c1   : > { %2864 = vst.msk [vmem:[#allocation3 + $0xe8] sm:$0xff] %vm2834_vm11, %v2797_v54  ;;  %v3684_v9 = vadd.f32 %v3668_v3, %v3594_v6  ;;  %v6256_v6 = vld [vmem:[%s4466_s15 + $0x71] ss:$2 sm:$0xff]  ;;  %v387_v54 = vadd.f32 %v4039_v26, %v371_v50  ;;  %v417_v3 = vmul.f32 2.0, %v402_v18  ;;  %v342_v23 = vsel %vm335_vm5, %v4042_v29, %v323_v43  ;;  %v4048_v43 = vld [vmem:[%s4466_s15 + $0xc1] ss:$2 sm:$0xff] }
 0x3c2   : > { %v389_v14 = vadd.f32 %v4041_v36, %v373_v62  ;;  %v404_v48 = vmul.f32 0.25, %v388_v4  ;;  %v432_v30 = vadd.f32 %v424_v12, %v401_v25  ;;  %v374_v28 = vadd.f32 %v358_v59, %v342_v23 }
 0x3c3   : > { %v6224_v61 = vmul.f32 0.25, %v3684_v9  ;;  %v2219_v2 = vpop.permute.xlu0 %2218  ;;  %v4027_v9 = vld [vmem:[%s4466_s15 + $0x70] ss:$2 sm:$0xff]  ;;  %v425_v15 = vadd.f32 %v417_v3, %v401_v25  ;;  %v344_v18 = vsel %vm335_vm5, %v4044_v52, %v325_v22  ;;  %v346_v4 = vsel %vm335_vm5, %v4046_v39, %v327_v5 }
 0x3c4   : > { %v2221_v32 = vpop.permute.xlu1 %2220  ;;  %2285 = vst.msk [vmem:[#allocation3 + $0xf0] sm:$0xff] %vm2254_vm8, %v2219_v2  ;;  %v403_v2 = vmul.f32 0.25, %v387_v54  ;;  %v405_v26 = vmul.f32 0.25, %v389_v14  ;;  %v440_v55 = vmul.f32 0.25, %v432_v30  ;;  %v390_v1 = vadd.f32 %v4042_v29, %v374_v28  ;;  %v4051_v28 = vld [vmem:[%s4466_s15 + $0xf1] ss:$2 sm:$0xff] }
 0x3c5   : > { %2286 = vst.msk [vmem:[#allocation3 + $0xf8] sm:$0xff] %vm2254_vm8, %v2221_v32  ;;  %v3729_v21 = vadd.f32 %v3721_v46, %v6224_v61  ;;  %v324_v32 = vrot.slane %v6256_v6, 7  ;;  %v376_v24 = vadd.f32 %v360_v20, %v344_v18  ;;  %v363_v59 = vmul.f32 2.0, %v4031_v56 }
 0x3c6   : > { %v433_v38 = vadd.f32 %v425_v15, %v403_v2  ;;  %3759 = vrot.lane.b32.xlu1 %v440_v55, %s4362_s18  ;;  %v406_v37 = vmul.f32 0.25, %v390_v1  ;;  %v4033_v15 = vld [vmem:[%s4466_s15 + $0xd0] ss:$2 sm:$0xff]  ;;  %v329_v14 = vrot.slane %v4048_v43, 7 }
 0x3c7   : > { %v3737_v41 = vmul.f32 0.25, %v3729_v21  ;;  %v2988_v57 = vpop.permute.xlu0 %2987  ;;  %v3079_v42 = vld [vmem:[#allocation3 + $0x98] sm:$0xff]  ;;  %v343_v60 = vsel %vm335_vm5, %v6256_v6, %v324_v32  ;;  %v359_v21 = vmul.f32 2.0, %v4027_v9  ;;  %v362_v9 = vmul.f32 2.0, %v4030_v31 }
 0x3c8   : > { %v2990_v8 = vpop.permute.xlu1 %2989  ;;  %3056 = vst.msk [vmem:[#allocation3 + $0xe0] sm:$0xff] %vm3027_vm12, %v2988_v57  ;;  %4184 = vmatmul.mubr.msk.f32.gmra.mrb[18].mxu0 %vm3097_vm13, %v3079_v42  ;;  %v4029_v57 = vld [vmem:[%s4466_s15 + $0x90] ss:$2 sm:$0xff]  ;;  %v441_v10 = vmul.f32 0.25, %v433_v38  ;;  %v419_v25 = vmul.f32 2.0, %v406_v37  ;;  %v392_v32 = vadd.f32 %v4044_v52, %v376_v24 }
 0x3c9   : > { %3057 = vst.msk [vmem:[#allocation3 + $0xe8] sm:$0xff] %vm3027_vm12, %v2990_v8  ;;  %v375_v63 = vadd.f32 %v359_v21, %v343_v60  ;;  %v361_v29 = vmul.f32 2.0, %v4029_v57 }
 0x3ca   : > { %3745 = vst.msk [vmem:[#allocation3 + $0x20] sm:$0xff] %vm1362_vm0, %v3737_v41  ;;  %v418_v41 = vmul.f32 2.0, %v404_v48  ;;  %3761 = vrot.lane.b32.xlu0 %v441_v10, %s4362_s18  ;;  %v427_v12 = vadd.f32 %v419_v25, %v405_v26  ;;  %v408_v30 = vmul.f32 0.25, %v392_v32 }
 0x3cb   : > { %v2412_v16 = vpop.permute.xlu0 %2411  ;;  %v391_v53 = vadd.f32 %v6256_v6, %v375_v63  ;;  %v377_v0 = vadd.f32 %v361_v29, %v345_v40  ;;  %v4049_v6 = vld [vmem:[%s4466_s15 + $0xd1] ss:$2 sm:$0xff]  ;;  %v332_v63 = vrot.slane %v4051_v28, 7 }
 0x3cc   : > { %v2606_v35 = vpop.permute.xlu1 %2605  ;;  %2478 = vst.msk [vmem:[#allocation3 + $0xf0] sm:$0xff] %vm2447_vm9, %v2412_v16  ;;  %v426_v36 = vadd.f32 %v418_v41, %v403_v2  ;;  %v378_v2 = vadd.f32 %v362_v9, %v346_v4  ;;  %v330_v48 = vrot.slane %v4049_v6, 7  ;;  %v365_v41 = vmul.f32 2.0, %v4033_v15 }
 0x3cd   : > { %2672 = vst.msk [vmem:[#allocation3 + $0xf0] sm:$0xff] %vm2641_vm10, %v2606_v35  ;;  %v4047_v35 = vld [vmem:[%s4466_s15 + $0xb1] ss:$2 sm:$0xff]  ;;  %v407_v16 = vmul.f32 0.25, %v391_v53  ;;  %v393_v23 = vadd.f32 %v4045_v45, %v377_v0  ;;  %v351_v31 = vsel %vm335_vm5, %v4051_v28, %v332_v63 }
 0x3ce   : > { %v434_v50 = vadd.f32 %v426_v36, %v405_v26  ;;  %v328_v62 = vrot.slane %v4047_v35, 7  ;;  %v394_v52 = vadd.f32 %v4046_v39, %v378_v2  ;;  %v4034_v26 = vld [vmem:[%s4466_s15 + $0xe0] ss:$2 sm:$0xff] }
 0x3cf   : > { %v4188_v51 = vpop.f32.mrb[0].mxu1  ;;  %v2414_v13 = vpop.permute.xlu0 %2413  ;;  %v3088_v47 = vld [vmem:[#allocation3 + $0xe0] sm:$0xff]  ;;  %v409_v60 = vmul.f32 0.25, %v393_v23 }
 0x3d0   : > { %v3089_v11 = vld [vmem:[#allocation3 + $0xe8] sm:$0xff]  ;;  %v2799_v46 = vpop.permute.xlu1 %2798  ;;  %vm3444_vm4 = vcmp.ge.f32.partialorder %v4188_v51, 0.0  ;;  %v3477_v19 = vmul.f32 %v4188_v51, %v5979_v7  ;;  %2479 = vst.msk [vmem:[#allocation3 + $0xf8] sm:$0xff] %vm2447_vm9, %v2414_v13  ;;  %v3364_v8 = vpop.f32.mrb[1].mxu1  ;;  %4198 = vmatprep.mubr.msk.f32.mxu1 %vm3097_vm13, %v3088_v47  ;;  %v442_v3 = vmul.f32 0.25, %v434_v50  ;;  %v435_v47 = vadd.f32 %v427_v12, %v407_v16 }
 0x3d1   : > { %2865 = vst.msk [vmem:[#allocation3 + $0xf0] sm:$0xff] %vm2834_vm11, %v2799_v46  ;;  %vm3443_vm7 = vcmp.ge.f32.partialorder %v3364_v8, 0.0  ;;  %v3476_v17 = vmul.f32 %v5979_v7, %v3364_v8  ;;  %4199 = vmatmul.mubr.msk.f32.gmra.mrb[8].mxu1 %vm3097_vm13, %v3089_v11  ;;  %v4032_v11 = vld [vmem:[%s4466_s15 + $0xc0] ss:$2 sm:$0xff]  ;;  %v347_v46 = vsel %vm335_vm5, %v4047_v35, %v328_v62  ;;  %v410_v57 = vmul.f32 0.25, %v394_v52 }
 0x3d2   : > { %v3509_v42 = vsel %vm3444_vm4, %v4188_v51, %v3477_v19  ;;  %3763 = vrot.lane.b32.xlu1 %v442_v3, %s4362_s18  ;;  %v4050_v51 = vld [vmem:[%s4466_s15 + $0xe1] ss:$2 sm:$0xff]  ;;  %v379_v21 = vadd.f32 %v363_v59, %v347_v46  ;;  %v348_v19 = vsel %vm335_vm5, %v4048_v43, %v329_v14  ;;  %v364_v38 = vmul.f32 2.0, %v4032_v11 }
 0x3d3   : > { %3541 = vst.msk [vmem:[#allocation4 + $0xa8] sm:$0xff] %vm1362_vm0, %v3509_v42  ;;  %v3508_v33 = vsel %vm3443_vm7, %v3364_v8, %v3476_v17  ;;  %v2608_v49 = vpop.permute.xlu0 %2607  ;;  %v349_v8 = vsel %vm335_vm5, %v4049_v6, %v330_v48  ;;  %v443_v45 = vmul.f32 0.25, %v435_v47  ;;  %v420_v17 = vmul.f32 2.0, %v408_v30 }
 0x3d4   : > { %v2992_v44 = vpop.permute.xlu1 %2991  ;;  %3540 = vst.msk [vmem:[#allocation4 + $0xa0] sm:$0xff] %vm1362_vm0, %v3508_v33  ;;  %v395_v55 = vadd.f32 %v4047_v35, %v379_v21  ;;  %v380_v42 = vadd.f32 %v364_v38, %v348_v19  ;;  %v331_v10 = vrot.slane %v4050_v51, 7  ;;  %v381_v33 = vadd.f32 %v365_v41, %v349_v8  ;;  %v3799_v21 = vld [vmem:[%s6480_s5] sm:$0xff] }
 0x3d5   : > { %3058 = vst.msk [vmem:[#allocation3 + $0xf0] sm:$0xff] %vm3027_vm12, %v2992_v44  ;;  %v4035_v44 = vld [vmem:[%s4466_s15 + $0xf0] ss:$2 sm:$0xff]  ;;  %3765 = vrot.lane.b32.xlu0 %v443_v45, %s4362_s18  ;;  %v428_v1 = vadd.f32 %v420_v17, %v407_v16  ;;  %v421_v36 = vmul.f32 2.0, %v410_v57  ;;  %4204 = vmatprep.subr.mxu1 %v3799_v21 }
 0x3d6   : > { %2673 = vst.msk [vmem:[#allocation3 + $0xf8] sm:$0xff] %vm2641_vm10, %v2608_v49  ;;  %v411_v39 = vmul.f32 0.25, %v395_v55  ;;  %v366_v49 = vmul.f32 2.0, %v4034_v26  ;;  %v396_v22 = vadd.f32 %v4048_v43, %v380_v42  ;;  %v350_v58 = vsel %vm335_vm5, %v4050_v51, %v331_v10  ;;  %4205 = vmatpush3.msra.mxu1 %v3799_v21 }
 0x3d7   : > { %v2801_v54 = vpop.permute.xlu0 %2800  ;;  %v436_v53 = vadd.f32 %v428_v1, %v409_v60  ;;  %v397_v37 = vadd.f32 %v4049_v6, %v381_v33  ;;  %v367_v20 = vmul.f32 2.0, %v4035_v44  ;;  %v429_v35 = vadd.f32 %v421_v36, %v409_v60 }
 0x3d8   : > { %2866 = vst.msk [vmem:[#allocation3 + $0xf8] sm:$0xff] %vm2834_vm11, %v2801_v54  ;;  %v382_v29 = vadd.f32 %v366_v49, %v350_v58  ;;  %v412_v50 = vmul.f32 0.25, %v396_v22 }
 0x3d9   : > { %v444_v18 = vmul.f32 0.25, %v436_v53  ;;  %v383_v40 = vadd.f32 %v367_v20, %v351_v31  ;;  %v437_v16 = vadd.f32 %v429_v35, %v411_v39  ;;  %v413_v25 = vmul.f32 0.25, %v397_v37 }
 0x3da   : > { %v398_v56 = vadd.f32 %v4050_v51, %v382_v29  ;;  %v422_v24 = vmul.f32 2.0, %v412_v50 }
 0x3db   : > { %v2994_v34 = vpop.permute.xlu0 %2993  ;;  %3767 = vrot.lane.b32.xlu1 %v444_v18, %s4362_s18  ;;  %v399_v0 = vadd.f32 %v4051_v28, %v383_v40  ;;  %v445_v54 = vmul.f32 0.25, %v437_v16 }
 0x3dc   : > { %v3090_v13 = vld [vmem:[#allocation3 + $0xf0] sm:$0xff]  ;;  %3059 = vst.msk [vmem:[#allocation3 + $0xf8] sm:$0xff] %vm3027_vm12, %v2994_v34  ;;  %v414_v43 = vmul.f32 0.25, %v398_v56  ;;  %v430_v3 = vadd.f32 %v422_v24, %v411_v39 }
 0x3dd   : > { %4201 = vmatprep.mubr.msk.f32.mxu1 %vm3097_vm13, %v3090_v13  ;;  %v415_v6 = vmul.f32 0.25, %v399_v0  ;;  %3769 = vrot.lane.b32.xlu0 %v445_v54, %s4362_s18 }
 0x3de   : > { %v423_v62 = vmul.f32 2.0, %v414_v43  ;;  %v438_v4 = vadd.f32 %v430_v3, %v413_v25 }
 0x3e0   : > { %v431_v9 = vadd.f32 %v423_v62, %v413_v25  ;;  %v446_v12 = vmul.f32 0.25, %v438_v4 }
 0x3e2   : > { %v439_v32 = vadd.f32 %v431_v9, %v415_v6  ;;  %3771 = vrot.lane.b32.xlu1 %v446_v12, %s4362_s18 }
 0x3e3   : > { %v3091_v5 = vld [vmem:[#allocation3 + $0xf8] sm:$0xff] }
 0x3e4   : > { %4202 = vmatmul.mubr.msk.f32.gmra.mrb[10].mxu1 %vm3097_vm13, %v3091_v5  ;;  %v447_v23 = vmul.f32 0.25, %v439_v32 }
 0x3e6   : > { %3773 = vrot.lane.b32.xlu0 %v447_v23, %s4362_s18 }
 0x3ef   : > { %v4176_v59 = vpop.f32.mrb[12].mxu0 }
 0x3f0   : > { %vm3436_vm8 = vcmp.ge.f32.partialorder %v4176_v59, 0.0  ;;  %v3469_v11 = vmul.f32 %v4176_v59, %v5979_v7  ;;  %v3324_v46 = vpop.f32.mrb[13].mxu0 }
 0x3f1   : > { %vm3435_vm9 = vcmp.ge.f32.partialorder %v3324_v46, 0.0  ;;  %v3468_v2 = vmul.f32 %v5979_v7, %v3324_v46 }
 0x3f2   : > { %v3501_v15 = vsel %vm3436_vm8, %v4176_v59, %v3469_v11 }
 0x3f3   : > { %3533 = vst.msk [vmem:[#allocation4 + $0x68] sm:$0xff] %vm1362_vm0, %v3501_v15  ;;  %v3500_v14 = vsel %vm3435_vm9, %v3324_v46, %v3468_v2 }
 0x3f4   : > { %3532 = vst.msk [vmem:[#allocation4 + $0x60] sm:$0xff] %vm1362_vm0, %v3500_v14 }
 0x3fb   : > { %v3596_v28 = vld [vmem:[#allocation4 + $0x61] ss:$2 sm:$0xff]  ;;  %v3564_v34 = vld [vmem:[#allocation4 + $0x60] ss:$2 sm:$0xff] }
 0x3fc   : > { %v3621_v52 = vrot.slane %v3596_v28, 7  ;;  %v3653_v8 = vmul.f32 2.0, %v3564_v34 }
 0x3fe   : > { %v3637_v45 = vsel %vm335_vm5, %v3596_v28, %v3621_v52 }
 0x3ff   : > { %v3669_v57 = vadd.f32 %v3653_v8, %v3637_v45 }
 0x401   : > { %v3685_v42 = vadd.f32 %v3669_v57, %v3596_v28 }
 0x403   : > { %v3701_v63 = vmul.f32 0.25, %v3685_v42 }
 0x405   : > { %v3714_v36 = vmul.f32 2.0, %v3701_v63 }
 0x407   : > { %v3722_v31 = vadd.f32 %v3714_v36, %v6224_v61 }
 0x40f   : > { %v4191_v48 = vpop.f32.mrb[2].mxu1 }
 0x410   : > { %vm3446_vm10 = vcmp.ge.f32.partialorder %v4191_v48, 0.0  ;;  %v3479_v51 = vmul.f32 %v4191_v48, %v5979_v7  ;;  %v3374_v13 = vpop.f32.mrb[3].mxu1 }
 0x411   : > { %vm3445_vm11 = vcmp.ge.f32.partialorder %v3374_v13, 0.0  ;;  %v3478_v47 = vmul.f32 %v5979_v7, %v3374_v13 }
 0x412   : > { %v3511_v30 = vsel %vm3446_vm10, %v4191_v48, %v3479_v51 }
 0x413   : > { %3543 = vst.msk [vmem:[#allocation4 + $0xb8] sm:$0xff] %vm1362_vm0, %v3511_v30  ;;  %v3510_v60 = vsel %vm3445_vm11, %v3374_v13, %v3478_v47 }
 0x414   : > { %3542 = vst.msk [vmem:[#allocation4 + $0xb0] sm:$0xff] %vm1362_vm0, %v3510_v60 }
 0x41b   : > { %v3606_v11 = vld [vmem:[#allocation4 + $0xb1] ss:$2 sm:$0xff]  ;;  %v3574_v13 = vld [vmem:[#allocation4 + $0xb0] ss:$2 sm:$0xff] }
 0x41c   : > { %v3626_v47 = vrot.slane %v3606_v11, 7  ;;  %v3658_v21 = vmul.f32 2.0, %v3574_v13 }
 0x41e   : > { %v3642_v28 = vsel %vm335_vm5, %v3606_v11, %v3626_v47 }
 0x41f   : > { %v3674_v52 = vadd.f32 %v3658_v21, %v3642_v28 }
 0x42f   : > { %v4179_v19 = vpop.f32.mrb[14].mxu0 }
 0x430   : > { %vm3438_vm12 = vcmp.ge.f32.partialorder %v4179_v19, 0.0  ;;  %v3471_v38 = vmul.f32 %v4179_v19, %v5979_v7  ;;  %v3334_v26 = vpop.f32.mrb[15].mxu0 }
 0x431   : > { %vm3437_vm13 = vcmp.ge.f32.partialorder %v3334_v26, 0.0  ;;  %v3470_v17 = vmul.f32 %v5979_v7, %v3334_v26 }
 0x432   : > { %v3503_v55 = vsel %vm3438_vm12, %v4179_v19, %v3471_v38 }
 0x433   : > { %3535 = vst.msk [vmem:[#allocation4 + $0x78] sm:$0xff] %vm1362_vm0, %v3503_v55  ;;  %v3502_v41 = vsel %vm3437_vm13, %v3334_v26, %v3470_v17  ;;  %v3690_v17 = vadd.f32 %v3674_v52, %v3606_v11 }
 0x434   : > { %3534 = vst.msk [vmem:[#allocation4 + $0x70] sm:$0xff] %vm1362_vm0, %v3502_v41 }
 0x438   : > { %v3760_v53 = vpop.permute.xlu1 %3759 }
 0x439   : > { %3783 = vst.msk [vmem:[#allocation3] sm:$0xff] %vm1675_vm1, %v3760_v53  ;;  %v3604_v53 = vld [vmem:[#allocation4 + $0xa1] ss:$2 sm:$0xff] }
 0x43b   : > { %v3566_v44 = vld [vmem:[#allocation4 + $0x70] ss:$2 sm:$0xff]  ;;  %v3598_v10 = vld [vmem:[#allocation4 + $0x71] ss:$2 sm:$0xff] }
 0x43c   : > { %v3622_v1 = vrot.slane %v3598_v10, 7  ;;  %v3654_v39 = vmul.f32 2.0, %v3566_v44  ;;  %v3762_v20 = vpop.permute.xlu0 %3761  ;;  %v3706_v44 = vmul.f32 0.25, %v3690_v17 }
 0x43d   : > { %3784 = vst.msk [vmem:[#allocation3 + $0x10] sm:$0xff] %vm1675_vm1, %v3762_v20 }
 0x43e   : > { %v3638_v33 = vsel %vm335_vm5, %v3598_v10, %v3622_v1 }
 0x43f   : > { %v3670_v49 = vadd.f32 %v3654_v39, %v3638_v33 }
 0x440   : > { %v3791_v50 = vld [vmem:[#allocation3] sm:$0xff] }
 0x441   : > { %v3686_v22 = vadd.f32 %v3670_v49, %v3598_v10  ;;  %4206 = vmatprep.mubr.msk.f32.mxu1 %vm3800_vm2, %v3791_v50 }
 0x443   : > { %v6343_v58 = vmul.f32 0.25, %v3686_v22 }
 0x444   : > { %v3764_v35 = vpop.permute.xlu1 %3763  ;;  %v3792_v18 = vld [vmem:[#allocation3 + $0x10] sm:$0xff] }
 0x445   : > { %v3730_v37 = vadd.f32 %v3722_v31, %v6343_v58  ;;  %3785 = vst.msk [vmem:[#allocation3 + $0x20] sm:$0xff] %vm1675_vm1, %v3764_v35  ;;  %4207 = vmatmul.mubr.msk.f32.vlgmr.msra.gmra.mrb[12].mxu1 %vm3800_vm2, %v3792_v18  ;;  %v3572_v18 = vld [vmem:[#allocation4 + $0xa0] ss:$2 sm:$0xff] }
 0x447   : > { %v3738_v29 = vmul.f32 0.25, %v3730_v37  ;;  %v3766_v5 = vpop.permute.xlu0 %3765 }
 0x449   : > { %3746 = vst.msk [vmem:[#allocation3 + $0x30] sm:$0xff] %vm1362_vm0, %v3738_v29 }
 0x44a   : > { %3786 = vst.msk [vmem:[#allocation3 + $0x30] sm:$0xff] %vm1675_vm1, %v3766_v5 }
 0x44c   : > { %v3793_v0 = vld [vmem:[#allocation3 + $0x20] sm:$0xff] }
 0x44d   : > { %4209 = vmatprep.mubr.msk.f32.mxu1 %vm3800_vm2, %v3793_v0  ;;  %v6374_v42 = vpop.permute.xlu1 %3767 }
 0x451   : > { %v3794_v43 = vld [vmem:[#allocation3 + $0x30] sm:$0xff] }
 0x452   : > { %v4194_v61 = vpop.f32.mrb[4].mxu1  ;;  %4210 = vmatmul.mubr.msk.f32.gmra.mrb[14].mxu1 %vm3800_vm2, %v3794_v43 }
 0x453   : > { %vm3448_vm3 = vcmp.ge.f32.partialorder %v4194_v61, 0.0  ;;  %v3481_v40 = vmul.f32 %v4194_v61, %v5979_v7  ;;  %v3384_v56 = vpop.f32.mrb[5].mxu1 }
 0x454   : > { %vm3447_vm6 = vcmp.ge.f32.partialorder %v3384_v56, 0.0  ;;  %v3480_v16 = vmul.f32 %v5979_v7, %v3384_v56  ;;  %v3772_v36 = vpop.permute.xlu1 %3771 }
 0x455   : > { %v3513_v25 = vsel %vm3448_vm3, %v4194_v61, %v3481_v40  ;;  %v3625_v61 = vrot.slane %v3604_v53, 7 }
 0x456   : > { %3545 = vst.msk [vmem:[#allocation4 + $0xc8] sm:$0xff] %vm1362_vm0, %v3513_v25  ;;  %v3512_v24 = vsel %vm3447_vm6, %v3384_v56, %v3480_v16  ;;  %v3657_v25 = vmul.f32 2.0, %v3572_v18 }
 0x457   : > { %3544 = vst.msk [vmem:[#allocation4 + $0xc0] sm:$0xff] %vm1362_vm0, %v3512_v24  ;;  %v3641_v24 = vsel %vm335_vm5, %v3604_v53, %v3625_v61 }
 0x458   : > { %v3673_v43 = vadd.f32 %v3657_v25, %v3641_v24 }
 0x45e   : > { %v3608_v12 = vld [vmem:[#allocation4 + $0xc1] ss:$2 sm:$0xff]  ;;  %v3576_v32 = vld [vmem:[#allocation4 + $0xc0] ss:$2 sm:$0xff] }
 0x45f   : > { %v3627_v23 = vrot.slane %v3608_v12, 7  ;;  %v3659_v46 = vmul.f32 2.0, %v3576_v32 }
 0x461   : > { %v3643_v14 = vsel %vm335_vm5, %v3608_v12, %v3627_v23  ;;  %v3689_v23 = vadd.f32 %v3673_v43, %v3604_v53 }
 0x462   : > { %v3675_v60 = vadd.f32 %v3659_v46, %v3643_v14 }
 0x464   : > { %v3691_v34 = vadd.f32 %v3675_v60, %v3608_v12 }
 0x466   : > { %v3707_v38 = vmul.f32 0.25, %v3691_v34 }
 0x468   : > { %v4182_v54 = vpop.f32.mrb[16].mxu0  ;;  %v3717_v57 = vmul.f32 2.0, %v3707_v38 }
 0x469   : > { %vm3440_vm14 = vcmp.ge.f32.partialorder %v4182_v54, 0.0  ;;  %v3473_v3 = vmul.f32 %v4182_v54, %v5979_v7  ;;  %v3344_v6 = vpop.f32.mrb[17].mxu0 }
 0x46a   : > { %vm3439_vm15 = vcmp.ge.f32.partialorder %v3344_v6, 0.0  ;;  %v3472_v62 = vmul.f32 %v5979_v7, %v3344_v6  ;;  %v3725_v1 = vadd.f32 %v3717_v57, %v3706_v44 }
 0x46b   : > { %v3505_v4 = vsel %vm3440_vm14, %v4182_v54, %v3473_v3 }
 0x46c   : > { %3537 = vst.msk [vmem:[#allocation4 + $0x88] sm:$0xff] %vm1362_vm0, %v3505_v4  ;;  %v3504_v9 = vsel %vm3439_vm15, %v3344_v6, %v3472_v62 }
 0x46d   : > { %3536 = vst.msk [vmem:[#allocation4 + $0x80] sm:$0xff] %vm1362_vm0, %v3504_v9 }
 0x474   : > { %v3600_v33 = vld [vmem:[#allocation4 + $0x81] ss:$2 sm:$0xff]  ;;  %v3568_v22 = vld [vmem:[#allocation4 + $0x80] ss:$2 sm:$0xff] }
 0x475   : > { %v3623_v31 = vrot.slane %v3600_v33, 7  ;;  %v3655_v20 = vmul.f32 2.0, %v3568_v22 }
 0x477   : > { %v3639_v50 = vsel %vm335_vm5, %v3600_v33, %v3623_v31 }
 0x478   : > { %v3671_v16 = vadd.f32 %v3655_v20, %v3639_v50 }
 0x47a   : > { %v3687_v0 = vadd.f32 %v3671_v16, %v3600_v33 }
 0x47c   : > { %v3703_v32 = vmul.f32 0.25, %v3687_v0 }
 0x47e   : > { %v3715_v14 = vmul.f32 2.0, %v3703_v32 }
 0x480   : > { %v4197_v59 = vpop.f32.mrb[6].mxu1  ;;  %v3723_v47 = vadd.f32 %v3715_v14, %v6343_v58 }
 0x481   : > { %vm3450_vm4 = vcmp.ge.f32.partialorder %v4197_v59, 0.0  ;;  %v3483_v2 = vmul.f32 %v4197_v59, %v5979_v7  ;;  %v3394_v15 = vpop.f32.mrb[7].mxu1 }
 0x482   : > { %vm3449_vm7 = vcmp.ge.f32.partialorder %v3394_v15, 0.0  ;;  %v3482_v48 = vmul.f32 %v5979_v7, %v3394_v15 }
 0x483   : > { %v3515_v51 = vsel %vm3450_vm4, %v4197_v59, %v3483_v2 }
 0x484   : > { %3547 = vst.msk [vmem:[#allocation4 + $0xd8] sm:$0xff] %vm1362_vm0, %v3515_v51  ;;  %v3514_v30 = vsel %vm3449_vm7, %v3394_v15, %v3482_v48  ;;  %v3705_v48 = vmul.f32 0.25, %v3689_v23 }
 0x485   : > { %3546 = vst.msk [vmem:[#allocation4 + $0xd0] sm:$0xff] %vm1362_vm0, %v3514_v30 }
 0x486   : > { %v3716_v30 = vmul.f32 2.0, %v3705_v48 }
 0x48c   : > { %v3578_v19 = vld [vmem:[#allocation4 + $0xd0] ss:$2 sm:$0xff]  ;;  %v3610_v8 = vld [vmem:[#allocation4 + $0xd1] ss:$2 sm:$0xff] }
 0x48d   : > { %v3628_v26 = vrot.slane %v3610_v8, 7  ;;  %v3660_v45 = vmul.f32 2.0, %v3578_v19 }
 0x48f   : > { %v3644_v55 = vsel %vm335_vm5, %v3610_v8, %v3628_v26  ;;  %v3770_v26 = vpop.permute.xlu0 %3769 }
 0x490   : > { %v3676_v41 = vadd.f32 %v3660_v45, %v3644_v55 }
 0x492   : > { %v3692_v10 = vadd.f32 %v3676_v41, %v3610_v8 }
 0x494   : > { %v6376_v63 = vmul.f32 0.25, %v3692_v10 }
 0x496   : > { %v3733_v39 = vadd.f32 %v3725_v1, %v6376_v63 }
 0x498   : > { %v3741_v49 = vmul.f32 0.25, %v3733_v39 }
 0x49a   : > { %3749 = vst.msk [vmem:[#allocation3 + $0x60] sm:$0xff] %vm1362_vm0, %v3741_v49 }
 0x49b   : > { %3789 = vst.msk [vmem:[#allocation3 + $0x60] sm:$0xff] %vm1675_vm1, %v3772_v36  ;;  %v4185_v37 = vpop.f32.mrb[18].mxu0 }
 0x49c   : > { %vm3442_vm8 = vcmp.ge.f32.partialorder %v4185_v37, 0.0  ;;  %v3475_v29 = vmul.f32 %v4185_v37, %v5979_v7  ;;  %v3354_v35 = vpop.f32.mrb[19].mxu0 }
 0x49d   : > { %vm3441_vm9 = vcmp.ge.f32.partialorder %v3354_v35, 0.0  ;;  %v3474_v40 = vmul.f32 %v5979_v7, %v3354_v35 }
 0x49e   : > { %v3507_v56 = vsel %vm3442_vm8, %v4185_v37, %v3475_v29 }
 0x49f   : > { %3539 = vst.msk [vmem:[#allocation4 + $0x98] sm:$0xff] %vm1362_vm0, %v3507_v56  ;;  %v3506_v5 = vsel %vm3441_vm9, %v3354_v35, %v3474_v40  ;;  %v3774_v56 = vpop.permute.xlu0 %3773 }
 0x4a0   : > { %3538 = vst.msk [vmem:[#allocation4 + $0x90] sm:$0xff] %vm1362_vm0, %v3506_v5 }
 0x4a2   : > { %v3797_v39 = vld [vmem:[#allocation3 + $0x60] sm:$0xff] }
 0x4a4   : > { %v4200_v54 = vpop.f32.mrb[8].mxu1 }
 0x4a5   : > { %vm3452_vm10 = vcmp.ge.f32.partialorder %v4200_v54, 0.0  ;;  %v3485_v3 = vmul.f32 %v4200_v54, %v5979_v7  ;;  %v3404_v6 = vpop.f32.mrb[9].mxu1 }
 0x4a6   : > { %vm3451_vm11 = vcmp.ge.f32.partialorder %v3404_v6, 0.0  ;;  %v3484_v62 = vmul.f32 %v5979_v7, %v3404_v6 }
 0x4a7   : > { %v3517_v4 = vsel %vm3452_vm10, %v4200_v54, %v3485_v3  ;;  %v3570_v9 = vld [vmem:[#allocation4 + $0x90] ss:$2 sm:$0xff]  ;;  %v3602_v12 = vld [vmem:[#allocation4 + $0x91] ss:$2 sm:$0xff] }
 0x4a8   : > { %3549 = vst.msk [vmem:[#allocation4 + $0xe8] sm:$0xff] %vm1362_vm0, %v3517_v4  ;;  %v3516_v59 = vsel %vm3451_vm11, %v3404_v6, %v3484_v62  ;;  %v3624_v11 = vrot.slane %v3602_v12, 7  ;;  %v3656_v46 = vmul.f32 2.0, %v3570_v9 }
 0x4a9   : > { %3548 = vst.msk [vmem:[#allocation4 + $0xe0] sm:$0xff] %vm1362_vm0, %v3516_v59 }
 0x4aa   : > { %v3640_v2 = vsel %vm335_vm5, %v3602_v12, %v3624_v11 }
 0x4ab   : > { %v3672_v15 = vadd.f32 %v3656_v46, %v3640_v2 }
 0x4ad   : > { %v3688_v51 = vadd.f32 %v3672_v15, %v3602_v12 }
 0x4af   : > { %v3704_v13 = vmul.f32 0.25, %v3688_v51 }
 0x4b0   : > { %v3612_v28 = vld [vmem:[#allocation4 + $0xe1] ss:$2 sm:$0xff]  ;;  %v3580_v19 = vld [vmem:[#allocation4 + $0xe0] ss:$2 sm:$0xff] }
 0x4b1   : > { %v3731_v60 = vadd.f32 %v3723_v47, %v3704_v13  ;;  %v3724_v21 = vadd.f32 %v3716_v30, %v3704_v13  ;;  %v3629_v8 = vrot.slane %v3612_v28, 7  ;;  %v3661_v17 = vmul.f32 2.0, %v3580_v19 }
 0x4b3   : > { %v3739_v34 = vmul.f32 0.25, %v3731_v60  ;;  %v3732_v52 = vadd.f32 %v3724_v21, %v3706_v44  ;;  %v3645_v41 = vsel %vm335_vm5, %v3612_v28, %v3629_v8 }
 0x4b4   : > { %v3677_v10 = vadd.f32 %v3661_v17, %v3645_v41 }
 0x4b5   : > { %3747 = vst.msk [vmem:[#allocation3 + $0x40] sm:$0xff] %vm1362_vm0, %v3739_v34  ;;  %v3740_v38 = vmul.f32 0.25, %v3732_v52 }
 0x4b6   : > { %3787 = vst.msk [vmem:[#allocation3 + $0x40] sm:$0xff] %vm1675_vm1, %v6374_v42  ;;  %v3693_v33 = vadd.f32 %v3677_v10, %v3612_v28 }
 0x4b7   : > { %v4203_v45 = vpop.f32.mrb[10].mxu1  ;;  %3748 = vst.msk [vmem:[#allocation3 + $0x50] sm:$0xff] %vm1362_vm0, %v3740_v38 }
 0x4b8   : > { %vm3454_vm12 = vcmp.ge.f32.partialorder %v4203_v45, 0.0  ;;  %v3487_v58 = vmul.f32 %v4203_v45, %v5979_v7  ;;  %v3414_v55 = vpop.f32.mrb[11].mxu1  ;;  %3788 = vst.msk [vmem:[#allocation3 + $0x50] sm:$0xff] %vm1675_vm1, %v3770_v26 }
 0x4b9   : > { %vm3453_vm13 = vcmp.ge.f32.partialorder %v3414_v55, 0.0  ;;  %v3486_v57 = vmul.f32 %v5979_v7, %v3414_v55  ;;  %v3709_v7 = vmul.f32 0.25, %v3693_v33 }
 0x4ba   : > { %v3519_v44 = vsel %vm3454_vm12, %v4203_v45, %v3487_v58 }
 0x4bb   : > { %3551 = vst.msk [vmem:[#allocation4 + $0xf8] sm:$0xff] %vm1362_vm0, %v3519_v44  ;;  %v3518_v42 = vsel %vm3453_vm13, %v3414_v55, %v3486_v57  ;;  %v3718_v29 = vmul.f32 2.0, %v3709_v7 }
 0x4bc   : > { %3550 = vst.msk [vmem:[#allocation4 + $0xf0] sm:$0xff] %vm1362_vm0, %v3518_v42 }
 0x4bd   : > { %v3795_v1 = vld [vmem:[#allocation3 + $0x40] sm:$0xff]  ;;  %v3726_v18 = vadd.f32 %v3718_v29, %v6376_v63 }
 0x4be   : > { %4212 = vmatprep.mubr.msk.f32.mxu1 %vm3800_vm2, %v3795_v1 }
 0x4bf   : > { %v3796_v49 = vld [vmem:[#allocation3 + $0x50] sm:$0xff] }
 0x4c0   : > { %4213 = vmatmul.mubr.msk.f32.gmra.mrb[16].mxu1 %vm3800_vm2, %v3796_v49 }
 0x4c1   : > { %4215 = vmatprep.mubr.msk.f32.mxu1 %vm3800_vm2, %v3797_v39 }
 0x4c3   : > { %v3582_v36 = vld [vmem:[#allocation4 + $0xf0] ss:$2 sm:$0xff]  ;;  %v3614_v22 = vld [vmem:[#allocation4 + $0xf1] ss:$2 sm:$0xff] }
 0x4c4   : > { %v3630_v31 = vrot.slane %v3614_v22, 7  ;;  %v3662_v53 = vmul.f32 2.0, %v3582_v36 }
 0x4c6   : > { %v3646_v37 = vsel %vm335_vm5, %v3614_v22, %v3630_v31 }
 0x4c7   : > { %v3678_v20 = vadd.f32 %v3662_v53, %v3646_v37 }
 0x4c9   : > { %v3694_v35 = vadd.f32 %v3678_v20, %v3614_v22 }
 0x4cb   : > { %v3710_v50 = vmul.f32 0.25, %v3694_v35 }
 0x4cd   : > { %v3734_v61 = vadd.f32 %v3726_v18, %v3710_v50 }
 0x4cf   : > { %v3742_v40 = vmul.f32 0.25, %v3734_v61 }
 0x4d1   : > { %3750 = vst.msk [vmem:[#allocation3 + $0x70] sm:$0xff] %vm1362_vm0, %v3742_v40 }
 0x4d2   : > { %3790 = vst.msk [vmem:[#allocation3 + $0x70] sm:$0xff] %vm1675_vm1, %v3774_v56 }
 0x4d9   : > { %v3798_v5 = vld [vmem:[#allocation3 + $0x70] sm:$0xff] }
 0x4da   : > { %4216 = vmatmul.mubr.msk.f32.gmra.mrb[18].mxu1 %vm3800_vm2, %v3798_v5 }
 0x518   : > { %v4208_v27 = vpop.f32.mrb[12].mxu1 }
 0x519   : > { %3931 = vst.msk [vmem:[%s246_s23 + $0x8] sm:$0xff] %vm3800_vm2, %v4208_v27  ;;  %v3891_v16 = vpop.f32.mrb[13].mxu1 }
 0x51a   : > { %3930 = vst.msk [vmem:[%s246_s23] sm:$0xff] %vm3800_vm2, %v3891_v16 }
 0x525   : > { %v4211_v63 = vpop.f32.mrb[14].mxu1 }
 0x526   : > { %3933 = vst.msk [vmem:[%s246_s23 + $0x18] sm:$0xff] %vm3800_vm2, %v4211_v63  ;;  %v3901_v25 = vpop.f32.mrb[15].mxu1 }
 0x527   : > { %3932 = vst.msk [vmem:[%s246_s23 + $0x10] sm:$0xff] %vm3800_vm2, %v3901_v25 }
 0x593   : > { %v4214_v24 = vpop.f32.mrb[16].mxu1 }
 0x594   : > { %3935 = vst.msk [vmem:[%s246_s23 + $0x28] sm:$0xff] %vm3800_vm2, %v4214_v24  ;;  %v3911_v0 = vpop.f32.mrb[17].mxu1 }
 0x595   : > { %3934 = vst.msk [vmem:[%s246_s23 + $0x20] sm:$0xff] %vm3800_vm2, %v3911_v0 }
 0x5ad   : > { %v4217_v43 = vpop.f32.mrb[18].mxu1 }
 0x5ae   : > { %3937 = vst.msk [vmem:[%s246_s23 + $0x38] sm:$0xff] %vm3800_vm2, %v4217_v43  ;;  %v3921_v54 = vpop.f32.mrb[19].mxu1 }
 0x5af   : > { %3936 = vst.msk [vmem:[%s246_s23 + $0x30] sm:$0xff] %vm3800_vm2, %v3921_v54 }
 0x5b0   : > { %4306 = shalt.err (!%p4303_p3)
}
 0x5b1   : > { %s4307_s7 = scalar_lea.hbm %s6427_s14, 1024  ;;  %s4311_s18 = scalar_lea.hbm %s6481_s6, 2048 }
 0x5b2   : > { %p4308_p4 = scmp.ne.s32.totalorder %s6427_s14, %s4307_s7  ;;  %p4312_p9 = scmp.lt.u32.totalorder %s6427_s14, %s6481_s6 }
 0x5b3   : > { %p4313_p10 = scmp.lt.u32.totalorder %s4311_s18, %s4307_s7  ;;  %p4315_p12 = scmp.lt.u32.totalorder %s4307_s7, %s6427_s14 }
 0x5b4   : > { %p4309_p7 = pnand %p4308_p4, %p4451_p5 }
 0x5b5   : > { %p4314_p11 = por %p4313_p10, %p4312_p9 }
 0x5b6   : > { %p4310_p8 = pneg %p4309_p7 }
 0x5b7   : > { %p4316_p13 = por %p4315_p12, %p4314_p11 }
 0x5b9   : > { %p4317_p0 = pnand %p4316_p13, %p4310_p8 }
 0x5bb   : > { %4320 = shalt.err (!%p4317_p0)
}
 0x5bc   : > { %s4371_s23 = smov 128  }
 0x5bd   : > { %4232 = dma.vmem_to_hbm [thread:$0]  (%p4451_p5), %s6429_s4, 1024, %s6427_s14, %s6433_s16, %s4371_s23, %s4371_s23, %s4363_s19  }
 0x5be PF: > { %p4238_p1 = scmp.ge.s32.totalorder %s4355_s28, 2  ;;  %s3967_s24 = sand.u32 1, %s4343_s25  }
 0x5bf   : > { %s3968_s12 = scalar_lea.sflag [#allocation8], %s3967_s24 }
 0x5c0   : > { %p4235_p2 = pnand %p4238_p1, %p4455_p6 }
 0x5c2   : > { %4338 = dma.done.wait (!%p4235_p2), %s3968_s12, 1024  }
 0x5c3   : > { %4340 = vsyncadd (!%p4235_p2), %s3968_s12, 4294966272  ;;  %p18_p3 = scmp.ge.s32.totalorder %s4438_s29, 4   ;;  %s6580_s25 = smov %s4347_s26 }
 0x5c4   : > { %s6581_s26 = smov %s4351_s27  ;;  %s6582_s27 = smov %s4449_s8 }
 0x5c5   : > { %s6583_s28 = smov %s4438_s29  ;;  %20 = sbr.rel (!%p18_p3) target bundleno = 6 (0x6), region = 143 }
 0x5cc   :  { %3973 = vsyncpa [#allocation8], 1 }
 0x5cd   :  { %3975 = vsyncpa [#allocation8 + $0x1], 1 }

</bundles_post_ra>
